<compile_context>
chip_gen: v6e
topology: v6e:2x2x1
jax: 0.10.0
libtpu: 0.0.40
codegen_flags: <defaults>
</compile_context>

<pallas_src>
import jax
import jax.numpy as jnp
import numpy as np
from jax.experimental import pallas as pl
from jax.experimental.pallas import tpu as pltpu

BN_EPS = 1e-5  # PyTorch BatchNorm1d default eps


# ----------------------------- in-kernel helpers ------------------------------
def _fast_inv(x):
    """EUP approximate reciprocal + one Newton step (keeps the divide off the VPU)."""
    r = pl.reciprocal(x, approx=True)
    return r * (2.0 - x * r)


def _bn_lanes(y, gamma, beta):
    """Training-mode BatchNorm1d with the stats axis on lanes: y (C, L), gamma/beta (C, 1).
    Two-pass (mean, then centered sum-of-squares), biased variance, as in PyTorch."""
    cnt = y.shape[1]
    mu = jnp.sum(y, axis=1, keepdims=True) * (1.0 / cnt)
    yc = y - mu
    var = jnp.sum(yc * yc, axis=1, keepdims=True) * (1.0 / cnt)
    return yc * jax.lax.rsqrt(var + BN_EPS) * gamma + beta


# --------------------------------- the kernel ---------------------------------
def pse_ltae_kernel(x_ref, m_ref, r_ref,
                    w1a_ref, g1a_ref, be1a_ref,
                    w1b_ref, g1b_ref, be1b_ref,
                    w2m_ref, w2s_ref, g2_ref, be2_ref,
                    wd1s_ref, gd1_ref, bed1_ref,
                    wd2_ref, bd2_ref,
                    out_ref):
    f32, bf16 = jnp.float32, jnp.bfloat16
    S = m_ref.shape[1]            # B*T samples, time-major ordering: s = t*B + b
    B = out_ref.shape[1]
    T = S // B
    Dd = wd1s_ref.shape[0] // T   # decoder hidden width (64)

    # ----- mlp1: two lane-dense bf16 matmuls (channels on sublanes, BT*N on lanes) -----
    h = jnp.dot(w1a_ref[...], x_ref[...], preferred_element_type=f32)          # (32, S*N)
    h = jnp.maximum(_bn_lanes(h, g1a_ref[...], be1a_ref[...]), 0.0)
    h = jnp.dot(w1b_ref[...], h.astype(bf16), preferred_element_type=f32)      # (64, S*N)
    h = jnp.maximum(_bn_lanes(h, g1b_ref[...], be1b_ref[...]), 0.0)            # f32

    # ----- masked mean / std pooling: pixel sums as MXU matmuls vs block-diag mask -----
    M = m_ref[...]                                   # (S*N, S) f32, M[s*N+n, s] = mask[s, n]
    Mb = M.astype(bf16)                              # 0/1 entries -> exact in bf16
    hb = h.astype(bf16)
    msum = jnp.sum(M, axis=0, keepdims=True)         # (1, S) valid-pixel counts
    inv_msum = _fast_inv(jnp.maximum(msum, 1.0))      # guard all-masked sample (PyTorch would NaN)
    mean = jnp.dot(hb, Mb, preferred_element_type=f32) * inv_msum              # (64, S)
    mean_b = mean.astype(bf16)
    mean_exp = jnp.dot(mean_b, r_ref[...], preferred_element_type=f32)         # (64, S*N) expand
    hc = hb.astype(f32) - mean_exp                    # two-pass std (no E[x^2]-mu^2 cancellation)
    sq = jnp.dot((hc * hc).astype(bf16), Mb, preferred_element_type=f32)       # (64, S)
    d = jnp.where(msum <= 1.0, 2.0, msum)             # d[d == 1] = 2 (and guard d == 0)
    std = jnp.sqrt(sq * _fast_inv(d - 1.0) + 1e-31)                            # (64, S)

    # ----- mlp2: split-weight bf16 matmul (avoids a concat), BN over the S samples -----
    z = (jnp.dot(w2m_ref[...], mean_b, preferred_element_type=f32) +
         jnp.dot(w2s_ref[...], std.astype(bf16), preferred_element_type=f32))  # (128, S)
    z = _bn_lanes(z, g2_ref[...], be2_ref[...])

    # ----- decoder: ONE stacked matmul + diagonal-block accumulation, BN, ReLU, head -----
    # P[t*Dd + o, s] = sum_f wd1[o, t*128+f] * z[f, s];  dec layer1 = sum_t P[t-block, t-block]
    P = jnp.dot(wd1s_ref[...], z.astype(bf16), preferred_element_type=f32)     # (T*Dd, S)
    u = P[0:Dd, 0:B]
    for t in range(1, T):
        u = u + P[t * Dd:(t + 1) * Dd, t * B:(t + 1) * B]
    u = jnp.maximum(_bn_lanes(u, gd1_ref[...], bed1_ref[...]), 0.0)            # (Dd, B)

    # final (., 64) @ (64, 1): VPU multiply + sublane reduce instead of a 1-lane MXU matmul
    # TODO(synk): for production B, make this store lane-dense (B is only 2 lanes here).
    v = jnp.sum(u * wd2_ref[...], axis=0, keepdims=True) + bd2_ref[...]        # (1, B)
    out_ref[...] = v.astype(out_ref.dtype)


# --------------------------------- host wrapper --------------------------------
def pse_ltae_forward(pixel_set, pixel_mask, params):
    """PSE_LTAE.forward with decoder_type='MLP'. Returns shape (B,)."""
    B, T, C, N = pixel_set.shape
    S = B * T
    Cp = -(-C // 16) * 16     # pad channels to a full bf16 sublane tile (15 -> 16)

    # host-side relayout (cheap XLA transposes): channels -> sublanes, time-major samples -> lanes
    x = jnp.transpose(pixel_set.astype(jnp.float32), (2, 1, 0, 3)).reshape(C, S * N)
    x = jnp.pad(x, ((0, Cp - C), (0, 0))).astype(jnp.bfloat16)
    mask_tm = jnp.transpose(pixel_mask.astype(jnp.float32), (1, 0, 2)).reshape(S, N)
    # block-diagonal mask: M[s*N + n, s] = mask[s, n]   (masked pixel sums become one matmul)
    M = (mask_tm[:, :, None] * jnp.eye(S, dtype=jnp.float32)[:, None, :]).reshape(S * N, S)
    # broadcast matrix: R[s, s*N + n] = 1 (expands per-sample means back over their N pixels)
    R = jnp.repeat(jnp.eye(S, dtype=jnp.float32), N, axis=1).astype(jnp.bfloat16)

    d1b = params['w1b'].shape[0]      # 64
    d2 = params['w2'].shape[0]        # 128
    dd1 = params['wd1'].shape[0]      # 64

    col = lambda v: jnp.asarray(v, jnp.float32).reshape(-1, 1)
    w1a = jnp.pad(params['w1a'], ((0, 0), (0, Cp - C))).astype(jnp.bfloat16)   # (32, Cp)
    w1b = params['w1b'].astype(jnp.bfloat16)                                   # (64, 32)
    w2m = params['w2'][:, :d1b].astype(jnp.bfloat16)                           # mean half (128, 64)
    w2s = params['w2'][:, d1b:].astype(jnp.bfloat16)                           # std  half (128, 64)
    # decoder weight stacked per time step: wd1s[t*64 + o, f] = wd1[o, t*128 + f]
    wd1s = params['wd1'].reshape(dd1, T, d2).transpose(1, 0, 2).reshape(T * dd1, d2)
    wd1s = wd1s.astype(jnp.bfloat16)

    # NOTE: Linear biases of mlp1 / mlp2 / decoder-layer-1 are exact no-ops under the
    # training-mode BatchNorm that immediately follows them and are therefore not passed in.
    args = (x, M, R,
            w1a, col(params['g1a']), col(params['be1a']),
            w1b, col(params['g1b']), col(params['be1b']),
            w2m, w2s, col(params['g2']), col(params['be2']),
            wd1s, col(params['gd1']), col(params['bed1']),
            col(params['wd2']), params['bd2'].reshape(1, 1).astype(jnp.float32))

    out = pl.pallas_call(
        pse_ltae_kernel,
        out_shape=jax.ShapeDtypeStruct((1, B), jnp.float32),
        in_specs=[pl.BlockSpec(memory_space=pltpu.MemorySpace.VMEM)] * len(args),
        out_specs=pl.BlockSpec(memory_space=pltpu.MemorySpace.VMEM),
    )(*args)
    return out[0]                                                 # (B,)


# ----------------------------- parameter init (PyTorch layout) -----------------
def _linear_params(key, fan_in, fan_out):
    kw, kb = jax.random.split(key)
    bound = 1.0 / np.sqrt(fan_in)
    w = jax.random.uniform(kw, (fan_out, fan_in), jnp.float32, -bound, bound)   # (out, in)
    b = jax.random.uniform(kb, (fan_out,), jnp.float32, -bound, bound)
    return w, b


def init_params(key, mlp1=(15, 32, 64), mlp2=(128, 128), seq_length=8):
    keys = jax.random.split(key, 5)
    p = {}
    p['w1a'], p['b1a'] = _linear_params(keys[0], mlp1[0], mlp1[1])
    p['g1a'] = jnp.ones((mlp1[1],), jnp.float32); p['be1a'] = jnp.zeros((mlp1[1],), jnp.float32)
    p['w1b'], p['b1b'] = _linear_params(keys[1], mlp1[1], mlp1[2])
    p['g1b'] = jnp.ones((mlp1[2],), jnp.float32); p['be1b'] = jnp.zeros((mlp1[2],), jnp.float32)
    p['w2'], p['b2'] = _linear_params(keys[2], mlp2[0], mlp2[1])
    p['g2'] = jnp.ones((mlp2[1],), jnp.float32); p['be2'] = jnp.zeros((mlp2[1],), jnp.float32)
    p['wd1'], p['bd1'] = _linear_params(keys[3], mlp2[1] * seq_length, 64)
    p['gd1'] = jnp.ones((64,), jnp.float32); p['bed1'] = jnp.zeros((64,), jnp.float32)
    p['wd2'], p['bd2'] = _linear_params(keys[4], 64, 1)
    return p


# ------------------------- pure-JAX reference (correctness check) --------------
def reference_forward(pixel_set, pixel_mask, p):
    """Mirror of the PyTorch module (training-mode BN). The bf16 matmul-operand roundings that
    the kernel applies are mirrored here; biases before BN are kept (they are exact no-ops)."""
    B, T, C, N = pixel_set.shape
    bt = B * T
    bf16r = lambda v: v.astype(jnp.bfloat16).astype(jnp.float32)
    x = pixel_set.reshape(bt, C, N).astype(jnp.float32)
    mask = pixel_mask.reshape(bt, N).astype(jnp.float32)

    def linlayer(h, w, b, g, be):
        y = jnp.einsum('oc,bcn->bon', bf16r(w), bf16r(h)) + b[None, :, None]
        mu = jnp.mean(y, axis=(0, 2), keepdims=True)
        var = jnp.mean((y - mu) ** 2, axis=(0, 2), keepdims=True)
        y = (y - mu) / jnp.sqrt(var + BN_EPS) * g[None, :, None] + be[None, :, None]
        return jnp.maximum(y, 0.0)

    h = linlayer(x, p['w1a'], p['b1a'], p['g1a'], p['be1a'])
    h = linlayer(h, p['w1b'], p['b1b'], p['g1b'], p['be1b'])     # (bt, 64, N)

    hb = bf16r(h)
    m3 = mask[:, None, :]
    msum = jnp.sum(mask, axis=1, keepdims=True)
    mean = jnp.sum(hb * m3, axis=2) / msum
    d = jnp.where(msum == 1.0, 2.0, msum)
    hc = hb - bf16r(mean)[:, :, None]
    sq = jnp.sum(bf16r(hc * hc) * m3, axis=2)
    std = jnp.sqrt(sq / (d - 1.0) + 1e-31)
    pooled = jnp.concatenate([mean, std], axis=1)                # (bt, 128)

    z = bf16r(pooled) @ bf16r(p['w2']).T + p['b2']
    mu = jnp.mean(z, axis=0); var = jnp.mean((z - mu) ** 2, axis=0)
    z = (z - mu) / jnp.sqrt(var + BN_EPS) * p['g2'] + p['be2']

    dec_in = z.reshape(B, -1)
    u = bf16r(dec_in) @ bf16r(p['wd1']).T + p['bd1']
    mu = jnp.mean(u, axis=0); var = jnp.mean((u - mu) ** 2, axis=0)
    u = jnp.maximum((u - mu) / jnp.sqrt(var + BN_EPS) * p['gd1'] + p['bed1'], 0.0)
    v = u @ p['wd2'].T + p['bd2']
    return v[:, 0]


if __name__ == "__main__":
    # module defaults: mlp1=[15,32,64], mlp2=[128,128]; small B/T/N for the test
    B, T, C, N = 2, 8, 15, 16
    key = jax.random.PRNGKey(0)
    kx, km, kp = jax.random.split(key, 3)

    pixel_set = jax.random.normal(kx, (B, T, C, N), jnp.float32)
    m = (jax.random.uniform(km, (B, T, N)) > 0.3).astype(jnp.float32)
    pixel_mask = m.at[..., 0].set(1.0)   # guarantee >= 1 valid pixel per (b, t)

    params = init_params(kp, mlp1=(C, 32, 64), mlp2=(128, 128), seq_length=T)

    out = jax.block_until_ready(pse_ltae_forward(pixel_set, pixel_mask, params))
    ref = reference_forward(pixel_set, pixel_mask, params)

    assert out.shape == (B,), out.shape
    assert bool(jnp.all(jnp.isfinite(out)))
    np.testing.assert_allclose(np.asarray(out), np.asarray(ref), rtol=2e-2, atol=2e-2)
    print("KERNEL_OK")
</pallas_src>

<mosaic_0001>
module attributes {stable_mosaic.version = 11 : i64} {
  func.func @pse_ltae_kernel(%arg0: memref<16x256xbf16, #tpu.memory_space<vmem>>, %arg1: memref<256x16xf32, #tpu.memory_space<vmem>>, %arg2: memref<16x256xbf16, #tpu.memory_space<vmem>>, %arg3: memref<32x16xbf16, #tpu.memory_space<vmem>>, %arg4: memref<32x1xf32, #tpu.memory_space<vmem>>, %arg5: memref<32x1xf32, #tpu.memory_space<vmem>>, %arg6: memref<64x32xbf16, #tpu.memory_space<vmem>>, %arg7: memref<64x1xf32, #tpu.memory_space<vmem>>, %arg8: memref<64x1xf32, #tpu.memory_space<vmem>>, %arg9: memref<128x64xbf16, #tpu.memory_space<vmem>>, %arg10: memref<128x64xbf16, #tpu.memory_space<vmem>>, %arg11: memref<128x1xf32, #tpu.memory_space<vmem>>, %arg12: memref<128x1xf32, #tpu.memory_space<vmem>>, %arg13: memref<512x128xbf16, #tpu.memory_space<vmem>>, %arg14: memref<64x1xf32, #tpu.memory_space<vmem>>, %arg15: memref<64x1xf32, #tpu.memory_space<vmem>>, %arg16: memref<64x1xf32, #tpu.memory_space<vmem>>, %arg17: memref<1x1xf32, #tpu.memory_space<vmem>>, %arg18: memref<1x2xf32, #tpu.memory_space<vmem>>) attributes {dimension_semantics = [], scalar_prefetch = 0 : i64, scratch_operands = 0 : i64, tpu.core_type = #tpu.core_type<tc>} {
    %c0 = arith.constant 0 : index
    %c0_0 = arith.constant 0 : index
    %0 = vector.load %arg3[%c0, %c0_0] : memref<32x16xbf16, #tpu.memory_space<vmem>>, vector<32x16xbf16>
    %c0_1 = arith.constant 0 : index
    %c0_2 = arith.constant 0 : index
    %1 = vector.load %arg0[%c0_1, %c0_2] : memref<16x256xbf16, #tpu.memory_space<vmem>>, vector<16x256xbf16>
    %cst = arith.constant dense<0.000000e+00> : vector<32x256xf32>
    %2 = tpu.matmul %0, %1, %cst {dimension_numbers = #tpu.dot_dimension_numbers<[1], [0], [0], [1], [0, 0, 1, 1], [], []>} : vector<32x16xbf16>, vector<16x256xbf16>, vector<32x256xf32> -> vector<32x256xf32>
    %c0_3 = arith.constant 0 : index
    %c0_4 = arith.constant 0 : index
    %3 = vector.load %arg4[%c0_3, %c0_4] : memref<32x1xf32, #tpu.memory_space<vmem>>, vector<32x1xf32>
    %c0_5 = arith.constant 0 : index
    %c0_6 = arith.constant 0 : index
    %4 = vector.load %arg5[%c0_5, %c0_6] : memref<32x1xf32, #tpu.memory_space<vmem>>, vector<32x1xf32>
    %cst_7 = arith.constant dense<0.000000e+00> : vector<32xf32>
    %5 = vector.multi_reduction <add>, %2, %cst_7 [1] : vector<32x256xf32> to vector<32xf32>
    %6 = vector.shape_cast %5 : vector<32xf32> to vector<32x1xf32>
    %cst_8 = arith.constant 3.906250e-03 : f32
    %7 = vector.broadcast %cst_8 : f32 to vector<32x1xf32>
    %8 = arith.mulf %6, %7 : vector<32x1xf32>
    %9 = vector.broadcast %8 : vector<32x1xf32> to vector<32x256xf32>
    %10 = arith.subf %2, %9 : vector<32x256xf32>
    %11 = arith.mulf %10, %10 : vector<32x256xf32>
    %cst_9 = arith.constant dense<0.000000e+00> : vector<32xf32>
    %12 = vector.multi_reduction <add>, %11, %cst_9 [1] : vector<32x256xf32> to vector<32xf32>
    %13 = vector.shape_cast %12 : vector<32xf32> to vector<32x1xf32>
    %cst_10 = arith.constant 3.906250e-03 : f32
    %14 = vector.broadcast %cst_10 : f32 to vector<32x1xf32>
    %15 = arith.mulf %13, %14 : vector<32x1xf32>
    %cst_11 = arith.constant 9.99999974E-6 : f32
    %16 = vector.broadcast %cst_11 : f32 to vector<32x1xf32>
    %17 = arith.addf %15, %16 : vector<32x1xf32>
    %18 = math.rsqrt %17 : vector<32x1xf32>
    %19 = vector.broadcast %18 : vector<32x1xf32> to vector<32x256xf32>
    %20 = arith.mulf %10, %19 : vector<32x256xf32>
    %21 = vector.broadcast %3 : vector<32x1xf32> to vector<32x256xf32>
    %22 = arith.mulf %20, %21 : vector<32x256xf32>
    %23 = vector.broadcast %4 : vector<32x1xf32> to vector<32x256xf32>
    %24 = arith.addf %22, %23 : vector<32x256xf32>
    %cst_12 = arith.constant 0.000000e+00 : f32
    %25 = vector.broadcast %cst_12 : f32 to vector<32x256xf32>
    %26 = arith.maximumf %24, %25 : vector<32x256xf32>
    %c0_13 = arith.constant 0 : index
    %c0_14 = arith.constant 0 : index
    %27 = vector.load %arg6[%c0_13, %c0_14] : memref<64x32xbf16, #tpu.memory_space<vmem>>, vector<64x32xbf16>
    %28 = arith.truncf %26 : vector<32x256xf32> to vector<32x256xbf16>
    %cst_15 = arith.constant dense<0.000000e+00> : vector<64x256xf32>
    %29 = tpu.matmul %27, %28, %cst_15 {dimension_numbers = #tpu.dot_dimension_numbers<[1], [0], [0], [1], [0, 0, 1, 1], [], []>} : vector<64x32xbf16>, vector<32x256xbf16>, vector<64x256xf32> -> vector<64x256xf32>
    %c0_16 = arith.constant 0 : index
    %c0_17 = arith.constant 0 : index
    %30 = vector.load %arg7[%c0_16, %c0_17] : memref<64x1xf32, #tpu.memory_space<vmem>>, vector<64x1xf32>
    %c0_18 = arith.constant 0 : index
    %c0_19 = arith.constant 0 : index
    %31 = vector.load %arg8[%c0_18, %c0_19] : memref<64x1xf32, #tpu.memory_space<vmem>>, vector<64x1xf32>
    %cst_20 = arith.constant dense<0.000000e+00> : vector<64xf32>
    %32 = vector.multi_reduction <add>, %29, %cst_20 [1] : vector<64x256xf32> to vector<64xf32>
    %33 = vector.shape_cast %32 : vector<64xf32> to vector<64x1xf32>
    %cst_21 = arith.constant 3.906250e-03 : f32
    %34 = vector.broadcast %cst_21 : f32 to vector<64x1xf32>
    %35 = arith.mulf %33, %34 : vector<64x1xf32>
    %36 = vector.broadcast %35 : vector<64x1xf32> to vector<64x256xf32>
    %37 = arith.subf %29, %36 : vector<64x256xf32>
    %38 = arith.mulf %37, %37 : vector<64x256xf32>
    %cst_22 = arith.constant dense<0.000000e+00> : vector<64xf32>
    %39 = vector.multi_reduction <add>, %38, %cst_22 [1] : vector<64x256xf32> to vector<64xf32>
    %40 = vector.shape_cast %39 : vector<64xf32> to vector<64x1xf32>
    %cst_23 = arith.constant 3.906250e-03 : f32
    %41 = vector.broadcast %cst_23 : f32 to vector<64x1xf32>
    %42 = arith.mulf %40, %41 : vector<64x1xf32>
    %cst_24 = arith.constant 9.99999974E-6 : f32
    %43 = vector.broadcast %cst_24 : f32 to vector<64x1xf32>
    %44 = arith.addf %42, %43 : vector<64x1xf32>
    %45 = math.rsqrt %44 : vector<64x1xf32>
    %46 = vector.broadcast %45 : vector<64x1xf32> to vector<64x256xf32>
    %47 = arith.mulf %37, %46 : vector<64x256xf32>
    %48 = vector.broadcast %30 : vector<64x1xf32> to vector<64x256xf32>
    %49 = arith.mulf %47, %48 : vector<64x256xf32>
    %50 = vector.broadcast %31 : vector<64x1xf32> to vector<64x256xf32>
    %51 = arith.addf %49, %50 : vector<64x256xf32>
    %cst_25 = arith.constant 0.000000e+00 : f32
    %52 = vector.broadcast %cst_25 : f32 to vector<64x256xf32>
    %53 = arith.maximumf %51, %52 : vector<64x256xf32>
    %c0_26 = arith.constant 0 : index
    %c0_27 = arith.constant 0 : index
    %54 = vector.load %arg1[%c0_26, %c0_27] : memref<256x16xf32, #tpu.memory_space<vmem>>, vector<256x16xf32>
    %55 = arith.truncf %54 : vector<256x16xf32> to vector<256x16xbf16>
    %56 = arith.truncf %53 : vector<64x256xf32> to vector<64x256xbf16>
    %cst_28 = arith.constant dense<0.000000e+00> : vector<16xf32>
    %57 = vector.multi_reduction <add>, %54, %cst_28 [0] : vector<256x16xf32> to vector<16xf32>
    %58 = vector.shape_cast %57 : vector<16xf32> to vector<1x16xf32>
    %cst_29 = arith.constant 1.000000e+00 : f32
    %59 = vector.broadcast %cst_29 : f32 to vector<1x16xf32>
    %60 = arith.maximumf %58, %59 : vector<1x16xf32>
    %61 = tpu.reciprocal %60 {approx = true} : vector<1x16xf32> -> vector<1x16xf32>
    %62 = arith.mulf %60, %61 : vector<1x16xf32>
    %cst_30 = arith.constant 2.000000e+00 : f32
    %63 = vector.broadcast %cst_30 : f32 to vector<1x16xf32>
    %64 = arith.subf %63, %62 : vector<1x16xf32>
    %65 = arith.mulf %61, %64 : vector<1x16xf32>
    %cst_31 = arith.constant dense<0.000000e+00> : vector<64x16xf32>
    %66 = tpu.matmul %56, %55, %cst_31 {dimension_numbers = #tpu.dot_dimension_numbers<[1], [0], [0], [1], [0, 0, 1, 1], [], []>} : vector<64x256xbf16>, vector<256x16xbf16>, vector<64x16xf32> -> vector<64x16xf32>
    %67 = vector.broadcast %65 : vector<1x16xf32> to vector<64x16xf32>
    %68 = arith.mulf %66, %67 : vector<64x16xf32>
    %69 = arith.truncf %68 : vector<64x16xf32> to vector<64x16xbf16>
    %c0_32 = arith.constant 0 : index
    %c0_33 = arith.constant 0 : index
    %70 = vector.load %arg2[%c0_32, %c0_33] : memref<16x256xbf16, #tpu.memory_space<vmem>>, vector<16x256xbf16>
    %cst_34 = arith.constant dense<0.000000e+00> : vector<64x256xf32>
    %71 = tpu.matmul %69, %70, %cst_34 {dimension_numbers = #tpu.dot_dimension_numbers<[1], [0], [0], [1], [0, 0, 1, 1], [], []>} : vector<64x16xbf16>, vector<16x256xbf16>, vector<64x256xf32> -> vector<64x256xf32>
    %72 = arith.extf %56 : vector<64x256xbf16> to vector<64x256xf32>
    %73 = arith.subf %72, %71 : vector<64x256xf32>
    %74 = arith.mulf %73, %73 : vector<64x256xf32>
    %75 = arith.truncf %74 : vector<64x256xf32> to vector<64x256xbf16>
    %cst_35 = arith.constant dense<0.000000e+00> : vector<64x16xf32>
    %76 = tpu.matmul %75, %55, %cst_35 {dimension_numbers = #tpu.dot_dimension_numbers<[1], [0], [0], [1], [0, 0, 1, 1], [], []>} : vector<64x256xbf16>, vector<256x16xbf16>, vector<64x16xf32> -> vector<64x16xf32>
    %cst_36 = arith.constant 1.000000e+00 : f32
    %77 = vector.broadcast %cst_36 : f32 to vector<1x16xf32>
    %78 = arith.cmpf ole, %58, %77 : vector<1x16xf32>
    %cst_37 = arith.constant 2.000000e+00 : f32
    %79 = vector.broadcast %cst_37 : f32 to vector<1x16xf32>
    %80 = arith.select %78, %79, %58 : vector<1x16xi1>, vector<1x16xf32>
    %cst_38 = arith.constant 1.000000e+00 : f32
    %81 = vector.broadcast %cst_38 : f32 to vector<1x16xf32>
    %82 = arith.subf %80, %81 : vector<1x16xf32>
    %83 = tpu.reciprocal %82 {approx = true} : vector<1x16xf32> -> vector<1x16xf32>
    %84 = arith.mulf %82, %83 : vector<1x16xf32>
    %cst_39 = arith.constant 2.000000e+00 : f32
    %85 = vector.broadcast %cst_39 : f32 to vector<1x16xf32>
    %86 = arith.subf %85, %84 : vector<1x16xf32>
    %87 = arith.mulf %83, %86 : vector<1x16xf32>
    %88 = vector.broadcast %87 : vector<1x16xf32> to vector<64x16xf32>
    %89 = arith.mulf %76, %88 : vector<64x16xf32>
    %cst_40 = arith.constant 9.99999979E-32 : f32
    %90 = vector.broadcast %cst_40 : f32 to vector<64x16xf32>
    %91 = arith.addf %89, %90 : vector<64x16xf32>
    %92 = math.sqrt %91 : vector<64x16xf32>
    %c0_41 = arith.constant 0 : index
    %c0_42 = arith.constant 0 : index
    %93 = vector.load %arg9[%c0_41, %c0_42] : memref<128x64xbf16, #tpu.memory_space<vmem>>, vector<128x64xbf16>
    %cst_43 = arith.constant dense<0.000000e+00> : vector<128x16xf32>
    %94 = tpu.matmul %93, %69, %cst_43 {dimension_numbers = #tpu.dot_dimension_numbers<[1], [0], [0], [1], [0, 0, 1, 1], [], []>} : vector<128x64xbf16>, vector<64x16xbf16>, vector<128x16xf32> -> vector<128x16xf32>
    %c0_44 = arith.constant 0 : index
    %c0_45 = arith.constant 0 : index
    %95 = vector.load %arg10[%c0_44, %c0_45] : memref<128x64xbf16, #tpu.memory_space<vmem>>, vector<128x64xbf16>
    %96 = arith.truncf %92 : vector<64x16xf32> to vector<64x16xbf16>
    %cst_46 = arith.constant dense<0.000000e+00> : vector<128x16xf32>
    %97 = tpu.matmul %95, %96, %cst_46 {dimension_numbers = #tpu.dot_dimension_numbers<[1], [0], [0], [1], [0, 0, 1, 1], [], []>} : vector<128x64xbf16>, vector<64x16xbf16>, vector<128x16xf32> -> vector<128x16xf32>
    %98 = arith.addf %94, %97 : vector<128x16xf32>
    %c0_47 = arith.constant 0 : index
    %c0_48 = arith.constant 0 : index
    %99 = vector.load %arg11[%c0_47, %c0_48] : memref<128x1xf32, #tpu.memory_space<vmem>>, vector<128x1xf32>
    %c0_49 = arith.constant 0 : index
    %c0_50 = arith.constant 0 : index
    %100 = vector.load %arg12[%c0_49, %c0_50] : memref<128x1xf32, #tpu.memory_space<vmem>>, vector<128x1xf32>
    %cst_51 = arith.constant dense<0.000000e+00> : vector<128xf32>
    %101 = vector.multi_reduction <add>, %98, %cst_51 [1] : vector<128x16xf32> to vector<128xf32>
    %102 = vector.shape_cast %101 : vector<128xf32> to vector<128x1xf32>
    %cst_52 = arith.constant 6.250000e-02 : f32
    %103 = vector.broadcast %cst_52 : f32 to vector<128x1xf32>
    %104 = arith.mulf %102, %103 : vector<128x1xf32>
    %105 = vector.broadcast %104 : vector<128x1xf32> to vector<128x16xf32>
    %106 = arith.subf %98, %105 : vector<128x16xf32>
    %107 = arith.mulf %106, %106 : vector<128x16xf32>
    %cst_53 = arith.constant dense<0.000000e+00> : vector<128xf32>
    %108 = vector.multi_reduction <add>, %107, %cst_53 [1] : vector<128x16xf32> to vector<128xf32>
    %109 = vector.shape_cast %108 : vector<128xf32> to vector<128x1xf32>
    %cst_54 = arith.constant 6.250000e-02 : f32
    %110 = vector.broadcast %cst_54 : f32 to vector<128x1xf32>
    %111 = arith.mulf %109, %110 : vector<128x1xf32>
    %cst_55 = arith.constant 9.99999974E-6 : f32
    %112 = vector.broadcast %cst_55 : f32 to vector<128x1xf32>
    %113 = arith.addf %111, %112 : vector<128x1xf32>
    %114 = math.rsqrt %113 : vector<128x1xf32>
    %115 = vector.broadcast %114 : vector<128x1xf32> to vector<128x16xf32>
    %116 = arith.mulf %106, %115 : vector<128x16xf32>
    %117 = vector.broadcast %99 : vector<128x1xf32> to vector<128x16xf32>
    %118 = arith.mulf %116, %117 : vector<128x16xf32>
    %119 = vector.broadcast %100 : vector<128x1xf32> to vector<128x16xf32>
    %120 = arith.addf %118, %119 : vector<128x16xf32>
    %c0_56 = arith.constant 0 : index
    %c0_57 = arith.constant 0 : index
    %121 = vector.load %arg13[%c0_56, %c0_57] : memref<512x128xbf16, #tpu.memory_space<vmem>>, vector<512x128xbf16>
    %122 = arith.truncf %120 : vector<128x16xf32> to vector<128x16xbf16>
    %cst_58 = arith.constant dense<0.000000e+00> : vector<512x16xf32>
    %123 = tpu.matmul %121, %122, %cst_58 {dimension_numbers = #tpu.dot_dimension_numbers<[1], [0], [0], [1], [0, 0, 1, 1], [], []>} : vector<512x128xbf16>, vector<128x16xbf16>, vector<512x16xf32> -> vector<512x16xf32>
    %124 = vector.extract_strided_slice %123 {offsets = [0, 0], sizes = [64, 2], strides = [1, 1]} : vector<512x16xf32> to vector<64x2xf32>
    %125 = vector.extract_strided_slice %123 {offsets = [64, 2], sizes = [64, 2], strides = [1, 1]} : vector<512x16xf32> to vector<64x2xf32>
    %126 = arith.addf %124, %125 : vector<64x2xf32>
    %127 = vector.extract_strided_slice %123 {offsets = [128, 4], sizes = [64, 2], strides = [1, 1]} : vector<512x16xf32> to vector<64x2xf32>
    %128 = arith.addf %126, %127 : vector<64x2xf32>
    %129 = vector.extract_strided_slice %123 {offsets = [192, 6], sizes = [64, 2], strides = [1, 1]} : vector<512x16xf32> to vector<64x2xf32>
    %130 = arith.addf %128, %129 : vector<64x2xf32>
    %131 = vector.extract_strided_slice %123 {offsets = [256, 8], sizes = [64, 2], strides = [1, 1]} : vector<512x16xf32> to vector<64x2xf32>
    %132 = arith.addf %130, %131 : vector<64x2xf32>
    %133 = vector.extract_strided_slice %123 {offsets = [320, 10], sizes = [64, 2], strides = [1, 1]} : vector<512x16xf32> to vector<64x2xf32>
    %134 = arith.addf %132, %133 : vector<64x2xf32>
    %135 = vector.extract_strided_slice %123 {offsets = [384, 12], sizes = [64, 2], strides = [1, 1]} : vector<512x16xf32> to vector<64x2xf32>
    %136 = arith.addf %134, %135 : vector<64x2xf32>
    %137 = vector.extract_strided_slice %123 {offsets = [448, 14], sizes = [64, 2], strides = [1, 1]} : vector<512x16xf32> to vector<64x2xf32>
    %138 = arith.addf %136, %137 : vector<64x2xf32>
    %c0_59 = arith.constant 0 : index
    %c0_60 = arith.constant 0 : index
    %139 = vector.load %arg14[%c0_59, %c0_60] : memref<64x1xf32, #tpu.memory_space<vmem>>, vector<64x1xf32>
    %c0_61 = arith.constant 0 : index
    %c0_62 = arith.constant 0 : index
    %140 = vector.load %arg15[%c0_61, %c0_62] : memref<64x1xf32, #tpu.memory_space<vmem>>, vector<64x1xf32>
    %cst_63 = arith.constant dense<0.000000e+00> : vector<64xf32>
    %141 = vector.multi_reduction <add>, %138, %cst_63 [1] : vector<64x2xf32> to vector<64xf32>
    %142 = vector.shape_cast %141 : vector<64xf32> to vector<64x1xf32>
    %cst_64 = arith.constant 5.000000e-01 : f32
    %143 = vector.broadcast %cst_64 : f32 to vector<64x1xf32>
    %144 = arith.mulf %142, %143 : vector<64x1xf32>
    %145 = vector.broadcast %144 : vector<64x1xf32> to vector<64x2xf32>
    %146 = arith.subf %138, %145 : vector<64x2xf32>
    %147 = arith.mulf %146, %146 : vector<64x2xf32>
    %cst_65 = arith.constant dense<0.000000e+00> : vector<64xf32>
    %148 = vector.multi_reduction <add>, %147, %cst_65 [1] : vector<64x2xf32> to vector<64xf32>
    %149 = vector.shape_cast %148 : vector<64xf32> to vector<64x1xf32>
    %cst_66 = arith.constant 5.000000e-01 : f32
    %150 = vector.broadcast %cst_66 : f32 to vector<64x1xf32>
    %151 = arith.mulf %149, %150 : vector<64x1xf32>
    %cst_67 = arith.constant 9.99999974E-6 : f32
    %152 = vector.broadcast %cst_67 : f32 to vector<64x1xf32>
    %153 = arith.addf %151, %152 : vector<64x1xf32>
    %154 = math.rsqrt %153 : vector<64x1xf32>
    %155 = vector.broadcast %154 : vector<64x1xf32> to vector<64x2xf32>
    %156 = arith.mulf %146, %155 : vector<64x2xf32>
    %157 = vector.broadcast %139 : vector<64x1xf32> to vector<64x2xf32>
    %158 = arith.mulf %156, %157 : vector<64x2xf32>
    %159 = vector.broadcast %140 : vector<64x1xf32> to vector<64x2xf32>
    %160 = arith.addf %158, %159 : vector<64x2xf32>
    %cst_68 = arith.constant 0.000000e+00 : f32
    %161 = vector.broadcast %cst_68 : f32 to vector<64x2xf32>
    %162 = arith.maximumf %160, %161 : vector<64x2xf32>
    %c0_69 = arith.constant 0 : index
    %c0_70 = arith.constant 0 : index
    %163 = vector.load %arg16[%c0_69, %c0_70] : memref<64x1xf32, #tpu.memory_space<vmem>>, vector<64x1xf32>
    %164 = vector.broadcast %163 : vector<64x1xf32> to vector<64x2xf32>
    %165 = arith.mulf %162, %164 : vector<64x2xf32>
    %cst_71 = arith.constant dense<0.000000e+00> : vector<2xf32>
    %166 = vector.multi_reduction <add>, %165, %cst_71 [0] : vector<64x2xf32> to vector<2xf32>
    %167 = vector.shape_cast %166 : vector<2xf32> to vector<1x2xf32>
    %c0_72 = arith.constant 0 : index
    %c0_73 = arith.constant 0 : index
    %168 = vector.load %arg17[%c0_72, %c0_73] : memref<1x1xf32, #tpu.memory_space<vmem>>, vector<1x1xf32>
    %169 = vector.broadcast %168 : vector<1x1xf32> to vector<1x2xf32>
    %170 = arith.addf %167, %169 : vector<1x2xf32>
    %c0_74 = arith.constant 0 : index
    %c0_75 = arith.constant 0 : index
    %171 = vector.load %arg18[%c0_74, %c0_75] : memref<1x2xf32, #tpu.memory_space<vmem>>, vector<1x2xf32>
    tpu.vector_store %arg18[%c0_74, %c0_75], %170 {strides = array<i32>} : memref<1x2xf32, #tpu.memory_space<vmem>>, vector<1x2xf32>,
    return
  }
}

</mosaic_0001>

<bundles_post_ra>
// kernel: tpu_custom_call.1
= control target key start
LH: loop header
LB: loop body
LE: loop exit
PB: predicated region body
PF: predicated region fallthrough
CT: control target
= control target key end

     0   :  { %s5273_s0 = inlined_call_operand.vmem [shape: bf16[16,256], index: 0, kind: input, shape index: {}]   ;;  %s5274_s1 = inlined_call_operand.vmem [shape: f32[256,16], index: 1, kind: input, shape index: {}]   ;;  %s5275_s2 = inlined_call_operand.vmem [shape: bf16[16,256], index: 2, kind: input, shape index: {}]   ;;  %s5276_s3 = inlined_call_operand.vmem [shape: bf16[32,16], index: 3, kind: input, shape index: {}]   ;;  %s5277_s4 = inlined_call_operand.vmem [shape: f32[32,1], index: 4, kind: input, shape index: {}]   ;;  %s5278_s5 = inlined_call_operand.vmem [shape: f32[32,1], index: 5, kind: input, shape index: {}]   ;;  %s5279_s6 = inlined_call_operand.vmem [shape: bf16[64,32], index: 6, kind: input, shape index: {}]   ;;  %s5280_s7 = inlined_call_operand.vmem [shape: f32[64,1], index: 7, kind: input, shape index: {}]   ;;  %s5281_s8 = inlined_call_operand.vmem [shape: f32[64,1], index: 8, kind: input, shape index: {}]   ;;  %s5282_s9 = inlined_call_operand.vmem [shape: bf16[128,64], index: 9, kind: input, shape index: {}]   ;;  %s5283_s10 = inlined_call_operand.vmem [shape: bf16[128,64], index: 10, kind: input, shape index: {}]   ;;  %s5284_s11 = inlined_call_operand.vmem [shape: f32[128,1], index: 11, kind: input, shape index: {}]   ;;  %s5285_s12 = inlined_call_operand.vmem [shape: f32[128,1], index: 12, kind: input, shape index: {}]   ;;  %s5286_s13 = inlined_call_operand.vmem [shape: bf16[512,128], index: 13, kind: input, shape index: {}]   ;;  %s5287_s14 = inlined_call_operand.vmem [shape: f32[64,1], index: 14, kind: input, shape index: {}]   ;;  %s5288_s15 = inlined_call_operand.vmem [shape: f32[64,1], index: 15, kind: input, shape index: {}]   ;;  %s5289_s16 = inlined_call_operand.vmem [shape: f32[64,1], index: 16, kind: input, shape index: {}]   ;;  %s5290_s17 = inlined_call_operand.<no memory space> [shape: f32[1,1], index: 17, kind: input, shape index: {}]   ;;  %s5291_s18 = inlined_call_operand.hbm [shape: f32[1,2], index: 18, kind: output, shape index: {}]  }
   0x1   :  { %5315 = sst [smem:[#allocation24_spill]] %s5273_s0  ;;  %v23_v0 = vstv %s5290_s17 }
   0x2   :  { %5316 = sst [smem:[#allocation25_spill]] %s5274_s1  ;;  %24 = vst [vmem:[#allocation2] sm:$0x1] %v23_v0 }
   0x3   :  { %5317 = sst [smem:[#allocation26_spill]] %s5275_s2 }
   0x4   :  { %s5318_s0 = sld [smem:[#allocation24_spill]]  ;;  %v5295_v3 = vmov 0   ;;  %v3519_v4 = vld [vmem:[%s5276_s3] sm:$0xff]   ;;  %vm89_vm0 = vcmask 130048   ;;  %v3520_v5 = vld [vmem:[%s5276_s3 + $0x8] sm:$0xff]  }
   0x5   :  { %128 = vmatprep.mubr.bf16.mxu0 %v5295_v3  ;;  %3515 = vset.pattern.permute.xlu1 %v5295_v3 }
   0x6   :  { %3514 = vset.pattern.permute.xlu0 %v5295_v3  ;;  %362 = vmatprep.mubr.bf16.mxu1 %v5295_v3 }
   0xa   :  { %v3516_v1 = vld [vmem:[%s5318_s0 + $0x4] ss:$8 sps:$4 sm:$0xff]   ;;  %v3518_v2 = vld [vmem:[%s5318_s0] ss:$8 sps:$4 sm:$0xff]  }
   0xb   :  { %110 = vmatprep.subr.bf16.mxu0 %v3516_v1 }
   0xc   :  { %111 = vmatpush1.bf16.msra.mxu0 %v3518_v2 }
   0xf   :  { %3136 = vmatmul.mubr.msk.bf16.vlgmr.msra.gmra.mxu0 %vm89_vm0, %v3519_v4 }
  0x10   :  { %138 = vmatprep.mubr.bf16.mxu0 %v5295_v3 }
  0x17   :  { %3137 = vmatmul.mubr.msk.bf16.gmra.mxu0 %vm89_vm0, %v3520_v5 }
  0x18   :  { %25 = vsyncpa [#allocation4], 0  ;;  %v152_v39 = vld [vmem:[%s5277_s4 + $0x18] sm:$0xff]  ;;  %v155_v40 = vld [vmem:[%s5278_s5 + $0x10] sm:$0xff]  ;;  %vm317_vm1 = vcmask 261120   ;;  %s5324_s1 = sld [smem:[#allocation25_spill]] }
  0x19   :  { %v156_v41 = vld [vmem:[%s5278_s5 + $0x18] sm:$0xff]  ;;  %v151_v42 = vld [vmem:[%s5277_s4 + $0x10] sm:$0xff]  ;;  %v149_v43 = vld [vmem:[%s5277_s4] sm:$0xff]  ;;  %vm1255_vm2 = vcmask 523264   ;;  %s3693_s24 = smov 126   ;;  %s3694_s25 = smov 124  }
  0x1a   :  { %v403_v44 = vld [vmem:[%s5280_s7] sm:$0xff]  ;;  %v150_v45 = vld [vmem:[%s5277_s4 + $0x8] sm:$0xff]  ;;  %v406_v48 = vld [vmem:[%s5280_s7 + $0x18] sm:$0xff]  ;;  %s3695_s4 = smov 118   ;;  %s3696_s26 = smov 116  }
  0x1b   :  { %v412_v46 = vld [vmem:[%s5281_s8 + $0x8] sm:$0xff]  ;;  %v153_v47 = vld [vmem:[%s5278_s5] sm:$0xff]  ;;  %v414_v49 = vld [vmem:[%s5281_s8 + $0x18] sm:$0xff]  ;;  %s3697_s27 = smov 114  }
  0x1c   :  { %v408_v50 = vld [vmem:[%s5280_s7 + $0x28] sm:$0xff]  ;;  %v411_v60 = vld [vmem:[%s5281_s8] sm:$0xff]  ;;  %v405_v61 = vld [vmem:[%s5280_s7 + $0x10] sm:$0xff] }
  0x1d   :  { %v154_v58 = vld [vmem:[%s5278_s5 + $0x8] sm:$0xff]  ;;  %v413_v62 = vld [vmem:[%s5281_s8 + $0x10] sm:$0xff]  ;;  %v407_v63 = vld [vmem:[%s5280_s7 + $0x20] sm:$0xff] }
  0x1e   :  { %v404_v59 = vld [vmem:[%s5280_s7 + $0x8] sm:$0xff] }
  0xcf   :  { %v130_v6 = vpop.f32.mrf.mxu0 }
  0xd1   :  { %v132_v7 = vpop.f32.mrf.mxu0 }
  0xd2   :  { %v157_v8 = vadd.f32 %v132_v7, %v130_v6 }
  0xd3   :  { %v134_v9 = vpop.f32.mrf.mxu0 }
  0xd4   :  { %158 = vadd.xlane.f32.xlu1 %v157_v8 }
  0xd5   :  { %v136_v10 = vpop.f32.mrf.mxu0 }
  0xd6   :  { %v160_v11 = vadd.f32 %v136_v10, %v134_v9 }
  0xd7   :  { %v140_v12 = vpop.f32.mrf.mxu0 }
  0xd8   :  { %161 = vadd.xlane.f32.xlu1 %v160_v11 }
  0xd9   :  { %v142_v13 = vpop.f32.mrf.mxu0 }
  0xda   :  { %v163_v14 = vadd.f32 %v142_v13, %v140_v12 }
  0xdb   :  { %v144_v15 = vpop.f32.mrf.mxu0 }
  0xdc   :  { %164 = vadd.xlane.f32.xlu0 %v163_v14 }
  0xdd   :  { %v146_v16 = vpop.f32.mrf.mxu0 }
  0xde   :  { %v166_v17 = vadd.f32 %v146_v16, %v144_v15 }
  0xe0   :  { %167 = vadd.xlane.f32.xlu0 %v166_v17 }
 0x15d   :  { %v159_v18 = vpop.xlane.xlu1 %158 }
 0x15e   :  { %v169_v19 = vmul.f32 0.00390625, %v159_v18 }
 0x160   :  { %v3816_v20 = vsub.f32 %v130_v6, %v169_v19  ;;  %v3818_v21 = vsub.f32 %v132_v7, %v169_v19 }
 0x161   :  { %v162_v22 = vpop.xlane.xlu1 %161 }
 0x162   :  { %v170_v23 = vmul.f32 0.00390625, %v162_v22  ;;  %v181_v24 = vmul.f32 %v3816_v20, %v3816_v20  ;;  %v182_v25 = vmul.f32 %v3818_v21, %v3818_v21 }
 0x164   :  { %v3824_v26 = vsub.f32 %v134_v9, %v170_v23  ;;  %v3826_v27 = vsub.f32 %v136_v10, %v170_v23  ;;  %v189_v28 = vadd.f32 %v182_v25, %v181_v24 }
 0x165   :  { %v165_v29 = vpop.xlane.xlu0 %164 }
 0x166   :  { %v171_v30 = vmul.f32 0.00390625, %v165_v29  ;;  %190 = vadd.xlane.f32.xlu0 %v189_v28  ;;  %v183_v31 = vmul.f32 %v3824_v26, %v3824_v26  ;;  %v184_v32 = vmul.f32 %v3826_v27, %v3826_v27 }
 0x168   :  { %v3832_v33 = vsub.f32 %v140_v12, %v171_v30  ;;  %v3834_v34 = vsub.f32 %v142_v13, %v171_v30  ;;  %v192_v35 = vadd.f32 %v184_v32, %v183_v31 }
 0x169   :  { %v168_v51 = vpop.xlane.xlu0 %167 }
 0x16a   :  { %193 = vadd.xlane.f32.xlu1 %v192_v35  ;;  %v185_v36 = vmul.f32 %v3832_v33, %v3832_v33  ;;  %v186_v37 = vmul.f32 %v3834_v34, %v3834_v34  ;;  %v172_v52 = vmul.f32 0.00390625, %v168_v51 }
 0x16c   :  { %v195_v38 = vadd.f32 %v186_v37, %v185_v36  ;;  %v179_v53 = vsub.f32 %v144_v15, %v172_v52  ;;  %v180_v54 = vsub.f32 %v146_v16, %v172_v52 }
 0x16e   :  { %196 = vadd.xlane.f32.xlu0 %v195_v38  ;;  %v187_v55 = vmul.f32 %v179_v53, %v179_v53  ;;  %v188_v56 = vmul.f32 %v180_v54, %v180_v54 }
 0x170   :  { %v198_v57 = vadd.f32 %v188_v56, %v187_v55 }
 0x17b   :  { %238 = vperm.xlu1 %3515, %v152_v39  }
 0x17f   :  { %261 = vperm.xlu1 %3515, %v155_v40  }
 0x183   :  { %266 = vperm.xlu1 %3515, %v156_v41  }
 0x184   :  { %233 = vperm.xlu0 %3514, %v151_v42  }
 0x187   :  { %223 = vperm.xlu1 %3515, %v149_v43  }
 0x188   :  { %549 = vperm.xlu0 %3514, %v403_v44  }
 0x18b   :  { %228 = vperm.xlu1 %3515, %v150_v45  }
 0x18c   :  { %610 = vperm.xlu0 %3514, %v412_v46  }
 0x18f   :  { %251 = vperm.xlu1 %3515, %v153_v47  }
 0x190   :  { %564 = vperm.xlu0 %3514, %v406_v48  }
 0x194   :  { %620 = vperm.xlu0 %3514, %v414_v49  }
 0x198   :  { %574 = vperm.xlu0 %3514, %v408_v50  }
 0x1b3   :  { %199 = vadd.xlane.f32.xlu1 %v198_v57 }
 0x1c4   :  { %256 = vperm.xlu1 %3515, %v154_v58  }
 0x1c8   :  { %554 = vperm.xlu1 %3515, %v404_v59  }
 0x1cc   :  { %605 = vperm.xlu1 %3515, %v411_v60  }
 0x1d0   :  { %559 = vperm.xlu1 %3515, %v405_v61   ;;  %v3521_v61 = vld [vmem:[%s5279_s6] sm:$0xff]  }
 0x1d4   :  { %615 = vperm.xlu1 %3515, %v413_v62   ;;  %v3522_v62 = vld [vmem:[%s5279_s6 + $0x8] sm:$0xff]  }
 0x1d8   :  { %569 = vperm.xlu1 %3515, %v407_v63   ;;  %v3523_v63 = vld [vmem:[%s5279_s6 + $0x10] sm:$0xff]  }
 0x1ef   :  { %v191_v5 = vpop.xlane.xlu0 %190 }
 0x1f0   :  { %v201_v11 = vmul.f32 0.00390625, %v191_v5 }
 0x1f2   :  { %v205_v14 = vadd.f32 1e-05, %v201_v11 }
 0x1f3   :  { %v194_v0 = vpop.xlane.xlu1 %193 }
 0x1f4   :  { %v202_v10 = vmul.f32 0.00390625, %v194_v0  ;;  %v3524_v0 = vld [vmem:[%s5279_s6 + $0x18] sm:$0xff]  }
 0x1f6   :  { %v206_v13 = vadd.f32 1e-05, %v202_v10 }
 0x1f7   :  { %v239_v1 = vpop.permute.xlu1 %238  ;;  %v197_v7 = vpop.xlane.xlu0 %196 }
 0x1f8   :  { %v203_v8 = vmul.f32 0.00390625, %v197_v7 }
 0x1fa   :  { %v207_v12 = vadd.f32 1e-05, %v203_v8 }
 0x1fb   :  { %v262_v2 = vpop.permute.xlu1 %261 }
 0x1fc   :  { %3576 = vrsqrt.f32 %v207_v12 }
 0x1fd   :  { %3578 = vrsqrt.f32 %v206_v13 }
 0x1fe   :  { %3580 = vrsqrt.f32 %v205_v14 }
 0x1ff   :  { %v267_v4 = vpop.permute.xlu1 %266  ;;  %v234_v28 = vpop.permute.xlu0 %233 }
 0x203   :  { %v224_v6 = vpop.permute.xlu1 %223 }
 0x207   :  { %v229_v9 = vpop.permute.xlu1 %228 }
 0x209   :  { %v3577_v19 = vpop.eup %3576 }
 0x20a   :  { %v3579_v22 = vpop.eup %3578  ;;  %v218_v23 = vmul.f32 %v3577_v19, %v3834_v34  ;;  %v217_v25 = vmul.f32 %v3577_v19, %v3832_v33 }
 0x20b   :  { %v252_v15 = vpop.permute.xlu1 %251  ;;  %v3581_v24 = vpop.eup %3580  ;;  %v216_v29 = vmul.f32 %v3579_v22, %v3826_v27  ;;  %v215_v36 = vmul.f32 %v3579_v22, %v3824_v26 }
 0x20c   :  { %v214_v30 = vmul.f32 %v3581_v24, %v3818_v21  ;;  %v246_v31 = vmul.f32 %v234_v28, %v218_v23  ;;  %v245_v32 = vmul.f32 %v234_v28, %v217_v25  ;;  %v213_v41 = vmul.f32 %v3581_v24, %v3816_v20 }
 0x20d   :  { %v244_v38 = vmul.f32 %v229_v9, %v216_v29  ;;  %v243_v27 = vmul.f32 %v229_v9, %v215_v36 }
 0x20e   :  { %v242_v34 = vmul.f32 %v224_v6, %v214_v30  ;;  %v274_v42 = vadd.f32 %v262_v2, %v246_v31  ;;  %v273_v45 = vadd.f32 %v262_v2, %v245_v32  ;;  %v241_v48 = vmul.f32 %v224_v6, %v213_v41  ;;  %v415_v30 = vld [vmem:[%s5281_s8 + $0x20] sm:$0xff]  ;;  %v416_v31 = vld [vmem:[%s5281_s8 + $0x28] sm:$0xff] }
 0x210   :  { %v270_v46 = vadd.f32 %v252_v15, %v242_v34  ;;  %v282_v50 = vmax.f32 %v274_v42, 0.0  ;;  %v281_v52 = vmax.f32 %v273_v45, 0.0 }
 0x212   :  { %v278_v55 = vmax.f32 %v270_v46, 0.0 }
 0x23c   :  { %v200_v16 = vpop.xlane.xlu1 %199 }
 0x23d   :  { %v204_v17 = vmul.f32 0.00390625, %v200_v16 }
 0x23f   :  { %v208_v18 = vadd.f32 1e-05, %v204_v17 }
 0x240   :  { %v257_v37 = vpop.permute.xlu1 %256 }
 0x241   :  { %3582 = vrsqrt.f32 %v208_v18  ;;  %v272_v43 = vadd.f32 %v257_v37, %v244_v38  ;;  %v271_v49 = vadd.f32 %v257_v37, %v243_v27 }
 0x243   :  { %v280_v26 = vmax.f32 %v272_v43, 0.0  ;;  %v279_v57 = vmax.f32 %v271_v49, 0.0 }
 0x244   :  { %v3946_v32 = vpop.permute.xlu1 %554 }
 0x245   :  { %v294_v58 = vpack.c.bf16 %v280_v26, %v278_v55 }
 0x248   :  { %v3950_v36 = vpop.permute.xlu1 %605 }
 0x24c   :  { %v3954_v38 = vpop.permute.xlu1 %559 }
 0x24e   :  { %v3583_v35 = vpop.eup %3582 }
 0x24f   :  { %v220_v39 = vmul.f32 %v3583_v35, %v180_v54  ;;  %v219_v40 = vmul.f32 %v3583_v35, %v179_v53  ;;  %v269_v53 = vadd.f32 %v252_v15, %v241_v48  ;;  %v3948_v35 = vpop.permute.xlu0 %549 }
 0x251   :  { %v248_v33 = vmul.f32 %v239_v1, %v220_v39  ;;  %v247_v44 = vmul.f32 %v239_v1, %v219_v40  ;;  %v277_v59 = vmax.f32 %v269_v53, 0.0  ;;  %v3958_v40 = vpop.permute.xlu1 %615 }
 0x252   :  { %5320 = vst [vmem:[#allocation7_spill] sm:$0xff] %v3958_v40 }
 0x253   :  { %v276_v21 = vadd.f32 %v267_v4, %v248_v33  ;;  %v275_v47 = vadd.f32 %v267_v4, %v247_v44  ;;  %v293_v60 = vpack.c.bf16 %v279_v57, %v277_v59  ;;  %v3952_v37 = vpop.permute.xlu0 %610 }
 0x255   :  { %v284_v51 = vmax.f32 %v276_v21, 0.0  ;;  %v283_v54 = vmax.f32 %v275_v47, 0.0  ;;  %v3962_v34 = vpop.permute.xlu1 %569 }
 0x256   :  { %5322 = vst [vmem:[#allocation9_spill] sm:$0xff] %v3962_v34  ;;  %v410_v34 = vld [vmem:[%s5280_s7 + $0x38] sm:$0xff] }
 0x257   :  { %v296_v20 = vpack.c.bf16 %v284_v51, %v282_v50  ;;  %v295_v56 = vpack.c.bf16 %v283_v54, %v281_v52  ;;  %v3956_v39 = vpop.permute.xlu0 %564 }
 0x258   :  { %5319 = vst [vmem:[#allocation6_spill] sm:$0xff] %v3956_v39 }
 0x259   :  { %342 = vmatprep.subr.bf16.mxu1 %v296_v20 }
 0x25a   :  { %343 = vmatpush1.bf16.msra.mxu1 %v295_v56 }
 0x25b   :  { %344 = vmatprep.subr.bf16.mxu1 %v294_v58  ;;  %v3960_v41 = vpop.permute.xlu0 %620 }
 0x25c   :  { %5321 = vst [vmem:[#allocation8_spill] sm:$0xff] %v3960_v41 }
 0x25e   :  { %345 = vmatpush1.bf16.msra.mxu1 %v293_v60 }
 0x25f   :  { %v3964_v42 = vpop.permute.xlu0 %574 }
 0x260   :  { %5323 = vst [vmem:[#allocation10_spill] sm:$0xff] %v3964_v42  ;;  %v677_v42 = vld [vmem:[%s5324_s1 + $0x10] sm:$0xff] }
 0x261   :  { %3142 = vmatmul.mubr.msk.bf16.vlgmr.msra.gmra.mxu1 %vm317_vm1, %v3521_v61 }
 0x262   :  { %372 = vmatprep.mubr.bf16.mxu1 %v5295_v3 }
 0x269   :  { %3143 = vmatmul.mubr.msk.bf16.gmra.mxu1 %vm317_vm1, %v3522_v62 }
 0x26a   :  { %382 = vmatprep.mubr.bf16.mxu1 %v5295_v3 }
 0x271   :  { %3144 = vmatmul.mubr.msk.bf16.gmra.mxu1 %vm317_vm1, %v3523_v63 }
 0x272   :  { %392 = vmatprep.mubr.bf16.mxu1 %v5295_v3 }
 0x279   :  { %3145 = vmatmul.mubr.msk.bf16.gmra.mxu1 %vm317_vm1, %v3524_v0 }
 0x27a   :  { %938 = vmatprep.mubr.bf16.mxu1 %v5295_v3  ;;  %v676_v3 = vld [vmem:[%s5324_s1 + $0x8] sm:$0xff] }
 0x321   :  { %v364_v1 = vpop.f32.mrf.mxu1 }
 0x323   :  { %v366_v2 = vpop.f32.mrf.mxu1 }
 0x324   :  { %v419_v4 = vadd.f32 %v366_v2, %v364_v1 }
 0x325   :  { %v368_v5 = vpop.f32.mrf.mxu1 }
 0x326   :  { %420 = vadd.xlane.f32.xlu1 %v419_v4  ;;  %v4001_v4 = vld [vmem:[%s5324_s1 + $0xf0] sm:$0xff] }
 0x327   :  { %v370_v6 = vpop.f32.mrf.mxu1 }
 0x328   :  { %v422_v7 = vadd.f32 %v370_v6, %v368_v5 }
 0x329   :  { %v374_v8 = vpop.f32.mrf.mxu1 }
 0x32a   :  { %423 = vadd.xlane.f32.xlu0 %v422_v7  ;;  %v4015_v7 = vld [vmem:[%s5324_s1 + $0x70] sm:$0xff] }
 0x32b   :  { %v376_v9 = vpop.f32.mrf.mxu1 }
 0x32c   :  { %v425_v10 = vadd.f32 %v376_v9, %v374_v8 }
 0x32d   :  { %v378_v11 = vpop.f32.mrf.mxu1 }
 0x32e   :  { %426 = vadd.xlane.f32.xlu0 %v425_v10 }
 0x32f   :  { %v380_v12 = vpop.f32.mrf.mxu1 }
 0x330   :  { %v428_v13 = vadd.f32 %v380_v12, %v378_v11 }
 0x331   :  { %v3916_v14 = vpop.f32.mrf.mxu1 }
 0x332   :  { %429 = vadd.xlane.f32.xlu1 %v428_v13 }
 0x333   :  { %v3918_v15 = vpop.f32.mrf.mxu1 }
 0x334   :  { %v431_v16 = vadd.f32 %v3918_v15, %v3916_v14 }
 0x335   :  { %v3922_v17 = vpop.f32.mrf.mxu1 }
 0x336   :  { %432 = vadd.xlane.f32.xlu0 %v431_v16 }
 0x337   :  { %v3924_v18 = vpop.f32.mrf.mxu1 }
 0x338   :  { %v434_v19 = vadd.f32 %v3924_v18, %v3922_v17 }
 0x339   :  { %v3928_v22 = vpop.f32.mrf.mxu1 }
 0x33a   :  { %435 = vadd.xlane.f32.xlu1 %v434_v19 }
 0x33b   :  { %v3930_v23 = vpop.f32.mrf.mxu1 }
 0x33c   :  { %v437_v24 = vadd.f32 %v3930_v23, %v3928_v22 }
 0x33d   :  { %v3934_v25 = vpop.f32.mrf.mxu1 }
 0x33e   :  { %438 = vadd.xlane.f32.xlu0 %v437_v24  ;;  %v4055_v24 = vld [vmem:[%s5324_s1 + $0x60] sm:$0xff] }
 0x33f   :  { %v3936_v28 = vpop.f32.mrf.mxu1 }
 0x340   :  { %v440_v29 = vadd.f32 %v3936_v28, %v3934_v25 }
 0x342   :  { %441 = vadd.xlane.f32.xlu1 %v440_v29  ;;  %v4060_v29 = vld [vmem:[%s5324_s1 + $0x68] sm:$0xff] }
 0x353   :  { %625 = vperm.xlu1 %3515, %v415_v30  }
 0x354   :  { %630 = vperm.xlu0 %3514, %v416_v31   ;;  %v4064_v31 = vpack.c.bf16 %v4060_v29, %v4055_v24 }
 0x356   :  { %5329 = vst [vmem:[#allocation15_spill] sm:$0xff] %v4064_v31 }
 0x3af   :  { %v421_v43 = vpop.xlane.xlu1 %420 }
 0x3b0   :  { %v443_v33 = vmul.f32 0.00390625, %v421_v43  ;;  %v4071_v43 = vld [vmem:[%s5324_s1 + $0xd0] sm:$0xff] }
 0x3b2   :  { %v3966_v44 = vsub.f32 %v364_v1, %v443_v33  ;;  %v3968_v45 = vsub.f32 %v366_v2, %v443_v33  ;;  %v4076_v33 = vld [vmem:[%s5324_s1 + $0xd8] sm:$0xff] }
 0x3b3   :  { %v424_v27 = vpop.xlane.xlu0 %423 }
 0x3b4   :  { %v444_v46 = vmul.f32 0.00390625, %v424_v27  ;;  %v467_v21 = vmul.f32 %v3966_v44, %v3966_v44  ;;  %v468_v47 = vmul.f32 %v3968_v45, %v3968_v45  ;;  %v4080_v27 = vpack.c.bf16 %v4076_v33, %v4071_v43 }
 0x3b6   :  { %v3974_v48 = vsub.f32 %v368_v5, %v444_v46  ;;  %v3976_v49 = vsub.f32 %v370_v6, %v444_v46  ;;  %v483_v50 = vadd.f32 %v468_v47, %v467_v21  ;;  %v4006_v5 = vld [vmem:[%s5324_s1 + $0xf8] sm:$0xff]  ;;  %5330 = vst [vmem:[#allocation16_spill] sm:$0xff] %v4080_v27  ;;  %v4085_v46 = vld [vmem:[%s5324_s1 + $0x50] sm:$0xff] }
 0x3b7   :  { %v427_v26 = vpop.xlane.xlu0 %426  ;;  %v4010_v6 = vpack.c.bf16 %v4006_v5, %v4001_v4  ;;  %v4090_v21 = vld [vmem:[%s5324_s1 + $0x58] sm:$0xff] }
 0x3b8   :  { %v445_v51 = vmul.f32 0.00390625, %v427_v26  ;;  %484 = vadd.xlane.f32.xlu0 %v483_v50  ;;  %v469_v52 = vmul.f32 %v3974_v48, %v3974_v48  ;;  %v470_v54 = vmul.f32 %v3976_v49, %v3976_v49  ;;  %v4094_v47 = vpack.c.bf16 %v4090_v21, %v4085_v46  ;;  %v4101_v50 = vld [vmem:[%s5324_s1 + $0xc0] sm:$0xff]  ;;  %v4106_v26 = vld [vmem:[%s5324_s1 + $0xc8] sm:$0xff] }
 0x3b9   :  { %3217 = vmatprep.subr.bf16.mxu0 %v4010_v6 }
 0x3ba   :  { %v3982_v53 = vsub.f32 %v374_v8, %v445_v51  ;;  %v3984_v55 = vsub.f32 %v376_v9, %v445_v51  ;;  %v486_v20 = vadd.f32 %v470_v54, %v469_v52  ;;  %v4020_v8 = vld [vmem:[%s5324_s1 + $0x78] sm:$0xff]  ;;  %5331 = vst [vmem:[#allocation17_spill] sm:$0xff] %v4094_v47  ;;  %v4110_v51 = vpack.c.bf16 %v4106_v26, %v4101_v50  ;;  %v683_v52 = vld [vmem:[%s5324_s1 + $0x40] sm:$0xff]  ;;  %v684_v54 = vld [vmem:[%s5324_s1 + $0x48] sm:$0xff] }
 0x3bb   :  { %v430_v56 = vpop.xlane.xlu1 %429 }
 0x3bc   :  { %v446_v57 = vmul.f32 0.00390625, %v430_v56  ;;  %487 = vadd.xlane.f32.xlu1 %v486_v20  ;;  %v471_v58 = vmul.f32 %v3982_v53, %v3982_v53  ;;  %v472_v59 = vmul.f32 %v3984_v55, %v3984_v55  ;;  %5332 = vst [vmem:[#allocation18_spill] sm:$0xff] %v4110_v51  ;;  %v4118_v20 = vpack.c.bf16 %v684_v54, %v683_v52  ;;  %v4125_v56 = vld [vmem:[%s5324_s1 + $0xb0] sm:$0xff] }
 0x3be   :  { %v3990_v60 = vsub.f32 %v378_v11, %v446_v57  ;;  %v3992_v61 = vsub.f32 %v380_v12, %v446_v57  ;;  %v489_v62 = vadd.f32 %v472_v59, %v471_v58  ;;  %v4030_v12 = vpack.c.bf16 %v4020_v8, %v4015_v7  ;;  %5333 = vst [vmem:[#allocation19_spill] sm:$0xff] %v4118_v20  ;;  %v4130_v57 = vld [vmem:[%s5324_s1 + $0xb8] sm:$0xff]  ;;  %v681_v58 = vld [vmem:[%s5324_s1 + $0x30] sm:$0xff] }
 0x3bf   :  { %v433_v63 = vpop.xlane.xlu0 %432  ;;  %v682_v59 = vld [vmem:[%s5324_s1 + $0x38] sm:$0xff] }
 0x3c0   :  { %v447_v0 = vmul.f32 0.00390625, %v433_v63  ;;  %490 = vadd.xlane.f32.xlu0 %v489_v62  ;;  %v473_v1 = vmul.f32 %v3990_v60, %v3990_v60  ;;  %v474_v2 = vmul.f32 %v3992_v61, %v3992_v61  ;;  %5327 = vst [vmem:[#allocation13_spill] sm:$0xff] %v4030_v12  ;;  %3218 = vmatpush3.bf16.msra.mxu0 %v4030_v12  ;;  %v409_v63 = vld [vmem:[%s5280_s7 + $0x30] sm:$0xff]  ;;  %s5356_s7 = sld [smem:[#allocation26_spill]] }
 0x3c1   :  { %v4140_v62 = vpack.c.bf16 %v4130_v57, %v4125_v56 }
 0x3c2   :  { %v4023_v9 = vsub.f32 %v3916_v14, %v447_v0  ;;  %v4026_v10 = vsub.f32 %v3918_v15, %v447_v0  ;;  %v492_v11 = vadd.f32 %v474_v2, %v473_v1  ;;  %v4041_v14 = vld [vmem:[%s5324_s1 + $0xe0] sm:$0xff]  ;;  %v4046_v15 = vld [vmem:[%s5324_s1 + $0xe8] sm:$0xff]  ;;  %v4145_v0 = vpack.c.bf16 %v682_v59, %v681_v58 }
 0x3c3   :  { %v4050_v19 = vpack.c.bf16 %v4046_v15, %v4041_v14  ;;  %5334 = vst [vmem:[#allocation20_spill] sm:$0xff] %v4140_v62  ;;  %v4151_v1 = vld [vmem:[%s5324_s1 + $0xa0] sm:$0xff]  ;;  %v4156_v2 = vld [vmem:[%s5324_s1 + $0xa8] sm:$0xff] }
 0x3c4   :  { %5325 = vst [vmem:[#allocation11_spill] sm:$0xff] %v4023_v9  ;;  %5326 = vst [vmem:[#allocation12_spill] sm:$0xff] %v4026_v10  ;;  %493 = vadd.xlane.f32.xlu1 %v492_v11  ;;  %v475_v13 = vmul.f32 %v4023_v9, %v4023_v9  ;;  %v476_v16 = vmul.f32 %v4026_v10, %v4026_v10  ;;  %v679_v11 = vld [vmem:[%s5324_s1 + $0x20] sm:$0xff]  ;;  %v732_v10 = vsel %vm89_vm0, %v676_v3, 0.0 }
 0x3c5   :  { %5328 = vst [vmem:[#allocation14_spill] sm:$0xff] %v4050_v19  ;;  %3219 = vmatprep.subr.bf16.mxu0 %v4050_v19  ;;  %5335 = vst [vmem:[#allocation21_spill] sm:$0xff] %v4145_v0  ;;  %v738_v19 = vsel %vm89_vm0, %v679_v11, 0.0 }
 0x3c6   :  { %v495_v30 = vadd.f32 %v476_v16, %v475_v13  ;;  %3220 = vmatpush3.bf16.msra.mxu0 %v4064_v31  ;;  %v680_v13 = vld [vmem:[%s5324_s1 + $0x28] sm:$0xff]  ;;  %v4167_v16 = vpack.c.bf16 %v4156_v2, %v4151_v1 }
 0x3c7   :  { %3221 = vmatprep.subr.bf16.mxu0 %v4080_v27  ;;  %v740_v40 = vsel %vm89_vm0, %v680_v13, 0.0 }
 0x3c8   :  { %496 = vadd.xlane.f32.xlu0 %v495_v30  ;;  %5336 = vst [vmem:[#allocation22_spill] sm:$0xff] %v4167_v16  ;;  %v4169_v30 = vpack.c.bf16 %v680_v13, %v679_v11  ;;  %v748_v13 = vsel %vm89_vm0, %v684_v54, 0.0 }
 0x3ca   :  { %3222 = vmatpush3.bf16.msra.mxu0 %v4094_v47  ;;  %5337 = vst [vmem:[#allocation23_spill] sm:$0xff] %v4169_v30  ;;  %v692_v47 = vld [vmem:[%s5324_s1 + $0x88] sm:$0xff] }
 0x3cb   :  { %3223 = vmatprep.subr.bf16.mxu0 %v4110_v51  ;;  %v691_v51 = vld [vmem:[%s5324_s1 + $0x80] sm:$0xff] }
 0x3ce   :  { %3224 = vmatpush3.bf16.msra.mxu0 %v4118_v20 }
 0x3cf   :  { %3225 = vmatprep.subr.bf16.mxu0 %v4140_v62  ;;  %v4199_v62 = vld [vmem:[%s5324_s1 + $0x98] sm:$0xff] }
 0x3d2   :  { %3226 = vmatpush3.bf16.msra.mxu0 %v4145_v0  ;;  %v4194_v0 = vld [vmem:[%s5324_s1 + $0x90] sm:$0xff] }
 0x3d3   :  { %3227 = vmatprep.subr.bf16.mxu0 %v4167_v16  ;;  %v678_v16 = vld [vmem:[%s5324_s1 + $0x18] sm:$0xff]  ;;  %v4211_v12 = vpack.c.bf16 %v4199_v62, %v4194_v0 }
 0x3d4   :  { %v736_v27 = vsel %vm89_vm0, %v678_v16, 0.0  ;;  %v4213_v41 = vpack.c.bf16 %v678_v16, %v677_v42 }
 0x3d5   :  { %579 = vperm.xlu1 %3515, %v409_v63   ;;  %v675_v63 = vld [vmem:[%s5324_s1] sm:$0xff]  ;;  %s3691_s1 = smov 122  }
 0x3d6   :  { %3228 = vmatpush3.bf16.msra.mxu0 %v4169_v30  ;;  %v731_v9 = vsel %vm89_vm0, %v675_v63, 0.0  ;;  %v734_v30 = vsel %vm89_vm0, %v677_v42, 0.0  ;;  %v744_v42 = vsel %vm89_vm0, %v682_v59, 0.0  ;;  %v752_v59 = vsel %vm89_vm0, %v4090_v21, 0.0 }
 0x3d7   :  { %v733_v20 = vadd.f32 %v732_v10, %v731_v9  ;;  %v4215_v10 = vpack.c.bf16 %v692_v47, %v691_v51  ;;  %3229 = vmatprep.subr.bf16.mxu0 %v4211_v12 }
 0x3d9   :  { %v735_v31 = vadd.f32 %v734_v30, %v733_v20  ;;  %v742_v20 = vsel %vm89_vm0, %v681_v58, 0.0  ;;  %v750_v58 = vsel %vm89_vm0, %v4085_v46, 0.0  ;;  %v756_v46 = vsel %vm89_vm0, %v4060_v29, 0.0 }
 0x3da   :  { %3230 = vmatpush3.bf16.msra.mxu0 %v4213_v41 }
 0x3db   :  { %v737_v9 = vadd.f32 %v736_v27, %v735_v31  ;;  %3231 = vmatprep.subr.bf16.mxu0 %v4215_v10  ;;  %v436_v31 = vpop.xlane.xlu1 %435  ;;  %v746_v27 = vsel %vm89_vm0, %v683_v52, 0.0 }
 0x3dd   :  { %v739_v39 = vadd.f32 %v738_v19, %v737_v9 }
 0x3de   :  { %584 = vperm.xlu0 %3514, %v410_v34   ;;  %v4220_v34 = vpack.c.bf16 %v676_v3, %v675_v63  ;;  %v448_v3 = vmul.f32 0.00390625, %v436_v31  ;;  %v439_v63 = vpop.xlane.xlu0 %438 }
 0x3df   :  { %v741_v11 = vadd.f32 %v740_v40, %v739_v39  ;;  %v442_v39 = vpop.xlane.xlu1 %441 }
 0x3e0   :  { %3232 = vmatpush3.bf16.msra.mxu0 %v4220_v34  ;;  %v4234_v9 = vsub.f32 %v3922_v17, %v448_v3  ;;  %v4237_v52 = vsub.f32 %v3924_v18, %v448_v3  ;;  %v450_v54 = vmul.f32 0.00390625, %v442_v39 }
 0x3e1   :  { %v743_v16 = vadd.f32 %v742_v20, %v741_v11  ;;  %3257 = vmatprep.subr.bf16.mxu0 %v4010_v6  ;;  %v449_v6 = vmul.f32 0.00390625, %v439_v63  ;;  %v754_v11 = vsel %vm89_vm0, %v4055_v24, 0.0 }
 0x3e2   :  { %v477_v17 = vmul.f32 %v4234_v9, %v4234_v9  ;;  %v478_v18 = vmul.f32 %v4237_v52, %v4237_v52  ;;  %v4257_v24 = vsub.f32 %v3936_v28, %v450_v54 }
 0x3e3   :  { %v745_v19 = vadd.f32 %v744_v42, %v743_v16  ;;  %v4244_v16 = vsub.f32 %v3928_v22, %v449_v6  ;;  %v4251_v31 = vsub.f32 %v3930_v23, %v449_v6  ;;  %v758_v22 = vsel %vm89_vm0, %v4015_v7, 0.0 }
 0x3e4   :  { %v762_v7 = vsel %vm89_vm0, %v691_v51, 0.0  ;;  %v770_v51 = vsel %vm89_vm0, %v4151_v1, 0.0  ;;  %v780_v1 = vsel %vm89_vm0, %v4106_v26, 0.0  ;;  %v786_v26 = vsel %vm89_vm0, %v4041_v14, 0.0  ;;  %v1552_v14 = vld [vmem:[%s5284_s11 + $0x70] sm:$0xff] }
 0x3e5   :  { %v747_v30 = vadd.f32 %v746_v27, %v745_v19  ;;  %v4254_v27 = vsub.f32 %v3934_v25, %v450_v54  ;;  %v760_v19 = vsel %vm89_vm0, %v4020_v8, 0.0  ;;  %v479_v3 = vmul.f32 %v4244_v16, %v4244_v16 }
 0x3e6   :  { %v482_v25 = vmul.f32 %v4257_v24, %v4257_v24  ;;  %v480_v28 = vmul.f32 %v4251_v31, %v4251_v31  ;;  %v764_v8 = vsel %vm89_vm0, %v692_v47, 0.0  ;;  %v772_v47 = vsel %vm89_vm0, %v4156_v2, 0.0  ;;  %v417_v2 = vld [vmem:[%s5281_s8 + $0x30] sm:$0xff] }
 0x3e7   :  { %v749_v40 = vadd.f32 %v748_v13, %v747_v30  ;;  %v498_v13 = vadd.f32 %v478_v18, %v477_v17  ;;  %v481_v23 = vmul.f32 %v4254_v27, %v4254_v27 }
 0x3e9   :  { %v751_v20 = vadd.f32 %v750_v58, %v749_v40  ;;  %v504_v39 = vadd.f32 %v482_v25, %v481_v23  ;;  %v501_v40 = vadd.f32 %v480_v28, %v479_v3  ;;  %v790_v23 = vsel %vm89_vm0, %v4001_v4, 0.0 }
 0x3ea   :  { %v792_v28 = vsel %vm89_vm0, %v4006_v5, 0.0  ;;  %v1551_v5 = vld [vmem:[%s5284_s11 + $0x68] sm:$0xff] }
 0x3eb   :  { %v753_v42 = vadd.f32 %v752_v59, %v751_v20  ;;  %v766_v59 = vsel %vm89_vm0, %v4194_v0, 0.0  ;;  %v768_v20 = vsel %vm89_vm0, %v4199_v62, 0.0  ;;  %v776_v0 = vsel %vm89_vm0, %v4130_v57, 0.0 }
 0x3ec   :  { %v778_v62 = vsel %vm89_vm0, %v4101_v50, 0.0  ;;  %v784_v57 = vsel %vm89_vm0, %v4076_v33, 0.0  ;;  %v1553_v50 = vld [vmem:[%s5284_s11 + $0x78] sm:$0xff] }
 0x3ed   :  { %v755_v21 = vadd.f32 %v754_v11, %v753_v42  ;;  %v1569_v33 = vld [vmem:[%s5285_s12 + $0x78] sm:$0xff] }
 0x3ef   :  { %v757_v29 = vadd.f32 %v756_v46, %v755_v21  ;;  %v774_v46 = vsel %vm89_vm0, %v4125_v56, 0.0  ;;  %v782_v56 = vsel %vm89_vm0, %v4071_v43, 0.0  ;;  %v788_v43 = vsel %vm89_vm0, %v4046_v15, 0.0 }
 0x3f1   :  { %v759_v30 = vadd.f32 %v758_v22, %v757_v29 }
 0x3f3   :  { %v761_v63 = vadd.f32 %v760_v19, %v759_v30 }
 0x3f5   :  { %v763_v58 = vadd.f32 %v762_v7, %v761_v63  ;;  %v1550_v7 = vld [vmem:[%s5284_s11 + $0x60] sm:$0xff]  ;;  %v1568_v63 = vld [vmem:[%s5285_s12 + $0x70] sm:$0xff] }
 0x3f7   :  { %v765_v6 = vadd.f32 %v764_v8, %v763_v58  ;;  %v1566_v8 = vld [vmem:[%s5285_s12 + $0x60] sm:$0xff]  ;;  %v1548_v58 = vld [vmem:[%s5284_s11 + $0x50] sm:$0xff] }
 0x3f9   :  { %499 = vadd.xlane.f32.xlu1 %v498_v13  ;;  %v767_v54 = vadd.f32 %v766_v59, %v765_v6  ;;  %v418_v13 = vld [vmem:[%s5281_s8 + $0x38] sm:$0xff]  ;;  %v1546_v6 = vld [vmem:[%s5284_s11 + $0x40] sm:$0xff] }
 0x3fa   :  { %v1549_v59 = vld [vmem:[%s5284_s11 + $0x58] sm:$0xff] }
 0x3fb   :  { %v769_v11 = vadd.f32 %v768_v20, %v767_v54  ;;  %v1565_v20 = vld [vmem:[%s5285_s12 + $0x58] sm:$0xff]  ;;  %v1562_v54 = vld [vmem:[%s5285_s12 + $0x40] sm:$0xff] }
 0x3fd   :  { %505 = vadd.xlane.f32.xlu1 %v504_v39  ;;  %502 = vadd.xlane.f32.xlu0 %v501_v40  ;;  %v771_v42 = vadd.f32 %v770_v51, %v769_v11  ;;  %v1567_v39 = vld [vmem:[%s5285_s12 + $0x68] sm:$0xff]  ;;  %v1564_v40 = vld [vmem:[%s5285_s12 + $0x50] sm:$0xff] }
 0x3fe   :  { %v1547_v51 = vld [vmem:[%s5284_s11 + $0x48] sm:$0xff]  ;;  %v1544_v11 = vld [vmem:[%s5284_s11 + $0x30] sm:$0xff] }
 0x3ff   :  { %v773_v17 = vadd.f32 %v772_v47, %v771_v42  ;;  %v1563_v47 = vld [vmem:[%s5285_s12 + $0x48] sm:$0xff]  ;;  %v4360_v42 = vpop.permute.xlu0 %630 }
 0x401   :  { %v775_v18 = vadd.f32 %v774_v46, %v773_v17  ;;  %v4362_v46 = vpop.permute.xlu1 %625 }
 0x403   :  { %v777_v21 = vadd.f32 %v776_v0, %v775_v18 }
 0x405   :  { %v779_v22 = vadd.f32 %v778_v62, %v777_v21 }
 0x407   :  { %v781_v29 = vadd.f32 %v780_v1, %v779_v22 }
 0x409   :  { %v783_v19 = vadd.f32 %v782_v56, %v781_v29 }
 0x40b   :  { %v785_v3 = vadd.f32 %v784_v57, %v783_v19 }
 0x40d   :  { %v787_v30 = vadd.f32 %v786_v26, %v785_v3 }
 0x40e   :  { %635 = vperm.xlu1 %3515, %v417_v2  }
 0x40f   :  { %v789_v25 = vadd.f32 %v788_v43, %v787_v30 }
 0x411   :  { %v791_v15 = vadd.f32 %v790_v23, %v789_v25 }
 0x412   :  { %1855 = vperm.xlu1 %3515, %v1553_v50  }
 0x413   :  { %640 = vperm.xlu0 %3514, %v418_v13   ;;  %v4322_v4 = vadd.f32 %v792_v28, %v791_v15 }
 0x416   :  { %1951 = vperm.xlu1 %3515, %v1569_v33  }
 0x417   :  { %1850 = vperm.xlu0 %3514, %v1552_v14  }
 0x41a   :  { %1840 = vperm.xlu1 %3515, %v1550_v7  }
 0x41b   :  { %1946 = vperm.xlu0 %3514, %v1568_v63  }
 0x41e   :  { %1936 = vperm.xlu1 %3515, %v1566_v8  }
 0x41f   :  { %1845 = vperm.xlu0 %3514, %v1551_v5  }
 0x422   :  { %1830 = vperm.xlu1 %3515, %v1548_v58  }
 0x423   :  { %1941 = vperm.xlu0 %3514, %v1567_v39  }
 0x426   :  { %1926 = vperm.xlu1 %3515, %v1564_v40  }
 0x427   :  { %1835 = vperm.xlu0 %3514, %v1549_v59  }
 0x42a   :  { %1820 = vperm.xlu1 %3515, %v1546_v6   ;;  %v5339_v6 = vld [vmem:[#allocation7_spill] sm:$0xff] }
 0x42b   :  { %1931 = vperm.xlu0 %3514, %v1565_v20  }
 0x42e   :  { %1916 = vperm.xlu1 %3515, %v1562_v54  }
 0x42f   :  { %1825 = vperm.xlu0 %3514, %v1547_v51   ;;  %v5340_v51 = vld [vmem:[#allocation8_spill] sm:$0xff] }
 0x432   :  { %1810 = vperm.xlu1 %3515, %v1544_v11  }
 0x433   :  { %1921 = vperm.xlu0 %3514, %v1563_v47   ;;  %v5341_v47 = vld [vmem:[#allocation13_spill] sm:$0xff] }
 0x441   :  { %v485_v17 = vpop.xlane.xlu0 %484 }
 0x442   :  { %v507_v0 = vmul.f32 0.00390625, %v485_v17  ;;  %v5342_v17 = vld [vmem:[#allocation14_spill] sm:$0xff] }
 0x444   :  { %v515_v18 = vadd.f32 1e-05, %v507_v0 }
 0x445   :  { %v488_v62 = vpop.xlane.xlu1 %487 }
 0x446   :  { %3584 = vrsqrt.f32 %v515_v18  ;;  %v508_v21 = vmul.f32 0.00390625, %v488_v62 }
 0x448   :  { %v516_v1 = vadd.f32 1e-05, %v508_v21 }
 0x449   :  { %v491_v22 = vpop.xlane.xlu0 %490 }
 0x44a   :  { %3586 = vrsqrt.f32 %v516_v1  ;;  %v509_v2 = vmul.f32 0.00390625, %v491_v22  ;;  %v5343_v1 = vld [vmem:[#allocation15_spill] sm:$0xff] }
 0x44c   :  { %v517_v56 = vadd.f32 1e-05, %v509_v2  ;;  %v5344_v2 = vld [vmem:[#allocation16_spill] sm:$0xff] }
 0x44d   :  { %v494_v29 = vpop.xlane.xlu1 %493 }
 0x44e   :  { %3588 = vrsqrt.f32 %v517_v56  ;;  %v510_v57 = vmul.f32 0.00390625, %v494_v29  ;;  %v5345_v56 = vld [vmem:[#allocation17_spill] sm:$0xff]  ;;  %v5346_v29 = vld [vmem:[#allocation18_spill] sm:$0xff] }
 0x450   :  { %v518_v19 = vadd.f32 1e-05, %v510_v57  ;;  %v5347_v57 = vld [vmem:[#allocation19_spill] sm:$0xff] }
 0x452   :  { %3590 = vrsqrt.f32 %v518_v19  ;;  %v5348_v19 = vld [vmem:[#allocation20_spill] sm:$0xff] }
 0x453   :  { %v3585_v50 = vpop.eup %3584 }
 0x454   :  { %v531_v26 = vmul.f32 %v3585_v50, %v3966_v44  ;;  %v532_v13 = vmul.f32 %v3585_v50, %v3968_v45  ;;  %v497_v50 = vpop.xlane.xlu0 %496 }
 0x456   :  { %v588_v3 = vmul.f32 %v3948_v35, %v532_v13  ;;  %v587_v43 = vmul.f32 %v3948_v35, %v531_v26  ;;  %v5349_v26 = vld [vmem:[#allocation21_spill] sm:$0xff]  ;;  %v5350_v13 = vld [vmem:[#allocation22_spill] sm:$0xff] }
 0x457   :  { %v3587_v30 = vpop.eup %3586 }
 0x458   :  { %v533_v33 = vmul.f32 %v3587_v30, %v3974_v48  ;;  %v534_v23 = vmul.f32 %v3587_v30, %v3976_v49  ;;  %v644_v14 = vadd.f32 %v3950_v36, %v588_v3  ;;  %v643_v15 = vadd.f32 %v3950_v36, %v587_v43  ;;  %v5351_v43 = vld [vmem:[#allocation23_spill] sm:$0xff] }
 0x459   :  { %v511_v3 = vmul.f32 0.00390625, %v497_v50 }
 0x45a   :  { %v590_v25 = vmul.f32 %v3946_v32, %v534_v23  ;;  %v589_v28 = vmul.f32 %v3946_v32, %v533_v33  ;;  %v660_v48 = vmax.f32 %v644_v14, 0.0  ;;  %v659_v49 = vmax.f32 %v643_v15, 0.0  ;;  %v580_v33 = vpop.permute.xlu1 %579  ;;  %v585_v23 = vpop.permute.xlu0 %584 }
 0x45b   :  { %v3589_v44 = vpop.eup %3588  ;;  %v519_v30 = vadd.f32 1e-05, %v511_v3 }
 0x45c   :  { %v646_v45 = vadd.f32 %v3952_v37, %v590_v25  ;;  %v645_v7 = vadd.f32 %v3952_v37, %v589_v28  ;;  %v536_v35 = vmul.f32 %v3589_v44, %v3984_v55  ;;  %v535_v63 = vmul.f32 %v3589_v44, %v3982_v53  ;;  %v5338_v53 = vld [vmem:[#allocation6_spill] sm:$0xff] }
 0x45d   :  { %3592 = vrsqrt.f32 %v519_v30  ;;  %v3525_v30 = vld [vmem:[%s5356_s7] ss:$8 sps:$4 sm:$0xff]  }
 0x45e   :  { %v662_v8 = vmax.f32 %v646_v45, 0.0  ;;  %v661_v5 = vmax.f32 %v645_v7, 0.0  ;;  %v592_v58 = vmul.f32 %v3954_v38, %v536_v35  ;;  %v591_v32 = vmul.f32 %v3954_v38, %v535_v63 }
 0x45f   :  { %v3591_v39 = vpop.eup %3590 }
 0x460   :  { %v4380_v40 = vpack.c.bf16 %v662_v8, %v660_v48  ;;  %v4382_v36 = vpack.c.bf16 %v661_v5, %v659_v49  ;;  %v538_v59 = vmul.f32 %v3591_v39, %v3992_v61  ;;  %v537_v37 = vmul.f32 %v3591_v39, %v3990_v60  ;;  %v5353_v48 = vld [vmem:[#allocation11_spill] sm:$0xff]  ;;  %v5354_v49 = vld [vmem:[#allocation9_spill] sm:$0xff] }
 0x461   :  { %v648_v20 = vadd.f32 %v5339_v6, %v592_v58  ;;  %v647_v38 = vadd.f32 %v5339_v6, %v591_v32 }
 0x462   :  { %837 = vmatprep.mubr.bf16.mxu0 %v4380_v40  ;;  %v594_v55 = vmul.f32 %v5338_v53, %v538_v59  ;;  %v593_v54 = vmul.f32 %v5338_v53, %v537_v37  ;;  %v5355_v53 = vld [vmem:[#allocation10_spill] sm:$0xff] }
 0x463   :  { %838 = vmatmul.mubr.bf16.vlgmr.msra.gmra.mxu0 %v4382_v36  ;;  %v664_v60 = vmax.f32 %v648_v20, 0.0  ;;  %v663_v18 = vmax.f32 %v647_v38, 0.0 }
 0x464   :  { %v650_v11 = vadd.f32 %v5340_v51, %v594_v55  ;;  %3258 = vmatpush3.bf16.msra.mxu0 %v5341_v47  ;;  %v649_v61 = vadd.f32 %v5340_v51, %v593_v54 }
 0x465   :  { %3259 = vmatprep.subr.bf16.mxu0 %v5342_v17 }
 0x466   :  { %v666_v0 = vmax.f32 %v650_v11, 0.0  ;;  %v665_v62 = vmax.f32 %v649_v61, 0.0 }
 0x468   :  { %v4396_v21 = vpack.c.bf16 %v666_v0, %v664_v60  ;;  %3260 = vmatpush3.bf16.msra.mxu0 %v5343_v1  ;;  %v4399_v22 = vpack.c.bf16 %v665_v62, %v663_v18 }
 0x469   :  { %3261 = vmatprep.subr.bf16.mxu0 %v5344_v2 }
 0x46a   :  { %845 = vmatprep.mubr.bf16.mxu0 %v4396_v21  ;;  %v3593_v63 = vpop.eup %3592 }
 0x46b   :  { %846 = vmatmul.mubr.bf16.gmra.mxu0 %v4399_v22  ;;  %v539_v8 = vmul.f32 %v3593_v63, %v5353_v48 }
 0x46c   :  { %3262 = vmatpush3.bf16.msra.mxu0 %v5345_v56 }
 0x46d   :  { %3263 = vmatprep.subr.bf16.mxu0 %v5346_v29  ;;  %v595_v5 = vmul.f32 %v5354_v49, %v539_v8 }
 0x46f   :  { %v651_v37 = vadd.f32 %v4362_v46, %v595_v5 }
 0x470   :  { %3264 = vmatpush3.bf16.msra.mxu0 %v5347_v57 }
 0x471   :  { %3265 = vmatprep.subr.bf16.mxu0 %v5348_v19 }
 0x474   :  { %3266 = vmatpush3.bf16.msra.mxu0 %v5349_v26 }
 0x475   :  { %3267 = vmatprep.subr.bf16.mxu0 %v5350_v13 }
 0x478   :  { %3268 = vmatpush3.bf16.msra.mxu0 %v5351_v43  ;;  %v3527_v43 = vld [vmem:[%s5356_s7 + $0x4] ss:$8 sps:$4 sm:$0xff]  }
 0x479   :  { %3269 = vmatprep.subr.bf16.mxu0 %v4211_v12  ;;  %920 = vmatprep.subr.bf16.mxu1 %v3527_v43 }
 0x47a   :  { %921 = vmatpush1.bf16.msra.mxu1 %v3525_v30 }
 0x47c   :  { %3270 = vmatpush3.bf16.msra.mxu0 %v4213_v41  ;;  %v5352_v41 = vld [vmem:[#allocation12_spill] sm:$0xff] }
 0x47d   :  { %3271 = vmatprep.subr.bf16.mxu0 %v4215_v10  ;;  %v540_v10 = vmul.f32 %v3593_v63, %v5352_v41 }
 0x480   :  { %3272 = vmatpush3.bf16.msra.mxu0 %v4220_v34  ;;  %v596_v34 = vmul.f32 %v5354_v49, %v540_v10 }
 0x482   :  { %v500_v14 = vpop.xlane.xlu1 %499  ;;  %v652_v59 = vadd.f32 %v4362_v46, %v596_v34  ;;  %v667_v46 = vmax.f32 %v651_v37, 0.0 }
 0x483   :  { %v512_v25 = vmul.f32 0.00390625, %v500_v14 }
 0x484   :  { %v668_v61 = vmax.f32 %v652_v59, 0.0 }
 0x485   :  { %v520_v28 = vadd.f32 1e-05, %v512_v25 }
 0x486   :  { %v506_v15 = vpop.xlane.xlu1 %505  ;;  %v503_v44 = vpop.xlane.xlu0 %502 }
 0x487   :  { %3594 = vrsqrt.f32 %v520_v28  ;;  %v514_v45 = vmul.f32 0.00390625, %v506_v15  ;;  %v513_v7 = vmul.f32 0.00390625, %v503_v44 }
 0x489   :  { %v522_v35 = vadd.f32 1e-05, %v514_v45  ;;  %v521_v12 = vadd.f32 1e-05, %v513_v7 }
 0x48b   :  { %3596 = vrsqrt.f32 %v522_v35 }
 0x48c   :  { %3598 = vrsqrt.f32 %v521_v12 }
 0x48e   :  { %v641_v2 = vpop.permute.xlu0 %640 }
 0x494   :  { %v3595_v58 = vpop.eup %3594 }
 0x495   :  { %v542_v39 = vmul.f32 %v3595_v58, %v4237_v52  ;;  %v541_v32 = vmul.f32 %v3595_v58, %v4234_v9 }
 0x497   :  { %v598_v55 = vmul.f32 %v5355_v53, %v542_v39  ;;  %v597_v6 = vmul.f32 %v5355_v53, %v541_v32  ;;  %v5357_v53 = vmov 0  }
 0x498   :  { %v3597_v20 = vpop.eup %3596 }
 0x499   :  { %v3599_v54 = vpop.eup %3598  ;;  %v545_v38 = vmul.f32 %v3597_v20, %v4254_v27  ;;  %v546_v51 = vmul.f32 %v3597_v20, %v4257_v24  ;;  %v654_v11 = vadd.f32 %v4360_v42, %v598_v55  ;;  %v653_v52 = vadd.f32 %v4360_v42, %v597_v6  ;;  %v636_v27 = vpop.permute.xlu1 %635 }
 0x49a   :  { %v543_v9 = vmul.f32 %v3599_v54, %v4244_v16  ;;  %v544_v47 = vmul.f32 %v3599_v54, %v4251_v31 }
 0x49b   :  { %v601_v17 = vmul.f32 %v585_v23, %v545_v38  ;;  %v602_v60 = vmul.f32 %v585_v23, %v546_v51  ;;  %v670_v0 = vmax.f32 %v654_v11, 0.0  ;;  %v669_v18 = vmax.f32 %v653_v52, 0.0 }
 0x49c   :  { %v599_v62 = vmul.f32 %v580_v33, %v543_v9  ;;  %v600_v1 = vmul.f32 %v580_v33, %v544_v47  ;;  %v794_v33 = vrot.slane %v4322_v4, 4 }
 0x49d   :  { %v658_v56 = vadd.f32 %v641_v2, %v602_v60  ;;  %v4431_v24 = vpack.c.bf16 %v670_v0, %v668_v61  ;;  %v4433_v29 = vpack.c.bf16 %v669_v18, %v667_v46  ;;  %v657_v16 = vadd.f32 %v641_v2, %v601_v17 }
 0x49e   :  { %v655_v42 = vadd.f32 %v636_v27, %v599_v62  ;;  %v656_v57 = vadd.f32 %v636_v27, %v600_v1  ;;  %v795_v23 = vadd.f32 %v794_v33, %v4322_v4  ;;  %v982_v33 = vunpack.c.h.bf16 %v4380_v40 }
 0x49f   :  { %v674_v19 = vmax.f32 %v658_v56, 0.0  ;;  %853 = vmatprep.mubr.bf16.mxu0 %v4431_v24  ;;  %v673_v26 = vmax.f32 %v657_v16, 0.0 }
 0x4a0   :  { %v672_v31 = vmax.f32 %v656_v57, 0.0  ;;  %854 = vmatmul.mubr.bf16.gmra.mxu0 %v4433_v29  ;;  %v671_v50 = vmax.f32 %v655_v42, 0.0  ;;  %v796_v14 = vrot.slane %v795_v23, 2 }
 0x4a2   :  { %v4437_v13 = vpack.c.bf16 %v674_v19, %v672_v31  ;;  %v4440_v3 = vpack.c.bf16 %v673_v26, %v671_v50  ;;  %v797_v25 = vadd.f32 %v796_v14, %v795_v23  ;;  %v980_v19 = vunpack.c.l.bf16 %v4380_v40 }
 0x4a3   :  { %v981_v31 = vunpack.c.h.bf16 %v4382_v36  ;;  %v979_v50 = vunpack.c.l.bf16 %v4382_v36 }
 0x4a4   :  { %861 = vmatprep.mubr.bf16.mxu0 %v4437_v13  ;;  %v798_v28 = vrot.slane %v797_v25, 1 }
 0x4a6   :  { %v4451_v15 = vadd.f32 %v798_v28, %v797_v25 }
 0x4a8   :  { %862 = vmatmul.mubr.bf16.gmra.mxu0 %v4440_v3  ;;  %v800_v44 = vmax.f32 %v4451_v15, 1.0  ;;  %vm1100_vm3 = vcmp.le.f32.partialorder %v4451_v15, 1.0 }
 0x4aa   :  { %3600 = vrcp.f32 %v800_v44 }
 0x4b7   :  { %v3601_v45 = vpop.eup %3600 }
 0x4b8   :  { %v802_v7 = vmul.f32 %v3601_v45, %v800_v44 }
 0x4ba   :  { %v803_v12 = vsub.f32 2.0, %v802_v7 }
 0x4bc   :  { %v804_v10 = vmul.f32 %v3601_v45, %v803_v12 }
 0x523   :  { %v3233_v35 = vpop.f32.mrf.mxu0 }
 0x525   :  { %v3234_v63 = vpop.f32.mrf.mxu0 }
 0x526   :  { %v3235_v48 = vadd.f32 %v3234_v63, %v3233_v35 }
 0x527   :  { %v3236_v41 = vpop.f32.mrf.mxu0 }
 0x528   :  { %v870_v4 = vmul.f32 %v3235_v48, %v804_v10  ;;  %v983_v48 = vunpack.c.l.bf16 %v4399_v22 }
 0x529   :  { %v3237_v8 = vpop.f32.mrf.mxu0 }
 0x52a   :  { %v3238_v49 = vadd.f32 %v3237_v8, %v3236_v41  ;;  %v984_v41 = vunpack.c.l.bf16 %v4396_v21 }
 0x52b   :  { %v3239_v34 = vpop.f32.mrf.mxu0 }
 0x52c   :  { %v871_v5 = vmul.f32 %v3238_v49, %v804_v10 }
 0x52d   :  { %v3240_v58 = vpop.f32.mrf.mxu0 }
 0x52e   :  { %v4454_v39 = vpack.c.bf16 %v871_v5, %v870_v4  ;;  %v3241_v59 = vadd.f32 %v3240_v58, %v3239_v34  ;;  %v986_v34 = vunpack.c.h.bf16 %v4396_v21 }
 0x52f   :  { %v3242_v32 = vpop.f32.mrf.mxu0 }
 0x530   :  { %3148 = vmatmul.mubr.msk.bf16.vlgmr.msra.gmra.mxu1 %vm89_vm0, %v4454_v39  ;;  %v872_v6 = vmul.f32 %v3241_v59, %v804_v10 }
 0x531   :  { %v3243_v37 = vpop.f32.mrf.mxu0  ;;  %948 = vmatprep.mubr.bf16.mxu1 %v5357_v53 }
 0x532   :  { %v3244_v55 = vadd.f32 %v3243_v37, %v3242_v32 }
 0x534   :  { %v873_v20 = vmul.f32 %v3244_v55, %v804_v10 }
 0x536   :  { %v4459_v54 = vpack.c.bf16 %v873_v20, %v872_v6  ;;  %v988_v20 = vunpack.c.l.bf16 %v4431_v24 }
 0x538   :  { %3149 = vmatmul.mubr.msk.bf16.gmra.mxu1 %vm89_vm0, %v4459_v54 }
 0x539   :  { %958 = vmatprep.mubr.bf16.mxu1 %v5357_v53 }
 0x560   :  { %v3245_v38 = vpop.f32.mrf.mxu0 }
 0x562   :  { %v3246_v51 = vpop.f32.mrf.mxu0 }
 0x563   :  { %v3247_v52 = vadd.f32 %v3246_v51, %v3245_v38  ;;  %v989_v38 = vunpack.c.h.bf16 %v4433_v29  ;;  %v987_v51 = vunpack.c.l.bf16 %v4433_v29 }
 0x564   :  { %v3248_v11 = vpop.f32.mrf.mxu0 }
 0x565   :  { %v874_v46 = vmul.f32 %v3247_v52, %v804_v10 }
 0x566   :  { %v3249_v9 = vpop.f32.mrf.mxu0 }
 0x567   :  { %v3250_v47 = vadd.f32 %v3249_v9, %v3248_v11 }
 0x568   :  { %v3251_v61 = vpop.f32.mrf.mxu0 }
 0x569   :  { %v875_v17 = vmul.f32 %v3250_v47, %v804_v10  ;;  %v990_v47 = vunpack.c.h.bf16 %v4431_v24 }
 0x56a   :  { %v3252_v60 = vpop.f32.mrf.mxu0 }
 0x56b   :  { %v880_v0 = vpack.c.bf16 %v875_v17, %v874_v46  ;;  %v3253_v62 = vadd.f32 %v3252_v60, %v3251_v61 }
 0x56c   :  { %v3254_v18 = vpop.f32.mrf.mxu0 }
 0x56d   :  { %3150 = vmatmul.mubr.msk.bf16.gmra.mxu1 %vm89_vm0, %v880_v0  ;;  %v876_v27 = vmul.f32 %v3253_v62, %v804_v10 }
 0x56e   :  { %v3255_v1 = vpop.f32.mrf.mxu0  ;;  %968 = vmatprep.mubr.bf16.mxu1 %v5357_v53 }
 0x56f   :  { %v3256_v2 = vadd.f32 %v3255_v1, %v3254_v18 }
 0x571   :  { %v877_v56 = vmul.f32 %v3256_v2, %v804_v10  ;;  %v985_v10 = vunpack.c.h.bf16 %v4399_v22  ;;  %v992_v2 = vunpack.c.l.bf16 %v4437_v13 }
 0x573   :  { %v881_v42 = vpack.c.bf16 %v877_v56, %v876_v27  ;;  %v993_v27 = vunpack.c.h.bf16 %v4440_v3  ;;  %v991_v56 = vunpack.c.l.bf16 %v4440_v3  ;;  %v3529_v3 = vld [vmem:[%s5282_s9] sm:$0xff]  }
 0x575   :  { %3151 = vmatmul.mubr.msk.bf16.gmra.mxu1 %vm89_vm0, %v881_v42  ;;  %3385 = vmatprep.subr.bf16.mxu0 %v881_v42 }
 0x5f0   :  { %v940_v57 = vpop.f32.mrf.mxu1 }
 0x5f1   :  { %v995_v23 = vsub.f32 %v979_v50, %v940_v57 }
 0x5f2   :  { %v942_v16 = vpop.f32.mrf.mxu1 }
 0x5f3   :  { %v996_v43 = vsub.f32 %v980_v19, %v942_v16  ;;  %v1011_v35 = vmul.f32 %v995_v23, %v995_v23  ;;  %v994_v16 = vunpack.c.h.bf16 %v4437_v13  ;;  %v3531_v13 = vld [vmem:[%s5282_s9 + $0x8] sm:$0xff]  }
 0x5f4   :  { %v944_v26 = vpop.f32.mrf.mxu1 }
 0x5f5   :  { %v997_v30 = vsub.f32 %v981_v31, %v944_v26  ;;  %v1012_v45 = vmul.f32 %v996_v43, %v996_v43 }
 0x5f6   :  { %v946_v14 = vpop.f32.mrf.mxu1 }
 0x5f7   :  { %v998_v25 = vsub.f32 %v982_v33, %v946_v14  ;;  %v1013_v28 = vmul.f32 %v997_v30, %v997_v30 }
 0x5f8   :  { %v950_v44 = vpop.f32.mrf.mxu1 }
 0x5f9   :  { %v1014_v7 = vmul.f32 %v998_v25, %v998_v25  ;;  %v1027_v36 = vpack.c.bf16 %v1013_v28, %v1011_v35  ;;  %v999_v4 = vsub.f32 %v983_v48, %v950_v44  ;;  %v3528_v25 = vld [vmem:[%s5283_s10] sm:$0xff]   ;;  %v3533_v28 = vld [vmem:[%s5282_s9 + $0x10] sm:$0xff]   ;;  %v3535_v44 = vld [vmem:[%s5282_s9 + $0x18] sm:$0xff]  }
 0x5fa   :  { %v952_v12 = vpop.f32.mrf.mxu1  ;;  %3369 = vmatprep.mubr.msk.bf16.mxu1 %vm1255_vm2, %v3528_v25  ;;  %v3541_v35 = vld [vmem:[%s5282_s9 + $0x30] sm:$0xff]  }
 0x5fb   :  { %v1028_v63 = vpack.c.bf16 %v1014_v7, %v1012_v45  ;;  %v1000_v49 = vsub.f32 %v984_v41, %v952_v12  ;;  %v1015_v53 = vmul.f32 %v999_v4, %v999_v4  ;;  %v3537_v45 = vld [vmem:[%s5282_s9 + $0x20] sm:$0xff]   ;;  %v3539_v7 = vld [vmem:[%s5282_s9 + $0x28] sm:$0xff]   ;;  %v3543_v12 = vld [vmem:[%s5282_s9 + $0x38] sm:$0xff]   ;;  %v1101_v41 = vsel %vm1100_vm3, 2.0, %v4451_v15 }
 0x5fc   :  { %v954_v8 = vpop.f32.mrf.mxu1 }
 0x5fd   :  { %v1001_v40 = vsub.f32 %v985_v10, %v954_v8  ;;  %1067 = vmatprep.mubr.bf16.mxu0 %v1028_v63  ;;  %v1016_v59 = vmul.f32 %v1000_v49, %v1000_v49 }
 0x5fe   :  { %v956_v5 = vpop.f32.mrf.mxu1  ;;  %1068 = vmatmul.mubr.bf16.vlgmr.msra.gmra.mxu0 %v1027_v36  ;;  %v3152_v36 = vadd.f32 -1.0, %v1101_v41 }
 0x5ff   :  { %v1002_v58 = vsub.f32 %v986_v34, %v956_v5  ;;  %3386 = vmatpush3.bf16.msra.mxu0 %v881_v42  ;;  %v1017_v32 = vmul.f32 %v1001_v40, %v1001_v40 }
 0x600   :  { %3387 = vmatprep.subr.bf16.mxu0 %v880_v0  ;;  %3602 = vrcp.f32 %v3152_v36 }
 0x601   :  { %v1018_v37 = vmul.f32 %v1002_v58, %v1002_v58  ;;  %v1029_v6 = vpack.c.bf16 %v1017_v32, %v1015_v53 }
 0x603   :  { %v1030_v55 = vpack.c.bf16 %v1018_v37, %v1016_v59  ;;  %3388 = vmatpush3.bf16.msra.mxu0 %v880_v0 }
 0x604   :  { %3389 = vmatprep.subr.bf16.mxu0 %v4459_v54 }
 0x605   :  { %1075 = vmatprep.mubr.bf16.mxu0 %v1030_v55 }
 0x606   :  { %1076 = vmatmul.mubr.bf16.gmra.mxu0 %v1029_v6 }
 0x607   :  { %3390 = vmatpush3.bf16.msra.mxu0 %v4459_v54 }
 0x608   :  { %3391 = vmatprep.subr.bf16.mxu0 %v4454_v39 }
 0x60b   :  { %3392 = vmatpush3.bf16.msra.mxu0 %v4454_v39 }
 0x60d   :  { %v3603_v34 = vpop.eup %3602 }
 0x60e   :  { %v1104_v5 = vmul.f32 %v3603_v34, %v3152_v36 }
 0x610   :  { %v1105_v32 = vsub.f32 2.0, %v1104_v5 }
 0x612   :  { %v1106_v55 = vmul.f32 %v3603_v34, %v1105_v32 }
 0x62d   :  { %v960_v21 = vpop.f32.mrf.mxu1 }
 0x62e   :  { %v1003_v61 = vsub.f32 %v987_v51, %v960_v21 }
 0x62f   :  { %v962_v22 = vpop.f32.mrf.mxu1 }
 0x630   :  { %v1004_v52 = vsub.f32 %v988_v20, %v962_v22  ;;  %v1019_v18 = vmul.f32 %v1003_v61, %v1003_v61 }
 0x631   :  { %v964_v11 = vpop.f32.mrf.mxu1 }
 0x632   :  { %v1005_v9 = vsub.f32 %v989_v38, %v964_v11  ;;  %v1020_v0 = vmul.f32 %v1004_v52, %v1004_v52 }
 0x633   :  { %v966_v46 = vpop.f32.mrf.mxu1 }
 0x634   :  { %v1006_v54 = vsub.f32 %v990_v47, %v966_v46  ;;  %v1021_v17 = vmul.f32 %v1005_v9, %v1005_v9 }
 0x635   :  { %v970_v60 = vpop.f32.mrf.mxu1 }
 0x636   :  { %v1022_v39 = vmul.f32 %v1006_v54, %v1006_v54  ;;  %v1031_v29 = vpack.c.bf16 %v1021_v17, %v1019_v18  ;;  %v1007_v19 = vsub.f32 %v991_v56, %v970_v60 }
 0x637   :  { %v972_v62 = vpop.f32.mrf.mxu1 }
 0x638   :  { %v1032_v1 = vpack.c.bf16 %v1022_v39, %v1020_v0  ;;  %v1008_v57 = vsub.f32 %v992_v2, %v972_v62  ;;  %v1023_v33 = vmul.f32 %v1007_v19, %v1007_v19 }
 0x639   :  { %v974_v42 = vpop.f32.mrf.mxu1 }
 0x63a   :  { %v1009_v24 = vsub.f32 %v993_v27, %v974_v42  ;;  %1083 = vmatprep.mubr.bf16.mxu0 %v1032_v1  ;;  %v1024_v43 = vmul.f32 %v1008_v57, %v1008_v57 }
 0x63b   :  { %v976_v31 = vpop.f32.mrf.mxu1  ;;  %1084 = vmatmul.mubr.bf16.gmra.mxu0 %v1031_v29 }
 0x63c   :  { %v1010_v50 = vsub.f32 %v994_v16, %v976_v31  ;;  %v1025_v26 = vmul.f32 %v1009_v24, %v1009_v24 }
 0x63e   :  { %v1026_v30 = vmul.f32 %v1010_v50, %v1010_v50  ;;  %v1033_v14 = vpack.c.bf16 %v1025_v26, %v1023_v33 }
 0x640   :  { %v1034_v23 = vpack.c.bf16 %v1026_v30, %v1024_v43 }
 0x642   :  { %1091 = vmatprep.mubr.bf16.mxu0 %v1034_v23 }
 0x643   :  { %1092 = vmatmul.mubr.bf16.gmra.mxu0 %v1033_v14 }
 0x644   :  { %3393 = vmatprep.mubr.msk.bf16.mxu0 %vm1255_vm2, %v3529_v3 }
 0x64b   :  { %3394 = vmatmul.mubr.msk.bf16.vlgmr.msra.gmra.mxu0 %vm1255_vm2, %v3531_v13 }
 0x64c   :  { %3397 = vmatprep.mubr.msk.bf16.mxu0 %vm1255_vm2, %v3533_v28 }
 0x653   :  { %3398 = vmatmul.mubr.msk.bf16.gmra.mxu0 %vm1255_vm2, %v3535_v44 }
 0x654   :  { %3401 = vmatprep.mubr.msk.bf16.mxu0 %vm1255_vm2, %v3537_v45 }
 0x65b   :  { %3402 = vmatmul.mubr.msk.bf16.gmra.mxu0 %vm1255_vm2, %v3539_v7 }
 0x65c   :  { %3405 = vmatprep.mubr.msk.bf16.mxu0 %vm1255_vm2, %v3541_v35 }
 0x663   :  { %3406 = vmatmul.mubr.msk.bf16.gmra.mxu0 %vm1255_vm2, %v3543_v12 }
 0x6be   :  { %v3273_v63 = vpop.f32.mrf.mxu0 }
 0x6c0   :  { %v3274_v10 = vpop.f32.mrf.mxu0 }
 0x6c1   :  { %v3275_v39 = vadd.f32 %v3274_v10, %v3273_v63 }
 0x6c2   :  { %v3276_v48 = vpop.f32.mrf.mxu0 }
 0x6c3   :  { %v1107_v56 = vmul.f32 %v3275_v39, %v1106_v55 }
 0x6c4   :  { %v3277_v8 = vpop.f32.mrf.mxu0 }
 0x6c5   :  { %v3278_v46 = vadd.f32 %v3277_v8, %v3276_v48  ;;  %v4533_v16 = vadd.f32 1e-31, %v1107_v56 }
 0x6c6   :  { %v3279_v49 = vpop.f32.mrf.mxu0 }
 0x6c7   :  { %v1108_v2 = vmul.f32 %v3278_v46, %v1106_v55  ;;  %vm1125_vm3 = vcmp.eq.f32.partialorder %v4533_v16, inf  ;;  %v3536_v46 = vld [vmem:[%s5283_s10 + $0x20] sm:$0xff]  }
 0x6c8   :  { %v3280_v40 = vpop.f32.mrf.mxu0 }
 0x6c9   :  { %v3281_v37 = vadd.f32 %v3280_v40, %v3279_v49  ;;  %v4531_v57 = vadd.f32 1e-31, %v1108_v2 }
 0x6ca   :  { %v3282_v4 = vpop.f32.mrf.mxu0 }
 0x6cb   :  { %v1109_v22 = vmul.f32 %v3281_v37, %v1106_v55  ;;  %vm1132_vm15 = vcmp.eq.f32.partialorder %v4531_v57, inf }
 0x6cc   :  { %v3283_v58 = vpop.f32.mrf.mxu0 }
 0x6cd   :  { %v3284_v15 = vadd.f32 %v3283_v58, %v3282_v4  ;;  %v4525_v9 = vadd.f32 1e-31, %v1109_v22  ;;  %v1135_v22 = vand.u32 2147483648, %v4531_v57 }
 0x6cf   :  { %v1110_v47 = vmul.f32 %v3284_v15, %v1106_v55  ;;  %3604 = vrsqrt.f32 %v4525_v9  ;;  %vm1139_vm13 = vcmp.eq.f32.partialorder %v4525_v9, inf  ;;  %vm1141_vm1 = vcmp.eq.f32.partialorder %v4525_v9, 0.0 }
 0x6d1   :  { %v4528_v62 = vadd.f32 1e-31, %v1110_v47  ;;  %v3532_v47 = vld [vmem:[%s5283_s10 + $0x10] sm:$0xff]  }
 0x6d3   :  { %vm1146_vm4 = vcmp.eq.f32.partialorder %v4528_v62, inf  ;;  %v1149_v58 = vand.u32 2147483648, %v4528_v62  ;;  %vm1148_vm14 = vcmp.eq.f32.partialorder %v4528_v62, 0.0 }
 0x6dc   :  { %v3605_v19 = vpop.eup %3604 }
 0x6dd   :  { %v1138_v14 = vmul.f32 %v3605_v19, %v4525_v9 }
 0x6fb   :  { %v3285_v59 = vpop.f32.mrf.mxu0 }
 0x6fd   :  { %v3286_v53 = vpop.f32.mrf.mxu0 }
 0x6fe   :  { %v3287_v6 = vadd.f32 %v3286_v53, %v3285_v59  ;;  %v1140_v59 = vsel %vm1139_vm13, %v4525_v9, %v1138_v14  ;;  %v1142_v53 = vand.u32 2147483648, %v4525_v9  ;;  %v3530_v9 = vld [vmem:[%s5283_s10 + $0x8] sm:$0xff]  }
 0x6ff   :  { %v3288_v21 = vpop.f32.mrf.mxu0 }
 0x700   :  { %v1111_v51 = vmul.f32 %v3287_v6, %v1106_v55 }
 0x701   :  { %v3289_v20 = vpop.f32.mrf.mxu0 }
 0x702   :  { %v3290_v38 = vadd.f32 %v3289_v20, %v3288_v21  ;;  %v1119_v60 = vadd.f32 1e-31, %v1111_v51  ;;  %v1143_v21 = vsel %vm1141_vm1, %v1142_v53, %v1140_v59 }
 0x703   :  { %v3291_v11 = vpop.f32.mrf.mxu0 }
 0x704   :  { %v1112_v52 = vmul.f32 %v3290_v38, %v1106_v55  ;;  %vm1153_vm6 = vcmp.eq.f32.partialorder %v1119_v60, inf  ;;  %v1156_v8 = vand.u32 2147483648, %v1119_v60  ;;  %vm1155_vm12 = vcmp.eq.f32.partialorder %v1119_v60, 0.0 }
 0x705   :  { %v3292_v61 = vpop.f32.mrf.mxu0  ;;  %v1128_v38 = vand.u32 2147483648, %v4533_v16 }
 0x706   :  { %v1120_v54 = vadd.f32 1e-31, %v1112_v52  ;;  %v3293_v17 = vadd.f32 %v3292_v61, %v3291_v11  ;;  %v3534_v61 = vld [vmem:[%s5283_s10 + $0x18] sm:$0xff]  }
 0x707   :  { %v3294_v0 = vpop.f32.mrf.mxu0 }
 0x708   :  { %v1113_v18 = vmul.f32 %v3293_v17, %v1106_v55  ;;  %3606 = vrsqrt.f32 %v1120_v54  ;;  %vm1160_vm7 = vcmp.eq.f32.partialorder %v1120_v54, inf  ;;  %vm1162_vm8 = vcmp.eq.f32.partialorder %v1120_v54, 0.0  ;;  %v3540_v17 = vld [vmem:[%s5283_s10 + $0x30] sm:$0xff]  }
 0x709   :  { %v3295_v1 = vpop.f32.mrf.mxu0  ;;  %3608 = vrsqrt.f32 %v1119_v60  ;;  %v1163_v12 = vand.u32 2147483648, %v1120_v54 }
 0x70a   :  { %v1121_v27 = vadd.f32 1e-31, %v1113_v18  ;;  %v3296_v29 = vadd.f32 %v3295_v1, %v3294_v0 }
 0x70b   :  { %v3395_v0 = vpop.f32.mrf.mxu0 }
 0x70c   :  { %3610 = vrsqrt.f32 %v1121_v27  ;;  %v1114_v42 = vmul.f32 %v3296_v29, %v1106_v55  ;;  %vm1167_vm5 = vcmp.eq.f32.partialorder %v1121_v27, inf  ;;  %v1170_v7 = vand.u32 2147483648, %v1121_v27 }
 0x70d   :  { %3612 = vrsqrt.f32 %v4528_v62  ;;  %vm1169_vm10 = vcmp.eq.f32.partialorder %v1121_v27, 0.0  ;;  %v1475_v39 = vpop.f32.mrf.mxu0 }
 0x70e   :  { %v1122_v24 = vadd.f32 1e-31, %v1114_v42 }
 0x70f   :  { %v3396_v18 = vpop.f32.mrf.mxu0 }
 0x710   :  { %3614 = vrsqrt.f32 %v1122_v24  ;;  %vm1174_vm9 = vcmp.eq.f32.partialorder %v1122_v24, inf  ;;  %v1177_v35 = vand.u32 2147483648, %v1122_v24  ;;  %vm1176_vm11 = vcmp.eq.f32.partialorder %v1122_v24, 0.0 }
 0x711   :  { %3616 = vrsqrt.f32 %v4531_v57 }
 0x712   :  { %3618 = vrsqrt.f32 %v4533_v16 }
 0x715   :  { %v3607_v31 = vpop.eup %3606 }
 0x716   :  { %v3609_v50 = vpop.eup %3608  ;;  %v1159_v33 = vmul.f32 %v3607_v31, %v1120_v54 }
 0x717   :  { %v1152_v23 = vmul.f32 %v3609_v50, %v1119_v60 }
 0x718   :  { %v1161_v44 = vsel %vm1160_vm7, %v1120_v54, %v1159_v33  ;;  %v3538_v54 = vld [vmem:[%s5283_s10 + $0x28] sm:$0xff]  }
 0x719   :  { %v3611_v26 = vpop.eup %3610  ;;  %v1154_v41 = vsel %vm1153_vm6, %v1119_v60, %v1152_v23  ;;  %v1164_v49 = vsel %vm1162_vm8, %v1163_v12, %v1161_v44  ;;  %v3542_v60 = vld [vmem:[%s5283_s10 + $0x38] sm:$0xff]  }
 0x71a   :  { %v3613_v43 = vpop.eup %3612  ;;  %v1166_v30 = vmul.f32 %v3611_v26, %v1121_v27  ;;  %v1157_v5 = vsel %vm1155_vm12, %v1156_v8, %v1154_v41 }
 0x71b   :  { %v1145_v13 = vmul.f32 %v3613_v43, %v4528_v62  ;;  %v1213_v32 = vpack.c.bf16 %v1164_v49, %v1157_v5 }
 0x71c   :  { %v1168_v25 = vsel %vm1167_vm5, %v1121_v27, %v1166_v30  ;;  %vm1127_vm5 = vcmp.eq.f32.partialorder %v4533_v16, 0.0 }
 0x71d   :  { %v3615_v3 = vpop.eup %3614  ;;  %v1171_v36 = vsel %vm1169_vm10, %v1170_v7, %v1168_v25  ;;  %v1147_v34 = vsel %vm1146_vm4, %v4528_v62, %v1145_v13  ;;  %vm1134_vm4 = vcmp.eq.f32.partialorder %v4531_v57, 0.0  ;;  %v1478_v62 = vpop.f32.mrf.mxu0 }
 0x71e   :  { %v1173_v28 = vmul.f32 %v3615_v3, %v1122_v24  ;;  %v3617_v45 = vpop.eup %3616  ;;  %v1150_v55 = vsel %vm1148_vm14, %v1149_v58, %v1147_v34 }
 0x71f   :  { %v3619_v10 = vpop.eup %3618  ;;  %v1131_v4 = vmul.f32 %v3617_v45, %v4531_v57  ;;  %v1212_v15 = vpack.c.bf16 %v1150_v55, %v1143_v21  ;;  %v3399_v1 = vpop.f32.mrf.mxu0 }
 0x720   :  { %v1175_v63 = vsel %vm1174_vm9, %v1122_v24, %v1173_v28  ;;  %v1124_v37 = vmul.f32 %v3619_v10, %v4533_v16 }
 0x721   :  { %v1178_v48 = vsel %vm1176_vm11, %v1177_v35, %v1175_v63  ;;  %v1133_v6 = vsel %vm1132_vm15, %v4531_v57, %v1131_v4  ;;  %v1491_v2 = vpop.f32.mrf.mxu0 }
 0x722   :  { %v1214_v40 = vpack.c.bf16 %v1178_v48, %v1171_v36  ;;  %v1126_v20 = vsel %vm1125_vm3, %v4533_v16, %v1124_v37  ;;  %v1136_v51 = vsel %vm1134_vm4, %v1135_v22, %v1133_v6 }
 0x723   :  { %v1129_v11 = vsel %vm1127_vm5, %v1128_v38, %v1126_v20  ;;  %v3400_v27 = vpop.f32.mrf.mxu0 }
 0x724   :  { %3361 = vmatprep.subr.bf16.mxu1 %v1214_v40  ;;  %v1211_v52 = vpack.c.bf16 %v1136_v51, %v1129_v11 }
 0x725   :  { %3362 = vmatpush3.bf16.msra.mxu1 %v1214_v40  ;;  %v1494_v29 = vpop.f32.mrf.mxu0 }
 0x726   :  { %3363 = vmatprep.subr.bf16.mxu1 %v1213_v32 }
 0x727   :  { %v3403_v24 = vpop.f32.mrf.mxu0 }
 0x729   :  { %3364 = vmatpush3.bf16.msra.mxu1 %v1213_v32  ;;  %v1507_v43 = vpop.f32.mrf.mxu0 }
 0x72a   :  { %3365 = vmatprep.subr.bf16.mxu1 %v1212_v15 }
 0x72b   :  { %v3404_v25 = vpop.f32.mrf.mxu0 }
 0x72d   :  { %3366 = vmatpush3.bf16.msra.mxu1 %v1212_v15  ;;  %v1510_v63 = vpop.f32.mrf.mxu0 }
 0x72e   :  { %3367 = vmatprep.subr.bf16.mxu1 %v1211_v52 }
 0x72f   :  { %v3407_v40 = vpop.f32.mrf.mxu0 }
 0x731   :  { %3368 = vmatpush3.bf16.msra.mxu1 %v1211_v52  ;;  %v1523_v37 = vpop.f32.mrf.mxu0 }
 0x733   :  { %v3408_v15 = vpop.f32.mrf.mxu0 }
 0x734   :  { %3370 = vmatmul.mubr.msk.bf16.vlgmr.msra.gmra.mxu1 %vm1255_vm2, %v3530_v9 }
 0x735   :  { %3373 = vmatprep.mubr.msk.bf16.mxu1 %vm1255_vm2, %v3532_v47  ;;  %v1526_v47 = vpop.f32.mrf.mxu0 }
 0x73c   :  { %3374 = vmatmul.mubr.msk.bf16.gmra.mxu1 %vm1255_vm2, %v3534_v61 }
 0x73d   :  { %3377 = vmatprep.mubr.msk.bf16.mxu1 %vm1255_vm2, %v3536_v46 }
 0x744   :  { %3378 = vmatmul.mubr.msk.bf16.gmra.mxu1 %vm1255_vm2, %v3538_v54 }
 0x745   :  { %3381 = vmatprep.mubr.msk.bf16.mxu1 %vm1255_vm2, %v3540_v17 }
 0x74c   :  { %3382 = vmatmul.mubr.msk.bf16.gmra.mxu1 %vm1255_vm2, %v3542_v60  ;;  %vm3116_vm2 = vcmask 8192  }
 0x7f4   :  { %v3371_v56 = vpop.f32.mrf.mxu1 }
 0x7f5   :  { %v4587_v42 = vadd.f32 %v3395_v0, %v3371_v56  ;;  %v1560_v0 = vld [vmem:[%s5285_s12 + $0x30] sm:$0xff] }
 0x7f6   :  { %v1314_v57 = vpop.f32.mrf.mxu1 }
 0x7f7   :  { %v4589_v16 = vadd.f32 %v1475_v39, %v1314_v57  ;;  %v1576_v19 = vsel %vm89_vm0, %v4587_v42, 0.0  ;;  %v1545_v39 = vld [vmem:[%s5284_s11 + $0x38] sm:$0xff] }
 0x7f8   :  { %1577 = vadd.xlane.f32.xlu0 %v1576_v19  ;;  %v3372_v31 = vpop.f32.mrf.mxu1 }
 0x7f9   :  { %v4593_v50 = vadd.f32 %v3396_v18, %v3372_v31  ;;  %v1570_v33 = vsel %vm89_vm0, %v4589_v16, 0.0  ;;  %v4657_v18 = vpop.permute.xlu1 %1855 }
 0x7fa   :  { %v1317_v26 = vpop.f32.mrf.mxu1 }
 0x7fb   :  { %v4595_v30 = vadd.f32 %v1478_v62, %v1317_v26  ;;  %v1579_v23 = vsel %vm89_vm0, %v4593_v50, 0.0  ;;  %v4659_v62 = vpop.permute.xlu0 %1850 }
 0x7fc   :  { %1571 = vadd.xlane.f32.xlu0 %v1570_v33  ;;  %1580 = vadd.xlane.f32.xlu1 %v1579_v23  ;;  %v3375_v14 = vpop.f32.mrf.mxu1 }
 0x7fd   :  { %v4601_v3 = vadd.f32 %v3399_v1, %v3375_v14  ;;  %v1573_v44 = vsel %vm89_vm0, %v4595_v30, 0.0  ;;  %v4661_v1 = vpop.permute.xlu1 %1951 }
 0x7fe   :  { %v1330_v13 = vpop.f32.mrf.mxu1 }
 0x7ff   :  { %v4603_v28 = vadd.f32 %v1491_v2, %v1330_v13  ;;  %v1588_v45 = vsel %vm89_vm0, %v4601_v3, 0.0  ;;  %v4663_v2 = vpop.permute.xlu0 %1946 }
 0x800   :  { %1574 = vadd.xlane.f32.xlu1 %v1573_v44  ;;  %1589 = vadd.xlane.f32.xlu0 %v1588_v45  ;;  %v3376_v7 = vpop.f32.mrf.mxu1 }
 0x801   :  { %v4609_v35 = vadd.f32 %v3400_v27, %v3376_v7  ;;  %v1582_v10 = vsel %vm89_vm0, %v4603_v28, 0.0  ;;  %v4665_v27 = vpop.permute.xlu1 %1840 }
 0x802   :  { %v1333_v12 = vpop.f32.mrf.mxu1 }
 0x803   :  { %v4611_v41 = vadd.f32 %v1494_v29, %v1333_v12  ;;  %v1591_v36 = vsel %vm89_vm0, %v4609_v35, 0.0  ;;  %v4667_v29 = vpop.permute.xlu0 %1845 }
 0x804   :  { %1583 = vadd.xlane.f32.xlu0 %v1582_v10  ;;  %1592 = vadd.xlane.f32.xlu1 %v1591_v36  ;;  %v3379_v48 = vpop.f32.mrf.mxu1 }
 0x805   :  { %v4617_v8 = vadd.f32 %v3403_v24, %v3379_v48  ;;  %v1585_v4 = vsel %vm89_vm0, %v4611_v41, 0.0  ;;  %v4669_v56 = vpop.permute.xlu1 %1936 }
 0x806   :  { %v1346_v49 = vpop.f32.mrf.mxu1 }
 0x807   :  { %v4619_v34 = vadd.f32 %v1507_v43, %v1346_v49  ;;  %v1600_v5 = vsel %vm89_vm0, %v4617_v8, 0.0  ;;  %v4671_v57 = vpop.permute.xlu0 %1941 }
 0x808   :  { %1586 = vadd.xlane.f32.xlu1 %v1585_v4  ;;  %1601 = vadd.xlane.f32.xlu0 %v1600_v5  ;;  %v3380_v58 = vpop.f32.mrf.mxu1 }
 0x809   :  { %v4625_v32 = vadd.f32 %v3404_v25, %v3380_v58  ;;  %v1594_v55 = vsel %vm89_vm0, %v4619_v34, 0.0  ;;  %v4673_v24 = vpop.permute.xlu1 %1830 }
 0x80a   :  { %v1349_v59 = vpop.f32.mrf.mxu1 }
 0x80b   :  { %v4627_v53 = vadd.f32 %v1510_v63, %v1349_v59  ;;  %v1603_v6 = vsel %vm89_vm0, %v4625_v32, 0.0  ;;  %v4675_v19 = vpop.permute.xlu0 %1835 }
 0x80c   :  { %1595 = vadd.xlane.f32.xlu0 %v1594_v55  ;;  %1604 = vadd.xlane.f32.xlu1 %v1603_v6  ;;  %v3383_v21 = vpop.f32.mrf.mxu1 }
 0x80d   :  { %v4633_v20 = vadd.f32 %v3407_v40, %v3383_v21  ;;  %v1597_v51 = vsel %vm89_vm0, %v4627_v53, 0.0  ;;  %v4677_v31 = vpop.permute.xlu1 %1926 }
 0x80e   :  { %v1362_v22 = vpop.f32.mrf.mxu1 }
 0x80f   :  { %v4635_v38 = vadd.f32 %v1523_v37, %v1362_v22  ;;  %v1612_v46 = vsel %vm89_vm0, %v4633_v20, 0.0  ;;  %v4679_v26 = vpop.permute.xlu0 %1931 }
 0x810   :  { %1598 = vadd.xlane.f32.xlu1 %v1597_v51  ;;  %v3384_v11 = vpop.f32.mrf.mxu1 }
 0x811   :  { %v1606_v52 = vsel %vm89_vm0, %v4635_v38, 0.0  ;;  %v4641_v9 = vadd.f32 %v3408_v15, %v3384_v11  ;;  %v4681_v43 = vpop.permute.xlu1 %1820 }
 0x812   :  { %1607 = vadd.xlane.f32.xlu0 %v1606_v52  ;;  %v1365_v61 = vpop.f32.mrf.mxu1 }
 0x813   :  { %v4645_v54 = vadd.f32 %v1526_v47, %v1365_v61  ;;  %v1615_v17 = vsel %vm89_vm0, %v4641_v9, 0.0  ;;  %v4683_v33 = vpop.permute.xlu0 %1825 }
 0x814   :  { %1613 = vadd.xlane.f32.xlu1 %v1612_v46 }
 0x815   :  { %v1609_v60 = vsel %vm89_vm0, %v4645_v54, 0.0  ;;  %v4685_v23 = vpop.permute.xlu1 %1916 }
 0x816   :  { %1616 = vadd.xlane.f32.xlu0 %v1615_v17 }
 0x817   :  { %v4687_v14 = vpop.permute.xlu0 %1921 }
 0x818   :  { %1610 = vadd.xlane.f32.xlu1 %v1609_v60 }
 0x819   :  { %v4689_v13 = vpop.permute.xlu1 %1810 }
 0x829   :  { %1906 = vperm.xlu1 %3515, %v1560_v0  }
 0x82c   :  { %1815 = vperm.xlu0 %3514, %v1545_v39  }
 0x881   :  { %v1578_v25 = vpop.xlane.xlu0 %1577 }
 0x882   :  { %v1620_v44 = vmul.f32 0.0625, %v1578_v25 }
 0x884   :  { %v4692_v45 = vsub.f32 %v4587_v42, %v1620_v44 }
 0x885   :  { %v1581_v7 = vpop.xlane.xlu1 %1580  ;;  %v1572_v12 = vpop.xlane.xlu0 %1571 }
 0x886   :  { %v1621_v63 = vmul.f32 0.0625, %v1581_v7  ;;  %v1618_v10 = vmul.f32 0.0625, %v1572_v12  ;;  %v1652_v36 = vmul.f32 %v4692_v45, %v4692_v45 }
 0x888   :  { %v4697_v48 = vsub.f32 %v4593_v50, %v1621_v63  ;;  %v4700_v49 = vsub.f32 %v4589_v16, %v1618_v10  ;;  %v1672_v40 = vsel %vm89_vm0, %v1652_v36, 0.0 }
 0x889   :  { %v1575_v4 = vpop.xlane.xlu1 %1574  ;;  %1673 = vadd.xlane.f32.xlu0 %v1672_v40  ;;  %v1590_v5 = vpop.xlane.xlu0 %1589 }
 0x88a   :  { %v1619_v42 = vmul.f32 0.0625, %v1575_v4  ;;  %v1624_v58 = vmul.f32 0.0625, %v1590_v5  ;;  %v1650_v59 = vmul.f32 %v4700_v49, %v4700_v49  ;;  %v1653_v37 = vmul.f32 %v4697_v48, %v4697_v48 }
 0x88c   :  { %v4708_v55 = vsub.f32 %v4595_v30, %v1619_v42  ;;  %v4711_v50 = vsub.f32 %v4601_v3, %v1624_v58  ;;  %v1666_v16 = vsel %vm89_vm0, %v1650_v59, 0.0  ;;  %v1675_v11 = vsel %vm89_vm0, %v1653_v37, 0.0 }
 0x88d   :  { %v1593_v6 = vpop.xlane.xlu1 %1592  ;;  %1667 = vadd.xlane.f32.xlu1 %v1666_v16  ;;  %v1584_v21 = vpop.xlane.xlu0 %1583 }
 0x88e   :  { %v1625_v22 = vmul.f32 0.0625, %v1593_v6  ;;  %v1622_v15 = vmul.f32 0.0625, %v1584_v21  ;;  %v1651_v51 = vmul.f32 %v4708_v55, %v4708_v55  ;;  %v1656_v47 = vmul.f32 %v4711_v50, %v4711_v50 }
 0x890   :  { %v4718_v52 = vsub.f32 %v4609_v35, %v1625_v22  ;;  %v4721_v30 = vsub.f32 %v4603_v28, %v1622_v15  ;;  %v1669_v3 = vsel %vm89_vm0, %v1651_v51, 0.0  ;;  %v1684_v44 = vsel %vm89_vm0, %v1656_v47, 0.0 }
 0x891   :  { %v1587_v61 = vpop.xlane.xlu1 %1586  ;;  %1670 = vadd.xlane.f32.xlu0 %v1669_v3  ;;  %1676 = vadd.xlane.f32.xlu1 %v1675_v11  ;;  %v1602_v46 = vpop.xlane.xlu0 %1601 }
 0x892   :  { %v1623_v17 = vmul.f32 0.0625, %v1587_v61  ;;  %v1628_v60 = vmul.f32 0.0625, %v1602_v46  ;;  %v1657_v0 = vmul.f32 %v4718_v52, %v4718_v52  ;;  %v1654_v35 = vmul.f32 %v4721_v30, %v4721_v30 }
 0x894   :  { %v4731_v28 = vsub.f32 %v4611_v41, %v1623_v17  ;;  %v4734_v39 = vsub.f32 %v4617_v8, %v1628_v60  ;;  %v1687_v25 = vsel %vm89_vm0, %v1657_v0, 0.0  ;;  %v1678_v40 = vsel %vm89_vm0, %v1654_v35, 0.0 }
 0x895   :  { %v1605_v7 = vpop.xlane.xlu1 %1604  ;;  %1688 = vadd.xlane.f32.xlu1 %v1687_v25  ;;  %1685 = vadd.xlane.f32.xlu0 %v1684_v44  ;;  %v1596_v12 = vpop.xlane.xlu0 %1595 }
 0x896   :  { %v1629_v63 = vmul.f32 0.0625, %v1605_v7  ;;  %v1626_v10 = vmul.f32 0.0625, %v1596_v12  ;;  %v1655_v36 = vmul.f32 %v4731_v28, %v4731_v28  ;;  %v1660_v5 = vmul.f32 %v4734_v39, %v4734_v39 }
 0x898   :  { %v4742_v41 = vsub.f32 %v4625_v32, %v1629_v63  ;;  %v4745_v8 = vsub.f32 %v4619_v34, %v1626_v10  ;;  %v1681_v4 = vsel %vm89_vm0, %v1655_v36, 0.0  ;;  %v1696_v21 = vsel %vm89_vm0, %v1660_v5, 0.0  ;;  %v1542_v63 = vld [vmem:[%s5284_s11 + $0x20] sm:$0xff]  ;;  %v1561_v10 = vld [vmem:[%s5285_s12 + $0x38] sm:$0xff]  ;;  %v1559_v5 = vld [vmem:[%s5285_s12 + $0x28] sm:$0xff] }
 0x899   :  { %v1599_v42 = vpop.xlane.xlu1 %1598  ;;  %1682 = vadd.xlane.f32.xlu1 %v1681_v4  ;;  %1679 = vadd.xlane.f32.xlu0 %v1678_v40  ;;  %v1558_v36 = vld [vmem:[%s5285_s12 + $0x20] sm:$0xff]  ;;  %v1543_v40 = vld [vmem:[%s5284_s11 + $0x28] sm:$0xff]  ;;  %v1540_v4 = vld [vmem:[%s5284_s11 + $0x10] sm:$0xff] }
 0x89a   :  { %v1627_v58 = vmul.f32 0.0625, %v1599_v42  ;;  %v1661_v59 = vmul.f32 %v4742_v41, %v4742_v41  ;;  %v1658_v32 = vmul.f32 %v4745_v8, %v4745_v8  ;;  %v1556_v42 = vld [vmem:[%s5285_s12 + $0x10] sm:$0xff] }
 0x89b   :  { %v1608_v37 = vpop.xlane.xlu0 %1607 }
 0x89c   :  { %v4755_v16 = vsub.f32 %v4627_v53, %v1627_v58  ;;  %v1630_v34 = vmul.f32 0.0625, %v1608_v37  ;;  %v1699_v6 = vsel %vm89_vm0, %v1661_v59, 0.0  ;;  %v1690_v3 = vsel %vm89_vm0, %v1658_v32, 0.0  ;;  %v1541_v58 = vld [vmem:[%s5284_s11 + $0x18] sm:$0xff]  ;;  %v1538_v59 = vld [vmem:[%s5284_s11] sm:$0xff] }
 0x89d   :  { %v1614_v22 = vpop.xlane.xlu1 %1613  ;;  %1700 = vadd.xlane.f32.xlu1 %v1699_v6  ;;  %1697 = vadd.xlane.f32.xlu0 %v1696_v21  ;;  %v1557_v37 = vld [vmem:[%s5285_s12 + $0x18] sm:$0xff]  ;;  %v1554_v32 = vld [vmem:[%s5285_s12] sm:$0xff]  ;;  %v1555_v6 = vld [vmem:[%s5285_s12 + $0x8] sm:$0xff] }
 0x89e   :  { %v1632_v15 = vmul.f32 0.0625, %v1614_v22  ;;  %v1659_v51 = vmul.f32 %v4755_v16, %v4755_v16  ;;  %v4763_v47 = vsub.f32 %v4635_v38, %v1630_v34  ;;  %v1539_v34 = vld [vmem:[%s5284_s11 + $0x8] sm:$0xff]  ;;  %v3544_v21 = vld [vmem:[%s5286_s13 + $0x60] sm:$0xff]  }
 0x89f   :  { %v1617_v11 = vpop.xlane.xlu0 %1616  ;;  %v3546_v22 = vld [vmem:[%s5286_s13] sm:$0xff]   ;;  %3449 = vmatprep.mubr.bf16.mxu1 %v3544_v21 }
 0x8a0   :  { %v4766_v53 = vsub.f32 %v4633_v20, %v1632_v15  ;;  %v1633_v61 = vmul.f32 0.0625, %v1617_v11  ;;  %v1693_v46 = vsel %vm89_vm0, %v1659_v51, 0.0  ;;  %v1662_v44 = vmul.f32 %v4763_v47, %v4763_v47  ;;  %3425 = vmatprep.mubr.bf16.mxu0 %v3546_v22 }
 0x8a1   :  { %v1611_v17 = vpop.xlane.xlu1 %1610  ;;  %1694 = vadd.xlane.f32.xlu1 %v1693_v46  ;;  %1691 = vadd.xlane.f32.xlu0 %v1690_v3 }
 0x8a2   :  { %v4770_v60 = vsub.f32 %v4641_v9, %v1633_v61  ;;  %v1631_v0 = vmul.f32 0.0625, %v1611_v17  ;;  %v1664_v35 = vmul.f32 %v4766_v53, %v4766_v53  ;;  %v1702_v12 = vsel %vm89_vm0, %v1662_v44, 0.0 }
 0x8a4   :  { %v4775_v25 = vsub.f32 %v4645_v54, %v1631_v0  ;;  %v1708_v38 = vsel %vm89_vm0, %v1664_v35, 0.0  ;;  %v1665_v20 = vmul.f32 %v4770_v60, %v4770_v60 }
 0x8a5   :  { %1709 = vadd.xlane.f32.xlu0 %v1708_v38  ;;  %v4832_v15 = vpop.permute.xlu1 %1906 }
 0x8a6   :  { %v1711_v7 = vsel %vm89_vm0, %v1665_v20, 0.0  ;;  %v1663_v9 = vmul.f32 %v4775_v25, %v4775_v25 }
 0x8a7   :  { %1712 = vadd.xlane.f32.xlu1 %v1711_v7  ;;  %v4834_v51 = vpop.permute.xlu0 %1815 }
 0x8a8   :  { %v1705_v54 = vsel %vm89_vm0, %v1663_v9, 0.0  ;;  %vm2819_vm0 = vcmask 15360  }
 0x8a9   :  { %1703 = vadd.xlane.f32.xlu0 %v1702_v12 }
 0x8ab   :  { %1706 = vadd.xlane.f32.xlu1 %v1705_v54 }
 0x8bc   :  { %1800 = vperm.xlu1 %3515, %v1542_v63  }
 0x8bf   :  { %1911 = vperm.xlu0 %3514, %v1561_v10  }
 0x8c0   :  { %1896 = vperm.xlu1 %3515, %v1558_v36  }
 0x8c3   :  { %1805 = vperm.xlu0 %3514, %v1543_v40  }
 0x8c4   :  { %1790 = vperm.xlu1 %3515, %v1540_v4  }
 0x8c7   :  { %1901 = vperm.xlu0 %3514, %v1559_v5  }
 0x8c8   :  { %1886 = vperm.xlu1 %3515, %v1556_v42  }
 0x8cb   :  { %1795 = vperm.xlu0 %3514, %v1541_v58  }
 0x8cc   :  { %1780 = vperm.xlu1 %3515, %v1538_v59  }
 0x8cf   :  { %1891 = vperm.xlu0 %3514, %v1557_v37  }
 0x8d0   :  { %1876 = vperm.xlu1 %3515, %v1554_v32  }
 0x8d3   :  { %1785 = vperm.xlu0 %3514, %v1539_v34  }
 0x8d7   :  { %1881 = vperm.xlu0 %3514, %v1555_v6  }
 0x912   :  { %v1674_v11 = vpop.xlane.xlu0 %1673 }
 0x916   :  { %v4836_v3 = vpop.xlane.xlu1 %1667 }
 0x91a   :  { %v1677_v61 = vpop.xlane.xlu1 %1676  ;;  %v1671_v46 = vpop.xlane.xlu0 %1670 }
 0x91e   :  { %v1689_v17 = vpop.xlane.xlu1 %1688  ;;  %v1686_v0 = vpop.xlane.xlu0 %1685 }
 0x91f   :  { %v1721_v22 = vmul.f32 0.0625, %v1689_v17 }
 0x922   :  { %v1683_v35 = vpop.xlane.xlu1 %1682  ;;  %v1680_v38 = vpop.xlane.xlu0 %1679 }
 0x926   :  { %v1701_v20 = vpop.xlane.xlu1 %1700  ;;  %v1698_v44 = vpop.xlane.xlu0 %1697 }
 0x927   :  { %v1725_v7 = vmul.f32 0.0625, %v1701_v20  ;;  %v1724_v9 = vmul.f32 0.0625, %v1698_v44  ;;  %v1720_v44 = vmul.f32 0.0625, %v1686_v0 }
 0x929   :  { %v1741_v10 = vadd.f32 1e-05, %v1725_v7  ;;  %v1740_v36 = vadd.f32 1e-05, %v1724_v9 }
 0x92a   :  { %v1695_v12 = vpop.xlane.xlu1 %1694  ;;  %v1692_v54 = vpop.xlane.xlu0 %1691 }
 0x92b   :  { %v1723_v63 = vmul.f32 0.0625, %v1695_v12  ;;  %v1722_v40 = vmul.f32 0.0625, %v1692_v54  ;;  %3620 = vrsqrt.f32 %v1741_v10  ;;  %v1737_v54 = vadd.f32 1e-05, %v1721_v22 }
 0x92c   :  { %3622 = vrsqrt.f32 %v1740_v36  ;;  %v1719_v36 = vmul.f32 0.0625, %v1683_v35 }
 0x92d   :  { %v1739_v42 = vadd.f32 1e-05, %v1723_v63  ;;  %v1738_v32 = vadd.f32 1e-05, %v1722_v40  ;;  %v1736_v63 = vadd.f32 1e-05, %v1720_v44 }
 0x92e   :  { %v1710_v4 = vpop.xlane.xlu0 %1709  ;;  %v1717_v40 = vmul.f32 0.0625, %v1677_v61 }
 0x92f   :  { %v1728_v5 = vmul.f32 0.0625, %v1710_v4  ;;  %v1718_v4 = vmul.f32 0.0625, %v1680_v38 }
 0x930   :  { %v1713_v58 = vpop.xlane.xlu1 %1712 }
 0x931   :  { %v1744_v59 = vadd.f32 1e-05, %v1728_v5  ;;  %v1729_v37 = vmul.f32 0.0625, %v1713_v58 }
 0x932   :  { %v1704_v34 = vpop.xlane.xlu0 %1703 }
 0x933   :  { %3624 = vrsqrt.f32 %v1744_v59  ;;  %v1745_v6 = vadd.f32 1e-05, %v1729_v37  ;;  %v1726_v21 = vmul.f32 0.0625, %v1704_v34  ;;  %v1716_v59 = vmul.f32 0.0625, %v1674_v11 }
 0x934   :  { %3626 = vrsqrt.f32 %v1739_v42  ;;  %v1707_v20 = vpop.xlane.xlu1 %1706  ;;  %v1735_v42 = vadd.f32 1e-05, %v1719_v36  ;;  %v1733_v37 = vadd.f32 1e-05, %v1717_v40 }
 0x935   :  { %3628 = vrsqrt.f32 %v1745_v6  ;;  %v1742_v7 = vadd.f32 1e-05, %v1726_v21  ;;  %v1727_v9 = vmul.f32 0.0625, %v1707_v20  ;;  %v1715_v6 = vmul.f32 0.0625, %v1671_v46 }
 0x936   :  { %3630 = vrsqrt.f32 %v1738_v32  ;;  %v1734_v21 = vadd.f32 1e-05, %v1718_v4  ;;  %v1714_v46 = vmul.f32 0.0625, %v4836_v3 }
 0x937   :  { %3632 = vrsqrt.f32 %v1742_v7  ;;  %v1743_v12 = vadd.f32 1e-05, %v1727_v9  ;;  %v1732_v9 = vadd.f32 1e-05, %v1716_v59 }
 0x938   :  { %v3621_v17 = vpop.eup %3620  ;;  %v4842_v32 = vpop.permute.xlu1 %1800 }
 0x939   :  { %3634 = vrsqrt.f32 %v1743_v12  ;;  %v3623_v0 = vpop.eup %3622  ;;  %v1773_v38 = vmul.f32 %v3621_v17, %v4742_v41 }
 0x93a   :  { %v4838_v10 = vpop.permute.xlu0 %1911  ;;  %3636 = vrsqrt.f32 %v1737_v54  ;;  %v1772_v61 = vmul.f32 %v3623_v0, %v4734_v39  ;;  %v1731_v54 = vadd.f32 1e-05, %v1715_v6 }
 0x93b   :  { %3638 = vrsqrt.f32 %v1736_v63 }
 0x93c   :  { %3640 = vrsqrt.f32 %v1735_v42  ;;  %v4853_v63 = vpop.permute.xlu1 %1896  ;;  %v1730_v42 = vadd.f32 1e-05, %v1714_v46 }
 0x93d   :  { %3642 = vrsqrt.f32 %v1733_v37 }
 0x93e   :  { %v4840_v5 = vpop.permute.xlu0 %1805  ;;  %3644 = vrsqrt.f32 %v1734_v21 }
 0x93f   :  { %3646 = vrsqrt.f32 %v1732_v9 }
 0x940   :  { %v3625_v58 = vpop.eup %3624  ;;  %3648 = vrsqrt.f32 %v1731_v54  ;;  %v1791_v59 = vpop.permute.xlu1 %1790 }
 0x941   :  { %v3627_v34 = vpop.eup %3626  ;;  %v1776_v22 = vmul.f32 %v3625_v58, %v4766_v53  ;;  %3650 = vrsqrt.f32 %v1730_v42  ;;  %v3553_v42 = vld [vmem:[%s5286_s13 + $0x80] sm:$0xff]  }
 0x942   :  { %v3629_v35 = vpop.eup %3628  ;;  %v4849_v12 = vpop.permute.xlu0 %1901  ;;  %v1771_v36 = vmul.f32 %v3627_v34, %v4755_v16 }
 0x943   :  { %v3631_v20 = vpop.eup %3630  ;;  %v1777_v44 = vmul.f32 %v3629_v35, %v4770_v60  ;;  %v1872_v7 = vmul.f32 %v4659_v62, %v1776_v22  ;;  %v1868_v60 = vmul.f32 %v4673_v24, %v1772_v61  ;;  %v1869_v62 = vmul.f32 %v4675_v19, %v1773_v38 }
 0x944   :  { %v3633_v11 = vpop.eup %3632  ;;  %v1770_v17 = vmul.f32 %v3631_v20, %v4745_v8 }
 0x945   :  { %v1873_v53 = vmul.f32 %v4657_v18, %v1777_v44  ;;  %v1774_v41 = vmul.f32 %v3633_v11, %v4763_v47  ;;  %v1968_v40 = vadd.f32 %v4663_v2, %v1872_v7  ;;  %v1964_v16 = vadd.f32 %v4677_v31, %v1868_v60 }
 0x946   :  { %v3635_v39 = vpop.eup %3634  ;;  %v1796_v19 = vpop.permute.xlu0 %1795  ;;  %v1965_v2 = vadd.f32 %v4679_v26, %v1869_v62 }
 0x947   :  { %v1969_v4 = vadd.f32 %v4661_v1, %v1873_v53  ;;  %v1775_v3 = vmul.f32 %v3635_v39, %v4775_v25  ;;  %v1870_v18 = vmul.f32 %v4665_v27, %v1774_v41  ;;  %v3637_v0 = vpop.eup %3636  ;;  %v1867_v1 = vmul.f32 %v4683_v33, %v1771_v36 }
 0x948   :  { %v3639_v58 = vpop.eup %3638  ;;  %v1866_v25 = vmul.f32 %v4681_v43, %v1770_v17  ;;  %v1769_v31 = vmul.f32 %v3637_v0, %v4718_v52  ;;  %v2039_v33 = vpack.c.bf16 %v1965_v2, %v1964_v16  ;;  %v1887_v52 = vpop.permute.xlu1 %1886  ;;  %v3549_v17 = vld [vmem:[%s5286_s13 + $0x78] sm:$0xff]   ;;  %v3552_v0 = vld [vmem:[%s5286_s13 + $0x20] sm:$0xff]  }
 0x949   :  { %v2041_v47 = vpack.c.bf16 %v1969_v4, %v1968_v40  ;;  %v1871_v24 = vmul.f32 %v4667_v29, %v1775_v3  ;;  %v1966_v8 = vadd.f32 %v4669_v56, %v1870_v18  ;;  %v1768_v29 = vmul.f32 %v3639_v58, %v4711_v50  ;;  %v3641_v34 = vpop.eup %3640  ;;  %v3548_v4 = vld [vmem:[%s5286_s13 + $0x70] sm:$0xff]   ;;  %v3551_v18 = vld [vmem:[%s5286_s13 + $0x18] sm:$0xff]  }
 0x94a   :  { %v1962_v37 = vadd.f32 %v4685_v23, %v1866_v25  ;;  %v1963_v56 = vadd.f32 %v4687_v14, %v1867_v1  ;;  %v3643_v43 = vpop.eup %3642  ;;  %v1865_v21 = vmul.f32 %v4834_v51, %v1769_v31  ;;  %v1767_v35 = vmul.f32 %v3641_v34, %v4731_v28  ;;  %v3550_v3 = vld [vmem:[%s5286_s13 + $0x10] sm:$0xff]   ;;  %v3557_v16 = vld [vmem:[%s5286_s13 + $0x38] sm:$0xff]   ;;  %v3560_v1 = vld [vmem:[%s5286_s13 + $0x40] sm:$0xff]  }
 0x94b   :  { %3409 = vmatprep.subr.bf16.mxu0 %v2041_v47  ;;  %3489 = vmatprep.subr.bf16.mxu1 %v2041_v47  ;;  %v1967_v27 = vadd.f32 %v4671_v57, %v1871_v24  ;;  %v1892_v57 = vpop.permute.xlu0 %1891  ;;  %v1864_v6 = vmul.f32 %v4689_v13, %v1768_v29  ;;  %v3645_v50 = vpop.eup %3644  ;;  %v1765_v28 = vmul.f32 %v3643_v43, %v4697_v48  ;;  %v3555_v24 = vld [vmem:[%s5286_s13 + $0x88] sm:$0xff]   ;;  %v3556_v58 = vld [vmem:[%s5286_s13 + $0x30] sm:$0xff]   ;;  %v3559_v2 = vld [vmem:[%s5286_s13 + $0x98] sm:$0xff]  }
 0x94c   :  { %3410 = vmatpush3.bf16.msra.mxu0 %v2041_v47  ;;  %3497 = vmatpush3.bf16.msra.mxu1 %v2041_v47  ;;  %v1961_v22 = vadd.f32 %v4838_v10, %v1865_v21  ;;  %v2038_v23 = vpack.c.bf16 %v1963_v56, %v1962_v37  ;;  %v1766_v14 = vmul.f32 %v3645_v50, %v4721_v30  ;;  %v3647_v13 = vpop.eup %3646  ;;  %v1781_v11 = vpop.permute.xlu1 %1780  ;;  %v3554_v47 = vld [vmem:[%s5286_s13 + $0x28] sm:$0xff]   ;;  %v3566_v29 = vld [vmem:[%s5286_s13 + $0x50] sm:$0xff]   ;;  %v3565_v31 = vld [vmem:[%s5286_s13 + $0xb8] sm:$0xff]  }
 0x94d   :  { %v2040_v26 = vpack.c.bf16 %v1967_v27, %v1966_v8  ;;  %v1960_v61 = vadd.f32 %v4832_v15, %v1864_v6  ;;  %v1863_v38 = vmul.f32 %v4840_v5, %v1767_v35  ;;  %v3649_v7 = vpop.eup %3648  ;;  %v1764_v15 = vmul.f32 %v3647_v13, %v4692_v45  ;;  %v3562_v8 = vld [vmem:[%s5286_s13 + $0xa0] sm:$0xff]   ;;  %v3561_v27 = vld [vmem:[%s5286_s13 + $0x48] sm:$0xff]   ;;  %v3570_v56 = vld [vmem:[%s5286_s13 + $0xd0] sm:$0xff]  }
 0x94e   :  { %v1862_v20 = vmul.f32 %v4842_v32, %v1766_v14  ;;  %v1861_v5 = vmul.f32 %v1796_v19, %v1765_v28  ;;  %v3651_v9 = vpop.eup %3650  ;;  %v1763_v53 = vmul.f32 %v3649_v7, %v4708_v55  ;;  %v3547_v55 = vld [vmem:[%s5286_s13 + $0x8] sm:$0xff]   ;;  %v3558_v19 = vld [vmem:[%s5286_s13 + $0x90] sm:$0xff]   ;;  %v3571_v34 = vld [vmem:[%s5286_s13 + $0xd8] sm:$0xff]  }
 0x94f   :  { %3411 = vmatprep.subr.bf16.mxu0 %v2040_v26  ;;  %3490 = vmatprep.subr.bf16.mxu1 %v2040_v26  ;;  %v1786_v51 = vpop.permute.xlu0 %1785  ;;  %v2037_v44 = vpack.c.bf16 %v1961_v22, %v1960_v61  ;;  %v1959_v10 = vadd.f32 %v4849_v12, %v1863_v38  ;;  %v1860_v46 = vmul.f32 %v1791_v59, %v1764_v15  ;;  %v3563_v25 = vld [vmem:[%s5286_s13 + $0xa8] sm:$0xff]   ;;  %v3564_v59 = vld [vmem:[%s5286_s13 + $0xb0] sm:$0xff]   ;;  %v3575_v21 = vld [vmem:[%s5286_s13 + $0xf8] sm:$0xff]  }
 0x950   :  { %3412 = vmatpush3.bf16.msra.mxu0 %v2040_v26  ;;  %3498 = vmatpush3.bf16.msra.mxu1 %v2040_v26  ;;  %v1958_v30 = vadd.f32 %v4853_v63, %v1862_v20  ;;  %v1957_v32 = vadd.f32 %v1892_v57, %v1861_v5  ;;  %v1762_v39 = vmul.f32 %v3651_v9, %v4700_v49  ;;  %v1877_v63 = vpop.permute.xlu1 %1876  ;;  %v3545_v49 = vld [vmem:[%s5286_s13 + $0x68] sm:$0xff]   ;;  %v3567_v26 = vld [vmem:[%s5286_s13 + $0x58] sm:$0xff]   ;;  %v3572_v57 = vld [vmem:[%s5286_s13 + $0xe0] sm:$0xff]  }
 0x951   :  { %3413 = vmatprep.subr.bf16.mxu0 %v2039_v33  ;;  %3491 = vmatprep.subr.bf16.mxu1 %v2039_v33  ;;  %v1956_v48 = vadd.f32 %v1887_v52, %v1860_v46  ;;  %v1859_v41 = vmul.f32 %v1786_v51, %v1763_v53  ;;  %v3569_v37 = vld [vmem:[%s5286_s13 + $0xc8] sm:$0xff]   ;;  %v3574_v6 = vld [vmem:[%s5286_s13 + $0xf0] sm:$0xff]  }
 0x952   :  { %v2036_v54 = vpack.c.bf16 %v1959_v10, %v1958_v30  ;;  %v1858_v45 = vmul.f32 %v1781_v11, %v1762_v39  ;;  %v3573_v43 = vld [vmem:[%s5286_s13 + $0xe8] sm:$0xff]  }
 0x953   :  { %v1882_v12 = vpop.permute.xlu0 %1881  ;;  %v2035_v60 = vpack.c.bf16 %v1957_v32, %v1956_v48 }
 0x954   :  { %3414 = vmatpush3.bf16.msra.mxu0 %v2039_v33  ;;  %3499 = vmatpush3.bf16.msra.mxu1 %v2039_v33  ;;  %v1955_v62 = vadd.f32 %v1882_v12, %v1859_v41  ;;  %v1954_v36 = vadd.f32 %v1877_v63, %v1858_v45  ;;  %v3568_v33 = vld [vmem:[%s5286_s13 + $0xc0] sm:$0xff]   ;;  %s3692_s13 = smov 120  }
 0x955   :  { %3415 = vmatprep.subr.bf16.mxu0 %v2038_v23  ;;  %3492 = vmatprep.subr.bf16.mxu1 %v2038_v23 }
 0x956   :  { %v2034_v40 = vpack.c.bf16 %v1955_v62, %v1954_v36 }
 0x958   :  { %3416 = vmatpush3.bf16.msra.mxu0 %v2038_v23  ;;  %3500 = vmatpush3.bf16.msra.mxu1 %v2038_v23 }
 0x959   :  { %3417 = vmatprep.subr.bf16.mxu0 %v2037_v44  ;;  %3493 = vmatprep.subr.bf16.mxu1 %v2037_v44 }
 0x95c   :  { %3418 = vmatpush3.bf16.msra.mxu0 %v2037_v44  ;;  %3501 = vmatpush3.bf16.msra.mxu1 %v2037_v44 }
 0x95d   :  { %3419 = vmatprep.subr.bf16.mxu0 %v2036_v54  ;;  %3494 = vmatprep.subr.bf16.mxu1 %v2036_v54 }
 0x960   :  { %3420 = vmatpush3.bf16.msra.mxu0 %v2036_v54  ;;  %3502 = vmatpush3.bf16.msra.mxu1 %v2036_v54 }
 0x961   :  { %3421 = vmatprep.subr.bf16.mxu0 %v2035_v60  ;;  %3495 = vmatprep.subr.bf16.mxu1 %v2035_v60 }
 0x964   :  { %3422 = vmatpush3.bf16.msra.mxu0 %v2035_v60  ;;  %3503 = vmatpush3.bf16.msra.mxu1 %v2035_v60 }
 0x965   :  { %3423 = vmatprep.subr.bf16.mxu0 %v2034_v40  ;;  %3496 = vmatprep.subr.bf16.mxu1 %v2034_v40 }
 0x968   :  { %3424 = vmatpush3.bf16.msra.mxu0 %v2034_v40  ;;  %3504 = vmatpush3.bf16.msra.mxu1 %v2034_v40 }
 0x96b   :  { %3450 = vmatmul.mubr.bf16.vlgmr.msra.gmra.mxu1 %v3545_v49  ;;  %3426 = vmatmul.mubr.bf16.vlgmr.msra.gmra.mxu0 %v3547_v55 }
 0x96c   :  { %3453 = vmatprep.mubr.bf16.mxu1 %v3548_v4  ;;  %3429 = vmatprep.mubr.bf16.mxu0 %v3550_v3 }
 0x973   :  { %3454 = vmatmul.mubr.bf16.gmra.mxu1 %v3549_v17  ;;  %3430 = vmatmul.mubr.bf16.gmra.mxu0 %v3551_v18 }
 0x974   :  { %3433 = vmatprep.mubr.bf16.mxu0 %v3552_v0  ;;  %3457 = vmatprep.mubr.bf16.mxu1 %v3553_v42 }
 0x97b   :  { %3434 = vmatmul.mubr.bf16.gmra.mxu0 %v3554_v47  ;;  %3458 = vmatmul.mubr.bf16.gmra.mxu1 %v3555_v24 }
 0x97c   :  { %3437 = vmatprep.mubr.bf16.mxu0 %v3556_v58  ;;  %3461 = vmatprep.mubr.bf16.mxu1 %v3558_v19 }
 0x983   :  { %3438 = vmatmul.mubr.bf16.gmra.mxu0 %v3557_v16  ;;  %3462 = vmatmul.mubr.bf16.gmra.mxu1 %v3559_v2 }
 0x984   :  { %3441 = vmatprep.mubr.bf16.mxu0 %v3560_v1  ;;  %3465 = vmatprep.mubr.bf16.mxu1 %v3562_v8 }
 0x98b   :  { %3442 = vmatmul.mubr.bf16.gmra.mxu0 %v3561_v27  ;;  %3466 = vmatmul.mubr.bf16.gmra.mxu1 %v3563_v25 }
 0x98c   :  { %3469 = vmatprep.mubr.bf16.mxu1 %v3564_v59  ;;  %3445 = vmatprep.mubr.bf16.mxu0 %v3566_v29 }
 0x993   :  { %3470 = vmatmul.mubr.bf16.gmra.mxu1 %v3565_v31  ;;  %3446 = vmatmul.mubr.bf16.gmra.mxu0 %v3567_v26 }
 0x994   :  { %3473 = vmatprep.mubr.bf16.mxu1 %v3568_v33 }
 0x99b   :  { %3474 = vmatmul.mubr.bf16.gmra.mxu1 %v3569_v37 }
 0x99c   :  { %3477 = vmatprep.mubr.bf16.mxu1 %v3570_v56 }
 0x9a3   :  { %3478 = vmatmul.mubr.bf16.gmra.mxu1 %v3571_v34 }
 0x9a4   :  { %3481 = vmatprep.mubr.bf16.mxu1 %v3572_v57 }
 0x9ab   :  { %3482 = vmatmul.mubr.bf16.gmra.mxu1 %v3573_v43 }
 0x9ac   :  { %3485 = vmatprep.mubr.bf16.mxu1 %v3574_v6 }
 0x9b3   :  { %3486 = vmatmul.mubr.bf16.gmra.mxu1 %v3575_v21  ;;  %v2804_v21 = vld [vmem:[%s5287_s14 + $0x8] sm:$0xff] }
 0xa2b   :  { %v3451_v50 = vpop.f32.mrf.mxu1  ;;  %v4979_v52 = vpop.f32.mrf.mxu0 }
 0xa2c   :  { %2615 = vrot.lane.b32.xlu0 %v3451_v50, %s3691_s1  ;;  %v2805_v50 = vld [vmem:[%s5287_s14 + $0x10] sm:$0xff] }
 0xa2d   :  { %v2364_v22 = vpop.f32.mrf.mxu1  ;;  %v4981_v35 = vpop.f32.mrf.mxu0 }
 0xa2f   :  { %v3452_v23 = vpop.f32.mrf.mxu1  ;;  %v4983_v14 = vpop.f32.mrf.mxu0 }
 0xa30   :  { %2617 = vrot.lane.b32.xlu1 %v3452_v23, %s3691_s1  ;;  %2611 = vrot.lane.b32.xlu0 %v2364_v22, %s3691_s1  ;;  %v2803_v22 = vld [vmem:[%s5287_s14] sm:$0xff] }
 0xa31   :  { %v2367_v61 = vpop.f32.mrf.mxu1  ;;  %v4985_v38 = vpop.f32.mrf.mxu0 }
 0xa33   :  { %v3455_v13 = vpop.f32.mrf.mxu1  ;;  %v4987_v51 = vpop.f32.mrf.mxu0 }
 0xa34   :  { %2613 = vrot.lane.b32.xlu1 %v2367_v61, %s3691_s1  ;;  %v2812_v61 = vld [vmem:[%s5288_s15 + $0x8] sm:$0xff] }
 0xa35   :  { %v2380_v20 = vpop.f32.mrf.mxu1  ;;  %v4989_v44 = vpop.f32.mrf.mxu0 }
 0xa37   :  { %v3456_v10 = vpop.f32.mrf.mxu1  ;;  %v4991_v28 = vpop.f32.mrf.mxu0 }
 0xa38   :  { %2623 = vrot.lane.b32.xlu1 %v3455_v13, %s3691_s1  ;;  %2625 = vrot.lane.b32.xlu0 %v3456_v10, %s3691_s1  ;;  %v2811_v13 = vld [vmem:[%s5288_s15] sm:$0xff]  ;;  %v2813_v10 = vld [vmem:[%s5288_s15 + $0x10] sm:$0xff] }
 0xa39   :  { %v2383_v7 = vpop.f32.mrf.mxu1  ;;  %v4993_v11 = vpop.f32.mrf.mxu0 }
 0xa3b   :  { %v3435_v30 = vpop.f32.mrf.mxu0  ;;  %v3459_v15 = vpop.f32.mrf.mxu1 }
 0xa3c   :  { %2619 = vrot.lane.b32.xlu1 %v2380_v20, %s3691_s1  ;;  %2621 = vrot.lane.b32.xlu0 %v2383_v7, %s3691_s1  ;;  %v2806_v7 = vld [vmem:[%s5287_s14 + $0x18] sm:$0xff] }
 0xa3d   :  { %v2396_v5 = vpop.f32.mrf.mxu1  ;;  %v2300_v9 = vpop.f32.mrf.mxu0 }
 0xa3f   :  { %v3460_v46 = vpop.f32.mrf.mxu1  ;;  %v3436_v32 = vpop.f32.mrf.mxu0 }
 0xa40   :  { %2655 = vrot.lane.b32.xlu0 %v3459_v15, %s3692_s13  ;;  %2535 = vrot.lane.b32.xlu1 %v3435_v30, %s3693_s24 }
 0xa41   :  { %v2399_v54 = vpop.f32.mrf.mxu1  ;;  %v2303_v39 = vpop.f32.mrf.mxu0 }
 0xa43   :  { %v3463_v53 = vpop.f32.mrf.mxu1  ;;  %v3439_v63 = vpop.f32.mrf.mxu0 }
 0xa44   :  { %2531 = vrot.lane.b32.xlu1 %v2300_v9, %s3693_s24  ;;  %2537 = vrot.lane.b32.xlu0 %v3436_v32, %s3693_s24  ;;  %v2807_v9 = vld [vmem:[%s5287_s14 + $0x20] sm:$0xff]  ;;  %v3029_v32 = vld [vmem:[%s5289_s16 + $0x8] sm:$0xff] }
 0xa45   :  { %v2412_v12 = vpop.f32.mrf.mxu1  ;;  %v2316_v36 = vpop.f32.mrf.mxu0 }
 0xa47   :  { %v3464_v48 = vpop.f32.mrf.mxu1  ;;  %v3440_v55 = vpop.f32.mrf.mxu0 }
 0xa48   :  { %2651 = vrot.lane.b32.xlu1 %v2396_v5, %s3692_s13  ;;  %2657 = vrot.lane.b32.xlu0 %v3460_v46, %s3692_s13  ;;  %v2814_v5 = vld [vmem:[%s5288_s15 + $0x18] sm:$0xff] }
 0xa49   :  { %v2415_v41 = vpop.f32.mrf.mxu1  ;;  %v2319_v3 = vpop.f32.mrf.mxu0 }
 0xa4b   :  { %v3467_v45 = vpop.f32.mrf.mxu1  ;;  %v3443_v18 = vpop.f32.mrf.mxu0 }
 0xa4c   :  { %2533 = vrot.lane.b32.xlu0 %v2303_v39, %s3693_s24  ;;  %2543 = vrot.lane.b32.xlu1 %v3439_v63, %s3693_s24 }
 0xa4d   :  { %v2428_v60 = vpop.f32.mrf.mxu1  ;;  %v2332_v42 = vpop.f32.mrf.mxu0 }
 0xa4f   :  { %v3468_v62 = vpop.f32.mrf.mxu1  ;;  %v3444_v58 = vpop.f32.mrf.mxu0 }
 0xa50   :  { %2653 = vrot.lane.b32.xlu0 %v2399_v54, %s3692_s13  ;;  %2663 = vrot.lane.b32.xlu1 %v3463_v53, %s3692_s13  ;;  %v3028_v53 = vld [vmem:[%s5289_s16] sm:$0xff] }
 0xa51   :  { %v2431_v40 = vpop.f32.mrf.mxu1  ;;  %v2335_v16 = vpop.f32.mrf.mxu0 }
 0xa53   :  { %v3471_v49 = vpop.f32.mrf.mxu1  ;;  %v3447_v2 = vpop.f32.mrf.mxu0 }
 0xa54   :  { %2659 = vrot.lane.b32.xlu1 %v2412_v12, %s3692_s13  ;;  %2539 = vrot.lane.b32.xlu0 %v2316_v36, %s3693_s24 }
 0xa55   :  { %v2444_v4 = vpop.f32.mrf.mxu1  ;;  %v2348_v8 = vpop.f32.mrf.mxu0 }
 0xa57   :  { %v3472_v17 = vpop.f32.mrf.mxu1  ;;  %v3448_v25 = vpop.f32.mrf.mxu0 }
 0xa58   :  { %2665 = vrot.lane.b32.xlu1 %v3464_v48, %s3692_s13  ;;  %2545 = vrot.lane.b32.xlu0 %v3440_v55, %s3693_s24 }
 0xa59   :  { %v2447_v0 = vpop.f32.mrf.mxu1  ;;  %v2351_v29 = vpop.f32.mrf.mxu0 }
 0xa5b   :  { %v3475_v47 = vpop.f32.mrf.mxu1 }
 0xa5c   :  { %2661 = vrot.lane.b32.xlu0 %v2415_v41, %s3692_s13  ;;  %2541 = vrot.lane.b32.xlu1 %v2319_v3, %s3693_s24 }
 0xa5d   :  { %v2460_v24 = vpop.f32.mrf.mxu1 }
 0xa5f   :  { %v3476_v19 = vpop.f32.mrf.mxu1 }
 0xa60   :  { %2575 = vrot.lane.b32.xlu1 %v3443_v18, %s3694_s25  ;;  %2571 = vrot.lane.b32.xlu0 %v2332_v42, %s3694_s25 }
 0xa61   :  { %v2463_v1 = vpop.f32.mrf.mxu1 }
 0xa63   :  { %v3479_v27 = vpop.f32.mrf.mxu1 }
 0xa64   :  { %2695 = vrot.lane.b32.xlu1 %v3467_v45, %s3695_s4  ;;  %2697 = vrot.lane.b32.xlu0 %v3468_v62, %s3695_s4 }
 0xa65   :  { %v2476_v59 = vpop.f32.mrf.mxu1 }
 0xa67   :  { %v3480_v31 = vpop.f32.mrf.mxu1 }
 0xa68   :  { %2691 = vrot.lane.b32.xlu1 %v2428_v60, %s3695_s4  ;;  %2693 = vrot.lane.b32.xlu0 %v2431_v40, %s3695_s4 }
 0xa69   :  { %v2479_v26 = vpop.f32.mrf.mxu1 }
 0xa6b   :  { %v3483_v33 = vpop.f32.mrf.mxu1 }
 0xa6c   :  { %2703 = vrot.lane.b32.xlu0 %v3471_v49, %s3695_s4  ;;  %2577 = vrot.lane.b32.xlu1 %v3444_v58, %s3694_s25 }
 0xa6d   :  { %v2492_v37 = vpop.f32.mrf.mxu1 }
 0xa6f   :  { %v3484_v56 = vpop.f32.mrf.mxu1 }
 0xa70   :  { %2573 = vrot.lane.b32.xlu1 %v2335_v16, %s3694_s25  ;;  %2579 = vrot.lane.b32.xlu0 %v2348_v8, %s3694_s25 }
 0xa71   :  { %v2495_v34 = vpop.f32.mrf.mxu1 }
 0xa73   :  { %v3487_v57 = vpop.f32.mrf.mxu1 }
 0xa74   :  { %2583 = vrot.lane.b32.xlu1 %v3447_v2, %s3694_s25  ;;  %2585 = vrot.lane.b32.xlu0 %v3448_v25, %s3694_s25 }
 0xa75   :  { %v2508_v43 = vpop.f32.mrf.mxu1 }
 0xa77   :  { %v3488_v6 = vpop.f32.mrf.mxu1 }
 0xa78   :  { %2699 = vrot.lane.b32.xlu1 %v2444_v4, %s3695_s4  ;;  %2581 = vrot.lane.b32.xlu0 %v2351_v29, %s3694_s25 }
 0xa79   :  { %v2511_v63 = vpop.f32.mrf.mxu1 }
 0xa7c   :  { %2705 = vrot.lane.b32.xlu1 %v3472_v17, %s3695_s4  ;;  %2701 = vrot.lane.b32.xlu0 %v2447_v0, %s3695_s4 }
 0xa80   :  { %2735 = vrot.lane.b32.xlu1 %v3475_v47, %s3696_s26  ;;  %2731 = vrot.lane.b32.xlu0 %v2460_v24, %s3696_s26 }
 0xa84   :  { %2733 = vrot.lane.b32.xlu1 %v2463_v1, %s3696_s26  ;;  %2737 = vrot.lane.b32.xlu0 %v3476_v19, %s3696_s26 }
 0xa88   :  { %2739 = vrot.lane.b32.xlu1 %v2476_v59, %s3696_s26  ;;  %2743 = vrot.lane.b32.xlu0 %v3479_v27, %s3696_s26 }
 0xa8c   :  { %2741 = vrot.lane.b32.xlu1 %v2479_v26, %s3696_s26  ;;  %2771 = vrot.lane.b32.xlu0 %v2492_v37, %s3697_s27 }
 0xa90   :  { %2775 = vrot.lane.b32.xlu1 %v3483_v33, %s3697_s27  ;;  %2777 = vrot.lane.b32.xlu0 %v3484_v56, %s3697_s27 }
 0xa94   :  { %2773 = vrot.lane.b32.xlu1 %v2495_v34, %s3697_s27  ;;  %2779 = vrot.lane.b32.xlu0 %v2508_v43, %s3697_s27 }
 0xa98   :  { %2783 = vrot.lane.b32.xlu1 %v3487_v57, %s3697_s27  ;;  %2745 = vrot.lane.b32.xlu0 %v3480_v31, %s3696_s26 }
 0xa9c   :  { %2931 = vperm.xlu1 %3515, %v2804_v21   ;;  %2785 = vrot.lane.b32.xlu0 %v3488_v6, %s3697_s27 }
 0xa9e   :  { %v2616_v23 = vpop.permute.xlu0 %2615 }
 0xaa0   :  { %2936 = vperm.xlu1 %3515, %v2805_v50   ;;  %2926 = vperm.xlu0 %3514, %v2803_v22  }
 0xaa2   :  { %v2618_v20 = vpop.permute.xlu1 %2617  ;;  %v5039_v30 = vpop.permute.xlu0 %2611 }
 0xaa4   :  { %2979 = vperm.xlu1 %3515, %v2812_v61   ;;  %2974 = vperm.xlu0 %3514, %v2811_v13  }
 0xaa6   :  { %v5041_v15 = vpop.permute.xlu1 %2613 }
 0xaa8   :  { %2984 = vperm.xlu1 %3515, %v2813_v10   ;;  %2941 = vperm.xlu0 %3514, %v2806_v7  }
 0xaaa   :  { %v2624_v46 = vpop.permute.xlu1 %2623  ;;  %v2626_v54 = vpop.permute.xlu0 %2625 }
 0xaac   :  { %2989 = vperm.xlu1 %3515, %v2814_v5   ;;  %2946 = vperm.xlu0 %3514, %v2807_v9  }
 0xaae   :  { %v2620_v12 = vpop.permute.xlu1 %2619  ;;  %v2622_v48 = vpop.permute.xlu0 %2621 }
 0xab0   :  { %3043 = vperm.xlu1 %3515, %v3029_v32   ;;  %3038 = vperm.xlu0 %3514, %v3028_v53  }
 0xab2   :  { %v2656_v39 = vpop.permute.xlu0 %2655  ;;  %v2536_v41 = vpop.permute.xlu1 %2535 }
 0xab3   :  { %v2557_v24 = vadd.f32 %v4979_v52, %v2536_v41 }
 0xab4   :  { %2781 = vrot.lane.b32.xlu1 %v2511_v63, %s3697_s27 }
 0xab6   :  { %v2532_v45 = vpop.permute.xlu1 %2531  ;;  %v2538_v60 = vpop.permute.xlu0 %2537 }
 0xab7   :  { %v2558_v29 = vadd.f32 %v4983_v14, %v2538_v60 }
 0xaba   :  { %v5056_v62 = vpop.permute.xlu1 %2651  ;;  %v2658_v36 = vpop.permute.xlu0 %2657 }
 0xabe   :  { %v2534_v40 = vpop.permute.xlu0 %2533  ;;  %v2544_v49 = vpop.permute.xlu1 %2543 }
 0xabf   :  { %v2561_v6 = vadd.f32 %v4987_v51, %v2544_v49 }
 0xac2   :  { %v5058_v55 = vpop.permute.xlu0 %2653  ;;  %v2664_v4 = vpop.permute.xlu1 %2663 }
 0xac6   :  { %v2660_v3 = vpop.permute.xlu1 %2659  ;;  %v2540_v17 = vpop.permute.xlu0 %2539 }
 0xac7   :  { %v2559_v37 = vadd.f32 %v2540_v17, %v4989_v44 }
 0xaca   :  { %v2666_v18 = vpop.permute.xlu1 %2665  ;;  %v2546_v0 = vpop.permute.xlu0 %2545 }
 0xacb   :  { %v2562_v21 = vadd.f32 %v4991_v28, %v2546_v0  ;;  %v2555_v28 = vadd.f32 %v2532_v45, %v4981_v35 }
 0xace   :  { %v2662_v42 = vpop.permute.xlu0 %2661  ;;  %v2542_v47 = vpop.permute.xlu1 %2541 }
 0xacf   :  { %v2560_v10 = vadd.f32 %v2542_v47, %v4993_v11  ;;  %v2556_v11 = vadd.f32 %v2534_v40, %v4985_v38 }
 0xad2   :  { %v2576_v58 = vpop.permute.xlu1 %2575  ;;  %v2572_v19 = vpop.permute.xlu0 %2571 }
 0xad3   :  { %v2597_v16 = vadd.f32 %v2576_v58, %v2557_v24  ;;  %v2595_v60 = vadd.f32 %v2572_v19, %v2555_v28 }
 0xad5   :  { %v2637_v2 = vadd.f32 %v2616_v23, %v2597_v16 }
 0xad6   :  { %v2696_v1 = vpop.permute.xlu1 %2695  ;;  %v2698_v8 = vpop.permute.xlu0 %2697 }
 0xad7   :  { %v2677_v27 = vadd.f32 %v2656_v39, %v2637_v2 }
 0xada   :  { %v2692_v25 = vpop.permute.xlu1 %2691  ;;  %v2694_v59 = vpop.permute.xlu0 %2693 }
 0xade   :  { %v5062_v31 = vpop.permute.xlu0 %2703  ;;  %v2578_v26 = vpop.permute.xlu1 %2577 }
 0xadf   :  { %v2598_v33 = vadd.f32 %v2578_v26, %v2558_v29 }
 0xae1   :  { %v2638_v56 = vadd.f32 %v2618_v20, %v2598_v33 }
 0xae2   :  { %v2574_v34 = vpop.permute.xlu1 %2573  ;;  %v2580_v52 = vpop.permute.xlu0 %2579 }
 0xae3   :  { %v2599_v57 = vadd.f32 %v2580_v52, %v2559_v37  ;;  %v2678_v43 = vadd.f32 %v2658_v36, %v2638_v56 }
 0xae5   :  { %v2639_v50 = vadd.f32 %v2620_v12, %v2599_v57  ;;  %v2718_v38 = vadd.f32 %v2698_v8, %v2678_v43 }
 0xae6   :  { %v2584_v22 = vpop.permute.xlu1 %2583  ;;  %v2586_v23 = vpop.permute.xlu0 %2585 }
 0xae7   :  { %v2601_v61 = vadd.f32 %v2584_v22, %v2561_v6  ;;  %v2602_v14 = vadd.f32 %v2586_v23, %v2562_v21  ;;  %v2679_v13 = vadd.f32 %v2660_v3, %v2639_v50  ;;  %v2815_v23 = vld [vmem:[%s5288_s15 + $0x20] sm:$0xff] }
 0xae9   :  { %v2641_v7 = vadd.f32 %v2624_v46, %v2601_v61  ;;  %v2642_v5 = vadd.f32 %v2626_v54, %v2602_v14  ;;  %v2635_v46 = vadd.f32 %v5039_v30, %v2595_v60  ;;  %v2809_v61 = vld [vmem:[%s5287_s14 + $0x30] sm:$0xff] }
 0xaea   :  { %v2700_v44 = vpop.permute.xlu1 %2699  ;;  %v2582_v20 = vpop.permute.xlu0 %2581 }
 0xaeb   :  { %v2600_v9 = vadd.f32 %v2582_v20, %v2560_v10  ;;  %v2682_v32 = vadd.f32 %v2666_v18, %v2642_v5  ;;  %v2681_v53 = vadd.f32 %v2664_v4, %v2641_v7  ;;  %v2596_v18 = vadd.f32 %v2574_v34, %v2556_v11  ;;  %v2808_v7 = vld [vmem:[%s5287_s14 + $0x28] sm:$0xff]  ;;  %v2817_v11 = vld [vmem:[%s5288_s15 + $0x30] sm:$0xff] }
 0xaec   :  { %v2719_v34 = vadd.f32 %v2700_v44, %v2679_v13  ;;  %v3031_v13 = vld [vmem:[%s5289_s16 + $0x18] sm:$0xff]  ;;  %v3030_v44 = vld [vmem:[%s5289_s16 + $0x10] sm:$0xff] }
 0xaed   :  { %v2640_v39 = vadd.f32 %v2622_v48, %v2600_v9  ;;  %v2675_v48 = vadd.f32 %v5056_v62, %v2635_v46  ;;  %v2636_v35 = vadd.f32 %v5041_v15, %v2596_v18  ;;  %v2721_v37 = vadd.f32 %v5062_v31, %v2681_v53  ;;  %v2816_v9 = vld [vmem:[%s5288_s15 + $0x28] sm:$0xff] }
 0xaee   :  { %v2706_v41 = vpop.permute.xlu1 %2705  ;;  %v2702_v51 = vpop.permute.xlu0 %2701 }
 0xaef   :  { %v5069_v12 = vadd.f32 %v2706_v41, %v2682_v32  ;;  %v2680_v63 = vadd.f32 %v2662_v42, %v2640_v39  ;;  %v2715_v47 = vadd.f32 %v2692_v25, %v2675_v48  ;;  %v2717_v42 = vadd.f32 %v2696_v1, %v2677_v27  ;;  %v2810_v32 = vld [vmem:[%s5287_s14 + $0x38] sm:$0xff] }
 0xaf0   :  { %v2676_v19 = vadd.f32 %v5058_v55, %v2636_v35 }
 0xaf1   :  { %v2720_v36 = vadd.f32 %v2702_v51, %v2680_v63 }
 0xaf2   :  { %v2736_v49 = vpop.permute.xlu1 %2735  ;;  %v2732_v3 = vpop.permute.xlu0 %2731  ;;  %v2716_v15 = vadd.f32 %v2694_v59, %v2676_v19 }
 0xaf3   :  { %v2755_v45 = vadd.f32 %v2732_v3, %v2715_v47  ;;  %v2757_v16 = vadd.f32 %v2736_v49, %v2717_v42 }
 0xaf6   :  { %v2734_v54 = vpop.permute.xlu1 %2733  ;;  %v2738_v17 = vpop.permute.xlu0 %2737 }
 0xaf7   :  { %v2758_v2 = vadd.f32 %v2738_v17, %v2718_v38  ;;  %v2756_v27 = vadd.f32 %v2734_v54, %v2716_v15 }
 0xafa   :  { %v2740_v4 = vpop.permute.xlu1 %2739  ;;  %v2744_v0 = vpop.permute.xlu0 %2743 }
 0xafb   :  { %v2761_v59 = vadd.f32 %v2744_v0, %v2721_v37  ;;  %v2759_v6 = vadd.f32 %v2740_v4, %v2719_v34 }
 0xafe   :  { %v2742_v24 = vpop.permute.xlu1 %2741  ;;  %v2772_v58 = vpop.permute.xlu0 %2771 }
 0xaff   :  { %v2760_v40 = vadd.f32 %v2742_v24, %v2720_v36  ;;  %v5076_v30 = vadd.f32 %v2772_v58, %v2755_v45 }
 0xb01   :  { %v2820_v62 = vsel %vm2819_vm0, %v5076_v30, 0.0 }
 0xb02   :  { %v2776_v29 = vpop.permute.xlu1 %2775  ;;  %2821 = vadd.xlane.f32.xlu1 %v2820_v62  ;;  %v2778_v25 = vpop.permute.xlu0 %2777 }
 0xb03   :  { %v5080_v26 = vadd.f32 %v2776_v29, %v2757_v16  ;;  %v5082_v1 = vadd.f32 %v2778_v25, %v2758_v2 }
 0xb05   :  { %v2826_v55 = vsel %vm2819_vm0, %v5080_v26, 0.0  ;;  %v2829_v8 = vsel %vm2819_vm0, %v5082_v1, 0.0 }
 0xb06   :  { %v2774_v33 = vpop.permute.xlu1 %2773  ;;  %2827 = vadd.xlane.f32.xlu0 %v2826_v55  ;;  %2830 = vadd.xlane.f32.xlu1 %v2829_v8  ;;  %v2780_v57 = vpop.permute.xlu0 %2779 }
 0xb07   :  { %v5089_v56 = vadd.f32 %v2774_v33, %v2756_v27  ;;  %v5095_v50 = vadd.f32 %v2780_v57, %v2759_v6  ;;  %v2818_v57 = vld [vmem:[%s5288_s15 + $0x38] sm:$0xff]  ;;  %v3033_v6 = vld [vmem:[%s5289_s16 + $0x28] sm:$0xff] }
 0xb09   :  { %v2823_v52 = vsel %vm2819_vm0, %v5089_v56, 0.0  ;;  %v2832_v31 = vsel %vm2819_vm0, %v5095_v50, 0.0 }
 0xb0a   :  { %v2784_v43 = vpop.permute.xlu1 %2783  ;;  %2824 = vadd.xlane.f32.xlu0 %v2823_v52  ;;  %v2746_v39 = vpop.permute.xlu0 %2745 }
 0xb0b   :  { %v5093_v21 = vadd.f32 %v2784_v43, %v2761_v59  ;;  %v2762_v28 = vadd.f32 %v2746_v39, %v5069_v12  ;;  %v3032_v43 = vld [vmem:[%s5289_s16 + $0x20] sm:$0xff] }
 0xb0d   :  { %v2838_v22 = vsel %vm2819_vm0, %v5093_v21, 0.0 }
 0xb0e   :  { %2839 = vadd.xlane.f32.xlu0 %v2838_v22  ;;  %v2786_v51 = vpop.permute.xlu0 %2785 }
 0xb0f   :  { %v5135_v63 = vadd.f32 %v2786_v51, %v2762_v28 }
 0xb11   :  { %v2841_v49 = vsel %vm2819_vm0, %v5135_v63, 0.0 }
 0xb12   :  { %2833 = vadd.xlane.f32.xlu0 %v2832_v31 }
 0xb17   :  { %2994 = vperm.xlu1 %3515, %v2815_v23   ;;  %v5107_v14 = vpop.permute.xlu1 %2931 }
 0xb1b   :  { %2956 = vperm.xlu1 %3515, %v2809_v61   ;;  %v5112_v10 = vpop.permute.xlu1 %2936  ;;  %v5146_v46 = vpop.permute.xlu0 %2926 }
 0xb1f   :  { %3053 = vperm.xlu1 %3515, %v3031_v13   ;;  %v5117_v5 = vpop.permute.xlu1 %2979  ;;  %v5148_v12 = vpop.permute.xlu0 %2974 }
 0xb23   :  { %v5122_v20 = vpop.permute.xlu1 %2984  ;;  %v5150_v54 = vpop.permute.xlu0 %2941 }
 0xb27   :  { %v5130_v53 = vpop.permute.xlu1 %2989  ;;  %v5152_v17 = vpop.permute.xlu0 %2946 }
 0xb28   :  { %2951 = vperm.xlu0 %3514, %v2808_v7  }
 0xb2b   :  { %v5132_v41 = vpop.permute.xlu1 %3043  ;;  %v5154_v18 = vpop.permute.xlu0 %3038 }
 0xb2c   :  { %3048 = vperm.xlu0 %3514, %v3030_v44  }
 0xb2f   :  { %v2782_v60 = vpop.permute.xlu1 %2781 }
 0xb30   :  { %2999 = vperm.xlu0 %3514, %v2816_v9   ;;  %v5137_v36 = vadd.f32 %v2782_v60, %v2760_v40  ;;  %v3105_v60 = vld [vmem:[#allocation2] sm:$0x1] }
 0xb32   :  { %v2835_v3 = vsel %vm2819_vm0, %v5137_v36, 0.0 }
 0xb34   :  { %2961 = vperm.xlu0 %3514, %v2810_v32  }
 0xb43   :  { %2842 = vadd.xlane.f32.xlu1 %v2841_v49 }
 0xb47   :  { %2836 = vadd.xlane.f32.xlu1 %v2835_v3 }
 0xb58   :  { %3004 = vperm.xlu1 %3515, %v2817_v11  }
 0xb8b   :  { %v2822_v48 = vpop.xlane.xlu1 %2821 }
 0xb8c   :  { %v2844_v4 = vmul.f32 0.5, %v2822_v48 }
 0xb8e   :  { %v5157_v42 = vsub.f32 %v5076_v30, %v2844_v4 }
 0xb8f   :  { %v2831_v0 = vpop.xlane.xlu1 %2830  ;;  %v2828_v47 = vpop.xlane.xlu0 %2827 }
 0xb90   :  { %v2847_v35 = vmul.f32 0.5, %v2831_v0  ;;  %v2846_v45 = vmul.f32 0.5, %v2828_v47  ;;  %v2860_v29 = vmul.f32 %v5157_v42, %v5157_v42 }
 0xb92   :  { %v5160_v24 = vsub.f32 %v5082_v1, %v2847_v35  ;;  %v5163_v58 = vsub.f32 %v5080_v26, %v2846_v45  ;;  %v2868_v27 = vsel %vm2819_vm0, %v2860_v29, 0.0 }
 0xb93   :  { %v2825_v19 = vpop.xlane.xlu0 %2824 }
 0xb94   :  { %v2845_v38 = vmul.f32 0.5, %v2825_v19  ;;  %v2863_v40 = vmul.f32 %v5160_v24, %v5160_v24  ;;  %v2862_v16 = vmul.f32 %v5163_v58, %v5163_v58 }
 0xb96   :  { %v5170_v2 = vsub.f32 %v5089_v56, %v2845_v38  ;;  %v2877_v30 = vsel %vm2819_vm0, %v2863_v40, 0.0  ;;  %v2874_v62 = vsel %vm2819_vm0, %v2862_v16, 0.0 }
 0xb97   :  { %2878 = vadd.xlane.f32.xlu1 %v2877_v30  ;;  %2875 = vadd.xlane.f32.xlu0 %v2874_v62  ;;  %v2840_v25 = vpop.xlane.xlu0 %2839 }
 0xb98   :  { %v2850_v15 = vmul.f32 0.5, %v2840_v25  ;;  %v2861_v26 = vmul.f32 %v5170_v2, %v5170_v2 }
 0xb9a   :  { %v5179_v1 = vsub.f32 %v5093_v21, %v2850_v15  ;;  %v2871_v55 = vsel %vm2819_vm0, %v2861_v26, 0.0  ;;  %v5201_v21 = vpop.permute.xlu1 %2994 }
 0xb9b   :  { %2869 = vadd.xlane.f32.xlu0 %v2868_v27  ;;  %2872 = vadd.xlane.f32.xlu1 %v2871_v55  ;;  %v2834_v8 = vpop.xlane.xlu0 %2833 }
 0xb9c   :  { %v2848_v33 = vmul.f32 0.5, %v2834_v8  ;;  %v2866_v37 = vmul.f32 %v5179_v1, %v5179_v1 }
 0xb9e   :  { %v5186_v56 = vsub.f32 %v5095_v50, %v2848_v33  ;;  %v2886_v34 = vsel %vm2819_vm0, %v2866_v37, 0.0  ;;  %v3035_v50 = vld [vmem:[%s5289_s16 + $0x38] sm:$0xff]  ;;  %v5206_v22 = vpop.permute.xlu1 %2956 }
 0xb9f   :  { %2887 = vadd.xlane.f32.xlu0 %v2886_v34 }
 0xba0   :  { %v2864_v59 = vmul.f32 %v5186_v56, %v5186_v56 }
 0xba2   :  { %v2880_v52 = vsel %vm2819_vm0, %v2864_v59, 0.0  ;;  %v5208_v31 = vpop.permute.xlu1 %3053 }
 0xba3   :  { %2881 = vadd.xlane.f32.xlu0 %v2880_v52  ;;  %v5225_v49 = vpop.permute.xlu0 %2951 }
 0xbac   :  { %3009 = vperm.xlu1 %3515, %v2818_v57  }
 0xbb9   :  { %3058 = vperm.xlu0 %3514, %v3032_v43  }
 0xbbd   :  { %3063 = vperm.xlu0 %3514, %v3033_v6  }
 0xbc1   :  { %3073 = vperm.xlu0 %3514, %v3035_v50  }
 0xbcc   :  { %v2843_v23 = vpop.xlane.xlu1 %2842 }
 0xbcd   :  { %v2851_v61 = vmul.f32 0.5, %v2843_v23 }
 0xbcf   :  { %v5211_v13 = vsub.f32 %v5135_v63, %v2851_v61  ;;  %v3034_v63 = vld [vmem:[%s5289_s16 + $0x30] sm:$0xff]  ;;  %s3698_s16 = smov [#allocation3]  }
 0xbd0   :  { %v2837_v7 = vpop.xlane.xlu1 %2836  ;;  %s3124_s23 = sshll.u32 %s3698_s16, 4  ;;  %s3125_s23 = int_to_ptr.vmem [resolvable:$true] %s3124_s23 }
 0xbd1   :  { %v2849_v44 = vmul.f32 0.5, %v2837_v7  ;;  %v2867_v9 = vmul.f32 %v5211_v13, %v5211_v13  ;;  %s3668_s1 = scalar_lea.vmem %s3125_s23, 16  ;;  %s3672_s13 = scalar_lea.vmem %s3125_s23, 32 }
 0xbd2   :  { %p3669_p0 = scmp.ne.s32.totalorder %s3125_s23, %s3668_s1  ;;  %p3673_p1 = scmp.lt.s32.totalorder %s3125_s23, %s3125_s23 }
 0xbd3   :  { %v5216_v32 = vsub.f32 %v5137_v36, %v2849_v44  ;;  %v2889_v39 = vsel %vm2819_vm0, %v2867_v9, 0.0  ;;  %v5227_v36 = vpop.permute.xlu0 %3048  ;;  %p3674_p2 = scmp.lt.s32.totalorder %s3672_s13, %s3668_s1 }
 0xbd4   :  { %2890 = vadd.xlane.f32.xlu1 %v2889_v39  ;;  %v5233_v48 = vpop.permute.xlu1 %3004 }
 0xbd5   :  { %v2865_v51 = vmul.f32 %v5216_v32, %v5216_v32  ;;  %p3675_p3 = por %p3674_p2, %p3673_p1 }
 0xbd7   :  { %v2883_v28 = vsel %vm2819_vm0, %v2865_v51, 0.0  ;;  %v5229_v3 = vpop.permute.xlu0 %2999  ;;  %p3676_p4 = pnand %p3675_p3, %p3669_p0 }
 0xbd8   :  { %2884 = vadd.xlane.f32.xlu1 %v2883_v28 }
 0xbdb   :  { %v5231_v11 = vpop.permute.xlu0 %2961 }
 0xbe9   :  { %3068 = vperm.xlu1 %3515, %v3034_v63  }
 0xbed   :  { %3108 = vperm.xlu1 %3515, %v3105_v60  }
 0xc20   :  { %v2876_v4 = vpop.xlane.xlu0 %2875  ;;  %v2879_v0 = vpop.xlane.xlu1 %2878 }
 0xc21   :  { %v2894_v30 = vmul.f32 0.5, %v2876_v4  ;;  %v2895_v29 = vmul.f32 0.5, %v2879_v0 }
 0xc23   :  { %v2902_v25 = vadd.f32 1e-05, %v2894_v30  ;;  %v2903_v26 = vadd.f32 1e-05, %v2895_v29 }
 0xc24   :  { %v2870_v47 = vpop.xlane.xlu0 %2869  ;;  %v2873_v35 = vpop.xlane.xlu1 %2872 }
 0xc25   :  { %v2893_v45 = vmul.f32 0.5, %v2873_v35  ;;  %v2892_v19 = vmul.f32 0.5, %v2870_v47 }
 0xc27   :  { %v2901_v40 = vadd.f32 1e-05, %v2893_v45  ;;  %v2900_v16 = vadd.f32 1e-05, %v2892_v19 }
 0xc28   :  { %v2888_v38 = vpop.xlane.xlu0 %2887  ;;  %v3010_v37 = vpop.permute.xlu1 %3009 }
 0xc29   :  { %3652 = vrsqrt.f32 %v2901_v40  ;;  %v2898_v55 = vmul.f32 0.5, %v2888_v38 }
 0xc2a   :  { %3654 = vrsqrt.f32 %v2900_v16 }
 0xc2b   :  { %3656 = vrsqrt.f32 %v2902_v25  ;;  %v2906_v34 = vadd.f32 1e-05, %v2898_v55 }
 0xc2c   :  { %v2882_v62 = vpop.xlane.xlu0 %2881  ;;  %3658 = vrsqrt.f32 %v2903_v26 }
 0xc2d   :  { %v2896_v15 = vmul.f32 0.5, %v2882_v62 }
 0xc2f   :  { %v2904_v27 = vadd.f32 1e-05, %v2896_v15 }
 0xc31   :  { %3660 = vrsqrt.f32 %v2904_v27 }
 0xc32   :  { %3662 = vrsqrt.f32 %v2906_v34 }
 0xc36   :  { %v3653_v8 = vpop.eup %3652 }
 0xc37   :  { %v3655_v33 = vpop.eup %3654  ;;  %v2917_v59 = vmul.f32 %v3653_v8, %v5170_v2 }
 0xc38   :  { %v2916_v52 = vmul.f32 %v3655_v33, %v5157_v42  ;;  %v3657_v43 = vpop.eup %3656 }
 0xc39   :  { %v2965_v23 = vmul.f32 %v5107_v14, %v2917_v59  ;;  %v2918_v7 = vmul.f32 %v3657_v43, %v5163_v58  ;;  %v3659_v9 = vpop.eup %3658 }
 0xc3a   :  { %v2964_v50 = vmul.f32 %v5146_v46, %v2916_v52  ;;  %v2919_v63 = vmul.f32 %v3659_v9, %v5160_v24 }
 0xc3b   :  { %v3013_v42 = vadd.f32 %v5117_v5, %v2965_v23  ;;  %v2966_v60 = vmul.f32 %v5112_v10, %v2918_v7 }
 0xc3c   :  { %v3012_v2 = vadd.f32 %v5148_v12, %v2964_v50  ;;  %v2967_v58 = vmul.f32 %v5150_v54, %v2919_v63 }
 0xc3d   :  { %v3021_v4 = vmax.f32 %v3013_v42, 0.0  ;;  %v3014_v0 = vadd.f32 %v5122_v20, %v2966_v60 }
 0xc3e   :  { %v3661_v51 = vpop.eup %3660  ;;  %v3020_v14 = vmax.f32 %v3012_v2, 0.0  ;;  %v3015_v24 = vadd.f32 %v5130_v53, %v2967_v58 }
 0xc3f   :  { %v2920_v46 = vmul.f32 %v3661_v51, %v5186_v56  ;;  %v3663_v35 = vpop.eup %3662  ;;  %v3077_v5 = vmul.f32 %v5132_v41, %v3021_v4  ;;  %v3022_v45 = vmax.f32 %v3014_v0, 0.0 }
 0xc40   :  { %v3076_v12 = vmul.f32 %v5154_v18, %v3020_v14  ;;  %v2922_v56 = vmul.f32 %v3663_v35, %v5179_v1  ;;  %v3059_v18 = vpop.permute.xlu0 %3058 }
 0xc41   :  { %v2968_v47 = vmul.f32 %v5152_v17, %v2920_v46  ;;  %v3085_v54 = vsel %vm2819_vm0, %v3077_v5, 0.0  ;;  %v3023_v17 = vmax.f32 %v3015_v24, 0.0  ;;  %v3078_v40 = vmul.f32 %v5227_v36, %v3022_v45 }
 0xc42   :  { %v3084_v38 = vsel %vm2819_vm0, %v3076_v12, 0.0  ;;  %v2970_v41 = vmul.f32 %v5206_v22, %v2922_v56 }
 0xc43   :  { %v3016_v10 = vadd.f32 %v5201_v21, %v2968_v47  ;;  %v3086_v21 = vadd.f32 %v3085_v54, %v3084_v38  ;;  %v3079_v62 = vmul.f32 %v5208_v31, %v3023_v17  ;;  %v3087_v29 = vsel %vm2819_vm0, %v3078_v40, 0.0 }
 0xc44   :  { %v3018_v15 = vadd.f32 %v5233_v48, %v2970_v41  ;;  %v3064_v27 = vpop.permute.xlu0 %3063 }
 0xc45   :  { %v3024_v16 = vmax.f32 %v3016_v10, 0.0  ;;  %v3088_v26 = vadd.f32 %v3087_v29, %v3086_v21 }
 0xc46   :  { %v3026_v33 = vmax.f32 %v3018_v15, 0.0 }
 0xc47   :  { %v3080_v25 = vmul.f32 %v3059_v18, %v3024_v16 }
 0xc49   :  { %v3091_v8 = vsel %vm2819_vm0, %v3080_v25, 0.0 }
 0xc5d   :  { %v2891_v57 = vpop.xlane.xlu1 %2890 }
 0xc5e   :  { %v2899_v6 = vmul.f32 0.5, %v2891_v57 }
 0xc60   :  { %v2907_v61 = vadd.f32 1e-05, %v2899_v6 }
 0xc61   :  { %v2885_v44 = vpop.xlane.xlu1 %2884 }
 0xc62   :  { %3664 = vrsqrt.f32 %v2907_v61  ;;  %v2897_v39 = vmul.f32 0.5, %v2885_v44  ;;  %v3111_v61 = vlaneseq }
 0xc64   :  { %v2905_v28 = vadd.f32 1e-05, %v2897_v39  ;;  %v3112_v9 = vshrl.u32 %v3111_v61, 7 }
 0xc65   :  { %v3069_v55 = vpop.permute.xlu1 %3068 }
 0xc66   :  { %3666 = vrsqrt.f32 %v2905_v28  ;;  %v3082_v52 = vmul.f32 %v3069_v55, %v3026_v33  ;;  %v3113_v51 = vsub.s32 0, %v3112_v9 }
 0xc68   :  { %v3095_v6 = vsel %vm2819_vm0, %v3082_v52, 0.0 }
 0xc69   :  { %v3109_v42 = vpop.permute.xlu1 %3108 }
 0xc6a   :  { %v3114_v60 = vrot.slane %v3109_v42, %v3113_v51 }
 0xc6f   :  { %v3665_v19 = vpop.eup %3664 }
 0xc70   :  { %v2923_v20 = vmul.f32 %v3665_v19, %v5211_v13 }
 0xc72   :  { %v2971_v53 = vmul.f32 %v5231_v11, %v2923_v20  ;;  %v3089_v11 = vsel %vm2819_vm0, %v3079_v62, 0.0 }
 0xc73   :  { %v3667_v30 = vpop.eup %3666  ;;  %v3090_v34 = vadd.f32 %v3089_v11, %v3088_v26 }
 0xc74   :  { %v2921_v1 = vmul.f32 %v3667_v30, %v5216_v32  ;;  %v3019_v36 = vadd.f32 %v3010_v37, %v2971_v53 }
 0xc75   :  { %v3092_v57 = vadd.f32 %v3091_v8, %v3090_v34 }
 0xc76   :  { %v2969_v13 = vmul.f32 %v5225_v49, %v2921_v1  ;;  %v3027_v31 = vmax.f32 %v3019_v36, 0.0  ;;  %v3074_v49 = vpop.permute.xlu0 %3073 }
 0xc78   :  { %v3017_v22 = vadd.f32 %v5229_v3, %v2969_v13  ;;  %v3083_v43 = vmul.f32 %v3074_v49, %v3027_v31 }
 0xc7a   :  { %v3025_v32 = vmax.f32 %v3017_v22, 0.0  ;;  %v3097_v50 = vsel %vm2819_vm0, %v3083_v43, 0.0 }
 0xc7c   :  { %v3081_v59 = vmul.f32 %v3064_v27, %v3025_v32 }
 0xc7e   :  { %v3093_v48 = vsel %vm2819_vm0, %v3081_v59, 0.0 }
 0xc7f   :  { %v3094_v37 = vadd.f32 %v3093_v48, %v3092_v57 }
 0xc81   :  { %v3096_v3 = vadd.f32 %v3095_v6, %v3094_v37 }
 0xc83   :  { %v3098_v23 = vadd.f32 %v3097_v50, %v3096_v3 }
 0xc85   :  { %v3099_v7 = vrot.slane %v3098_v23, 4 }
 0xc87   :  { %v3100_v44 = vadd.f32 %v3099_v7, %v3098_v23 }
 0xc89   :  { %v3101_v39 = vrot.slane %v3100_v44, 2 }
 0xc8b   :  { %v3102_v2 = vadd.f32 %v3101_v39, %v3100_v44 }
 0xc8d   :  { %v3103_v28 = vrot.slane %v3102_v2, 1 }
 0xc8f   :  { %v3104_v63 = vadd.f32 %v3103_v28, %v3102_v2 }
 0xc91   :  { %v3115_v46 = vadd.f32 %v3114_v60, %v3104_v63 }
 0xc93   :  { %3117 = vst.msk [vmem:[#allocation3] sm:$0x1] %vm3116_vm2, %v3115_v46 }
 0xc94   :  { %3679 = shalt.err (!%p3676_p4)
}
 0xc95   :  { %3127 = dma.vmem_to_hbm [thread:$0]  %s3125_s23, 16, %s5291_s18, [#allocation4]  }
 0xc96   :  { %3688 = dma.done.wait [#allocation4], 16  }
 0xc97   :  { %3689 = vsyncadd [#allocation4], 4294967280 }
 0xc98   :  { %3131 = vsyncpa [#allocation4], 1 }

</bundles_post_ra>
